<compile_context>
chip_gen: v7x
topology: tpu7x:2x2x1
jax: 0.10.0
libtpu: 0.0.40
codegen_flags: <defaults>
</compile_context>

<pallas_src>
import functools

import jax
import jax.numpy as jnp
from jax import lax
from jax.experimental import pallas as pl
from jax.experimental.pallas import tpu as pltpu

HIDDEN = 768
DROP_P = 0.1
EPS = 1e-12


def _pick_row_tile(rows):
    """Largest practical row tile; prefer an even grid-step count (v7x 2-TC)."""
    candidates = (512, 384, 256, 192, 128, 96, 64, 32, 16, 8)
    for tile in candidates:
        if rows % tile == 0 and (rows // tile) % 2 == 0:
            return tile
    for tile in candidates:
        if rows % tile == 0:
            return tile
    return rows  # full-array block (always legal)


def _hash_u32(x):
    """splitmix32-style finalizer on uint32 arrays (pure jnp integer ops)."""
    x = x ^ (x >> 16)
    x = x * jnp.uint32(0x7FEB352D)
    x = x ^ (x >> 15)
    x = x * jnp.uint32(0x846CA68B)
    x = x ^ (x >> 16)
    return x


def _fused_kernel(seed_ref, x_ref, res_ref, gamma_ref, beta_ref, o_ref,
                  *, keep_prob, training, row_tile, hidden):
    # x_ref/res_ref/o_ref: (row_tile, hidden) f32 VMEM tiles
    x = x_ref[...]

    if training and keep_prob < 1.0:
        # Integer-threshold dropout mask from a counter-based hash.
        tile = pl.program_id(0).astype(jnp.uint32)
        row = lax.broadcasted_iota(jnp.uint32, x.shape, 0)
        col = lax.broadcasted_iota(jnp.uint32, x.shape, 1)
        g_row = row + jnp.uint32(row_tile) * tile
        idx = g_row * jnp.uint32(hidden) + col
        seed = seed_ref[0].astype(jnp.uint32)
        z = idx * jnp.uint32(0x9E3779B9) + seed * jnp.uint32(0x85EBCA6B)
        bits = _hash_u32(z)
        threshold = jnp.uint32(int(keep_prob * (1 << 32)) & 0xFFFFFFFF)
        keep = bits < threshold
        x = jnp.where(keep, x * jnp.float32(1.0 / keep_prob), jnp.float32(0.0))

    y = x + res_ref[...]

    # Two-pass LayerNorm (biased variance, matching torch.nn.LayerNorm).
    inv_h = jnp.float32(1.0 / hidden)
    s1 = jnp.sum(y, axis=-1, keepdims=True)
    s2 = jnp.sum(y * y, axis=-1, keepdims=True)
    mean = s1 * inv_h
    var = jnp.maximum(s2 * inv_h - mean * mean, jnp.float32(0.0))
    inv = lax.rsqrt(var + jnp.float32(EPS))          # EUP slot, ~free

    gamma = gamma_ref[...]                            # (1, H)
    beta = beta_ref[...]                              # (1, H)
    scale = inv * gamma                               # (R,1)*(1,H) -> (R,H), hoisted once
    o_ref[...] = y * scale + (beta - mean * scale)


def dropout_add_layernorm(x229, x196, gamma, beta, seed, *, training=True):
    """x229, x196: (B, S, H) float32; gamma, beta: (H,) float32."""
    B, S, H = x229.shape
    rows = B * S
    row_tile = _pick_row_tile(rows)
    grid = rows // row_tile

    x2 = x229.reshape(rows, H)
    r2 = x196.reshape(rows, H)
    g2 = gamma.reshape(1, H)
    b2 = beta.reshape(1, H)
    seed_arr = jnp.asarray([seed], dtype=jnp.int32)

    kernel = functools.partial(_fused_kernel,
                               keep_prob=1.0 - DROP_P,
                               training=training,
                               row_tile=row_tile,
                               hidden=H)

    out = pl.pallas_call(
        kernel,
        out_shape=jax.ShapeDtypeStruct((rows, H), jnp.float32),
        grid_spec=pltpu.PrefetchScalarGridSpec(
            num_scalar_prefetch=1,
            grid=(grid,),
            in_specs=[
                pl.BlockSpec((row_tile, H), lambda i, seed: (i, 0)),  # x229
                pl.BlockSpec((row_tile, H), lambda i, seed: (i, 0)),  # x196
                pl.BlockSpec((1, H), lambda i, seed: (0, 0)),         # gamma
                pl.BlockSpec((1, H), lambda i, seed: (0, 0)),         # beta
            ],
            out_specs=pl.BlockSpec((row_tile, H), lambda i, seed: (i, 0)),
        ),
        compiler_params=pltpu.CompilerParams(
            dimension_semantics=("parallel",)),
    )(seed_arr, x2, r2, g2, b2)

    return out.reshape(B, S, H)


if __name__ == "__main__":
    key = jax.random.PRNGKey(0)
    k1, k2 = jax.random.split(key)

    B, S, H = 1, 384, HIDDEN
    x229 = jax.random.normal(k1, (B, S, H), dtype=jnp.float32)
    x196 = jax.random.normal(k2, (B, S, H), dtype=jnp.float32)

    # PyTorch LayerNorm init: gamma=1, beta=0.
    gamma = jnp.ones((H,), dtype=jnp.float32)
    beta = jnp.zeros((H,), dtype=jnp.float32)

    # Eval-mode (dropout == identity) -> exact pure-JAX reference check.
    out_eval = dropout_add_layernorm(x229, x196, gamma, beta, seed=0,
                                     training=False)
    out_eval = jax.block_until_ready(out_eval)

    y = x229 + x196
    mean = jnp.mean(y, axis=-1, keepdims=True)
    var = jnp.mean((y - mean) ** 2, axis=-1, keepdims=True)
    ref = (y - mean) * lax.rsqrt(var + EPS) * gamma + beta
    assert jnp.allclose(out_eval, ref, atol=1e-4, rtol=1e-4)

    # Training-mode (dropout active via the in-kernel hash PRNG).
    out_train = dropout_add_layernorm(x229, x196, gamma, beta, seed=1234,
                                      training=True)
    out_train = jax.block_until_ready(out_train)
    assert bool(jnp.all(jnp.isfinite(out_train)))

    print("KERNEL_OK")
</pallas_src>

<mosaic_0001>
module attributes {stable_mosaic.version = 11 : i64} {
  func.func @_fused_kernel(%arg0: i32, %arg1: memref<1xi32, #tpu.memory_space<smem>>, %arg2: memref<192x768xf32, #tpu.memory_space<vmem>>, %arg3: memref<192x768xf32, #tpu.memory_space<vmem>>, %arg4: memref<1x768xf32, #tpu.memory_space<vmem>>, %arg5: memref<1x768xf32, #tpu.memory_space<vmem>>, %arg6: memref<192x768xf32, #tpu.memory_space<vmem>>) attributes {dimension_semantics = [#tpu.dimension_semantics<parallel>], iteration_bounds = array<i64: 2>, scalar_prefetch = 1 : i64, scratch_operands = 0 : i64, tpu.core_type = #tpu.core_type<tc>, window_params = [{transform_indices = @transform_0, window_bounds = array<i64: 192, 768>}, {transform_indices = @transform_1, window_bounds = array<i64: 192, 768>}, {pipeline_mode = #tpu.pipeline_mode<synchronous>, transform_indices = @transform_2, window_bounds = array<i64: 1, 768>}, {pipeline_mode = #tpu.pipeline_mode<synchronous>, transform_indices = @transform_3, window_bounds = array<i64: 1, 768>}, {transform_indices = @transform_4, window_bounds = array<i64: 192, 768>}]} {
    %c0 = arith.constant 0 : index
    %c0_0 = arith.constant 0 : index
    %0 = vector.load %arg2[%c0, %c0_0] : memref<192x768xf32, #tpu.memory_space<vmem>>, vector<192x768xf32>
    %c0_1 = arith.constant 0 : index
    %c0_2 = arith.constant 0 : index
    %1 = vector.load %arg3[%c0_1, %c0_2] : memref<192x768xf32, #tpu.memory_space<vmem>>, vector<192x768xf32>
    %2 = arith.addf %0, %1 : vector<192x768xf32>
    %cst = arith.constant dense<0.000000e+00> : vector<192xf32>
    %3 = vector.multi_reduction <add>, %2, %cst [1] : vector<192x768xf32> to vector<192xf32>
    %4 = vector.shape_cast %3 : vector<192xf32> to vector<192x1xf32>
    %5 = arith.mulf %2, %2 : vector<192x768xf32>
    %cst_3 = arith.constant dense<0.000000e+00> : vector<192xf32>
    %6 = vector.multi_reduction <add>, %5, %cst_3 [1] : vector<192x768xf32> to vector<192xf32>
    %7 = vector.shape_cast %6 : vector<192xf32> to vector<192x1xf32>
    %cst_4 = arith.constant 0.00130208337 : f32
    %8 = vector.broadcast %cst_4 : f32 to vector<192x1xf32>
    %9 = arith.mulf %4, %8 : vector<192x1xf32>
    %cst_5 = arith.constant 0.00130208337 : f32
    %10 = vector.broadcast %cst_5 : f32 to vector<192x1xf32>
    %11 = arith.mulf %7, %10 : vector<192x1xf32>
    %12 = arith.mulf %9, %9 : vector<192x1xf32>
    %13 = arith.subf %11, %12 : vector<192x1xf32>
    %cst_6 = arith.constant 0.000000e+00 : f32
    %14 = vector.broadcast %cst_6 : f32 to vector<192x1xf32>
    %15 = arith.maximumf %13, %14 : vector<192x1xf32>
    %cst_7 = arith.constant 9.99999996E-13 : f32
    %16 = vector.broadcast %cst_7 : f32 to vector<192x1xf32>
    %17 = arith.addf %15, %16 : vector<192x1xf32>
    %18 = math.rsqrt %17 : vector<192x1xf32>
    %c0_8 = arith.constant 0 : index
    %c0_9 = arith.constant 0 : index
    %19 = vector.load %arg4[%c0_8, %c0_9] : memref<1x768xf32, #tpu.memory_space<vmem>>, vector<1x768xf32>
    %c0_10 = arith.constant 0 : index
    %c0_11 = arith.constant 0 : index
    %20 = vector.load %arg5[%c0_10, %c0_11] : memref<1x768xf32, #tpu.memory_space<vmem>>, vector<1x768xf32>
    %21 = vector.broadcast %18 : vector<192x1xf32> to vector<192x768xf32>
    %22 = vector.broadcast %19 : vector<1x768xf32> to vector<192x768xf32>
    %23 = arith.mulf %21, %22 : vector<192x768xf32>
    %24 = arith.mulf %2, %23 : vector<192x768xf32>
    %25 = vector.broadcast %9 : vector<192x1xf32> to vector<192x768xf32>
    %26 = arith.mulf %25, %23 : vector<192x768xf32>
    %27 = vector.broadcast %20 : vector<1x768xf32> to vector<192x768xf32>
    %28 = arith.subf %27, %26 : vector<192x768xf32>
    %29 = arith.addf %24, %28 : vector<192x768xf32>
    %c0_12 = arith.constant 0 : index
    %c0_13 = arith.constant 0 : index
    %30 = vector.load %arg6[%c0_12, %c0_13] : memref<192x768xf32, #tpu.memory_space<vmem>>, vector<192x768xf32>
    tpu.vector_store %arg6[%c0_12, %c0_13], %29 {strides = array<i32>} : memref<192x768xf32, #tpu.memory_space<vmem>>, vector<192x768xf32>,
    return
  }
  func.func @transform_0(%arg0: i32, %arg1: memref<1xi32, #tpu.memory_space<smem>>) -> (i32, i32) {
    %c0_i32 = arith.constant 0 : i32
    %c0_i32_0 = arith.constant 0 : i32
    return %arg0, %c0_i32 : i32, i32
  }
  func.func @transform_1(%arg0: i32, %arg1: memref<1xi32, #tpu.memory_space<smem>>) -> (i32, i32) {
    %c0_i32 = arith.constant 0 : i32
    %c0_i32_0 = arith.constant 0 : i32
    return %arg0, %c0_i32 : i32, i32
  }
  func.func @transform_2(%arg0: i32, %arg1: memref<1xi32, #tpu.memory_space<smem>>) -> (i32, i32) {
    %c0_i32 = arith.constant 0 : i32
    %c0_i32_0 = arith.constant 0 : i32
    %c0_i32_1 = arith.constant 0 : i32
    return %c0_i32, %c0_i32_0 : i32, i32
  }
  func.func @transform_3(%arg0: i32, %arg1: memref<1xi32, #tpu.memory_space<smem>>) -> (i32, i32) {
    %c0_i32 = arith.constant 0 : i32
    %c0_i32_0 = arith.constant 0 : i32
    %c0_i32_1 = arith.constant 0 : i32
    return %c0_i32, %c0_i32_0 : i32, i32
  }
  func.func @transform_4(%arg0: i32, %arg1: memref<1xi32, #tpu.memory_space<smem>>) -> (i32, i32) {
    %c0_i32 = arith.constant 0 : i32
    %c0_i32_0 = arith.constant 0 : i32
    return %arg0, %c0_i32 : i32, i32
  }
}

</mosaic_0001>

<bundles_post_ra>
// kernel: tpu_custom_call.1
= control target key start
LH: loop header
LB: loop body
LE: loop exit
PB: predicated region body
PF: predicated region fallthrough
CT: control target
= control target key end

     0   :  { %s5342_s0 = inlined_call_operand.<no memory space> [shape: s32[1], index: 0, kind: input, shape index: {}]   ;;  %s5343_s1 = inlined_call_operand.hbm [shape: f32[384,768], index: 1, kind: input, shape index: {}]   ;;  %s5344_s2 = inlined_call_operand.hbm [shape: f32[384,768], index: 2, kind: input, shape index: {}]   ;;  %s5345_s3 = inlined_call_operand.hbm [shape: f32[1,768], index: 3, kind: input, shape index: {}]   ;;  %s5346_s4 = inlined_call_operand.hbm [shape: f32[1,768], index: 4, kind: input, shape index: {}]   ;;  %s5347_s5 = inlined_call_operand.hbm [shape: f32[384,768], index: 5, kind: output, shape index: {}]  }
   0x1   :  { %5580 = sst [smem:[#allocation177_spill]] %s5343_s1 }
   0x2   :  { %11 = vsyncpa [#allocation5], 0 }
   0x3   :  { %13 = vsyncpa [#allocation5 + $0x1], 0 }
   0x4   :  { %14 = vsyncpa [#allocation8], 0 }
   0x5   :  { %16 = vsyncpa [#allocation8 + $0x1], 0 }
   0x6   :  { %17 = vsyncpa [#allocation11], 0 }
   0x7   :  { %18 = vsyncpa [#allocation6], 0 }
   0x8   :  { %20 = vsyncpa [#allocation6 + $0x1], 0  ;;  %s2807_s0 = smov 0   ;;  %s2809_s18 = smov 0  }
   0x9   :  { %s2811_s19 = smov 0   ;;  %s2813_s20 = smov 0  }
   0xa LB: > { %s2828_s21 = sadd.s32 4294967295, %s2766_s20   ;;  %s2426_s22 = sadd.s32 4294967294, %s2766_s20   ;;  %s2766_s20 = sphi %s2813_s20, %s5990_s20   ;;  %s2762_s19 = sphi %s2811_s19, %s5989_s19   ;;  %s2758_s18 = sphi %s2809_s18, %s5988_s18   ;;  %s2754_s0 = sphi %s2807_s0, %s5987_s0  }
   0xb   : > { %s2832_s23 = sadd.s32 1, %s2766_s20   ;;  %s33_s24 = sadd.s32 1, %s2762_s19 }
   0xc   : > { %s30_s25 = ssub.s32 %s2766_s20, %s2832_s23  ;;  %p40_p0 = scmp.ne.s32.totalorder %s2762_s19, %s2758_s18 }
   0xd   : > { %p31_p1 = scmp.eq.s32.totalorder %s30_s25, 0  ;;  %p41_p2 = scmp.eq.s32.totalorder %s2766_s20, 0 }
   0xe   : > { %p46_p3 = scmp.ne.s32.totalorder %s2758_s18, %s2754_s0  ;;  %p5348_p4 = scmp.eq.s32.totalorder %s2828_s21, 0 }
   0xf   : > { %s2844_s26 = scalar_select %p31_p1, %s2762_s19, %s33_s24  }
  0x10   : > { %p2846_p5 = por %p41_p2, %p40_p0  ;;  %p2852_p6 = por %p5348_p4, %p46_p3 }
  0x11   : > { %p138_p7 = scmp.eq.s32.totalorder %s2828_s21, 1  ;;  %p144_p8 = scmp.eq.s32.totalorder %s2426_s22, 1 }
  0x12   : > { %s5582_s28 = scalar_select %p2852_p6, 1, 0 }
  0x13   : > { %p2427_p9 = scmp.ge.s32.totalorder %s2766_s20, 1  ;;  %p151_p10 = scmp.lt.s32.totalorder %s2766_s20, 3 }
  0x14   : > { %p2859_p11 = por %p138_p7, %p40_p0  ;;  %p2863_p12 = por %p144_p8, %p46_p3 }
  0x15   : > { %p2867_p13 = pnand %p2427_p9, %p151_p10  ;;  %s2768_s7 = smov [#allocation9]  }
  0x16   : > { %s5583_s29 = scalar_select %p2859_p11, 1, 0 }
  0x17   : > { %s5584_s30 = scalar_select %p2863_p12, 1, 0 }
  0x18   : > { %s5585_s6 = scalar_select %p2867_p13, 1, 0 }
  0x19   : > { %p2459_p2 = pneg %p2867_p13  ;;  %s164_s8 = sshll.u32 %s2768_s7, 4  ;;  %s165_s8 = int_to_ptr.vmem [resolvable:$true] %s164_s8 }
  0x1a   : > { %p2479_p4 = scmp.lt.s32.totalorder %s2766_s20, 2  ;;  %p5586_p0 = scmp.eq.s32.totalorder %s2828_s21, 0 }
  0x1b   : > { %s2769_s11 = smov [#allocation10]   ;;  %s2572_s15 = scalar_lea.hbm %s5345_s3, 96 }
  0x1c   : > { %p2877_p7 = pnand %p2459_p2, %p5586_p0  ;;  %p2883_p3 = pnand %p2479_p4, %p2846_p5 }
  0x1d   : > { %s175_s12 = sshll.u32 %s2769_s11, 4  ;;  %p2573_p8 = scmp.ne.s32.totalorder %s5345_s3, %s2572_s15  ;;  %s176_s12 = int_to_ptr.vmem [resolvable:$true] %s175_s12 }
  0x1e   : > { %s5588_s10 = scalar_select %p2883_p3, 1, 0 }
  0x1f   : > { %p2574_p9 = pneg %p2877_p7  ;;  %p2579_p4 = scmp.lt.u32.totalorder %s2572_s15, %s5345_s3 }
  0x21   : > { %p2575_p10 = pnand %p2574_p9, %p2573_p8 }
  0x23   : > { %p2576_p2 = pneg %p2575_p10 }
  0x25   : > { %p2581_p5 = pnand %p2579_p4, %p2576_p2 }
  0x27   : > { %2584 = shalt.err (!%p2581_p5)
}
  0x28   : > { %s2585_s25 = scalar_lea.vmem %s165_s8, 96  ;;  %p2593_p11 = scmp.lt.s32.totalorder %s165_s8, %s165_s8 }
  0x29   : > { %p2586_p0 = scmp.ne.s32.totalorder %s165_s8, %s2585_s25  ;;  %p2594_p6 = scmp.lt.s32.totalorder %s2585_s25, %s2585_s25 }
  0x2b   : > { %p2588_p1 = pnand %p2586_p0, %p2574_p9  ;;  %p2595_p13 = por %p2594_p6, %p2593_p11 }
  0x2d   : > { %p2589_p12 = pneg %p2588_p1 }
  0x2f   : > { %p2596_p3 = pnand %p2595_p13, %p2589_p12 }
  0x31   : > { %2599 = shalt.err (!%p2596_p3)
}
  0x32   : > { %2462 = dma.hbm_to_vmem [thread:$0]  (!%p2877_p7), %s5345_s3, 96, %s165_s8, [#allocation8]  }
  0x33   : > { %s2600_s14 = scalar_lea.hbm %s5346_s4, 96 }
  0x34   : > { %p2601_p1 = scmp.ne.s32.totalorder %s5346_s4, %s2600_s14  ;;  %p2607_p12 = scmp.lt.u32.totalorder %s2600_s14, %s5346_s4 }
  0x36   : > { %p2603_p6 = pnand %p2601_p1, %p2574_p9 }
  0x38   : > { %p2604_p11 = pneg %p2603_p6 }
  0x3a   : > { %p2609_p13 = pnand %p2607_p12, %p2604_p11 }
  0x3c   : > { %2612 = shalt.err (!%p2609_p13)
}
  0x3d   : > { %s2613_s8 = scalar_lea.vmem %s176_s12, 96  ;;  %p2621_p2 = scmp.lt.s32.totalorder %s176_s12, %s176_s12 }
  0x3e   : > { %p2614_p3 = scmp.ne.s32.totalorder %s176_s12, %s2613_s8  ;;  %p2622_p4 = scmp.lt.s32.totalorder %s2613_s8, %s2613_s8 }
  0x40   : > { %p2616_p8 = pnand %p2614_p3, %p2574_p9  ;;  %p2623_p5 = por %p2622_p4, %p2621_p2 }
  0x42   : > { %p2617_p10 = pneg %p2616_p8 }
  0x44   : > { %p2624_p0 = pnand %p2623_p5, %p2617_p10 }
  0x46   : > { %2627 = shalt.err (!%p2624_p0)
}
  0x47   : > { %2465 = dma.hbm_to_vmem [thread:$0]  (!%p2877_p7), %s5346_s4, 96, %s176_s12, [#allocation11]  }
  0x48   : > { %s186_s27 = sand.u32 1, %s2762_s19   ;;  %s2480_s7 = smul.u32 18432, %s2766_s20 }
  0x49   : > { %s2931_s11 = smul.u32 1152, %s186_s27  ;;  %s5589_s1 = sld [smem:[#allocation177_spill]] }
  0x4a   : > { %s208_s17 = sand.u32 1, %s2766_s20   ;;  %s2944_s12 = scalar_lea.sflag [#allocation5], %s186_s27 }
  0x4b   : > { %s190_s15 = scalar_lea.vmem [#allocation4], %s2931_s11  ;;  %p5590_p9 = scmp.ne.s32.totalorder %s5588_s10, 0 }
  0x4c   : > { %s198_s16 = sshll.u32 %s190_s15, 4  ;;  %s2942_s16 = int_to_ptr.vmem [resolvable:$true] %s198_s16 }
  0x4d   : > { %p2630_p1 = pneg %p5590_p9 }
  0x4f   : > { %s2938_s9 = scalar_lea.hbm %s5589_s1, %s2480_s7  ;;  %s2633_s25 = scalar_lea.hbm %s5589_s1, 36864 }
  0x50   : > { %s2628_s22 = scalar_lea.hbm %s2938_s9, 18432  ;;  %p2634_p12 = scmp.lt.u32.totalorder %s2938_s9, %s5589_s1 }
  0x51   : > { %p2629_p7 = scmp.ne.s32.totalorder %s2938_s9, %s2628_s22  ;;  %p2635_p13 = scmp.lt.u32.totalorder %s2633_s25, %s2628_s22 }
  0x52   : > { %p2637_p8 = scmp.lt.u32.totalorder %s2628_s22, %s2938_s9 }
  0x53   : > { %p2631_p6 = pnand %p2630_p1, %p2629_p7  ;;  %p2636_p3 = por %p2635_p13, %p2634_p12 }
  0x55   : > { %p2632_p11 = pneg %p2631_p6  ;;  %p2638_p10 = por %p2637_p8, %p2636_p3 }
  0x57   : > { %p2639_p2 = pnand %p2638_p10, %p2632_p11 }
  0x59   : > { %2642 = shalt.err (!%p2639_p2)
}
  0x5a   : > { %s2643_s27 = scalar_lea.vmem %s2942_s16, 18432  ;;  %s2770_s15 = smov [#allocation4]  }
  0x5b   : > { %p2644_p4 = scmp.ne.s32.totalorder %s2942_s16, %s2643_s27  ;;  %s2648_s8 = sshll.u32 %s2770_s15, 4  ;;  %s2649_s8 = int_to_ptr.vmem [resolvable:$false] %s2648_s8 }
  0x5c   : > { %s2650_s24 = scalar_lea.vmem %s2649_s8, 36864  ;;  %p2651_p7 = scmp.lt.s32.totalorder %s2942_s16, %s2649_s8 }
  0x5d   : > { %p2646_p5 = pnand %p2644_p4, %p2630_p1  ;;  %p2652_p6 = scmp.lt.s32.totalorder %s2650_s24, %s2643_s27 }
  0x5f   : > { %p2647_p0 = pneg %p2646_p5  ;;  %p2653_p12 = por %p2652_p6, %p2651_p7 }
  0x61   : > { %p2654_p13 = pnand %p2653_p12, %p2647_p0 }
  0x63   : > { %2657 = shalt.err (!%p2654_p13)
}
  0x64   : > { %s2771_s22 = smov 768   ;;  %s2772_s25 = smov 48  }
  0x65   : > { %2469 = dma.hbm_to_vmem [thread:$0]  (!%p5590_p9), %s2938_s9, 18432, %s2942_s16, %s2944_s12, %s2771_s22, %s2771_s22, %s2772_s25  }
  0x66   : > { %s2980_s27 = scalar_lea.hbm %s5344_s2, %s2480_s7  ;;  %s212_s15 = scalar_lea.vmem [#allocation7], %s2931_s11 }
  0x67   : > { %s220_s8 = sshll.u32 %s212_s15, 4  ;;  %s2987_s24 = scalar_lea.sflag [#allocation8], %s208_s17  ;;  %s2983_s8 = int_to_ptr.vmem [resolvable:$true] %s220_s8 }
  0x68   : > { %s2658_s1 = scalar_lea.hbm %s2980_s27, 18432  ;;  %s2663_s16 = scalar_lea.hbm %s5344_s2, 36864 }
  0x69   : > { %p2659_p11 = scmp.ne.s32.totalorder %s2980_s27, %s2658_s1  ;;  %p2664_p10 = scmp.lt.u32.totalorder %s2980_s27, %s5344_s2 }
  0x6a   : > { %p2665_p2 = scmp.lt.u32.totalorder %s2663_s16, %s2658_s1  ;;  %p2667_p5 = scmp.lt.u32.totalorder %s2658_s1, %s2980_s27 }
  0x6b   : > { %p2661_p3 = pnand %p2659_p11, %p2630_p1 }
  0x6c   : > { %p2666_p4 = por %p2665_p2, %p2664_p10 }
  0x6d   : > { %p2662_p8 = pneg %p2661_p3 }
  0x6e   : > { %p2668_p0 = por %p2667_p5, %p2666_p4 }
  0x70   : > { %p2669_p7 = pnand %p2668_p0, %p2662_p8 }
  0x72   : > { %2672 = shalt.err (!%p2669_p7)
}
  0x73   : > { %s2673_s11 = scalar_lea.vmem %s2983_s8, 18432  ;;  %s2773_s17 = smov [#allocation7]  }
  0x74   : > { %p2674_p6 = scmp.ne.s32.totalorder %s2983_s8, %s2673_s11  ;;  %s2678_s14 = sshll.u32 %s2773_s17, 4  ;;  %s2679_s14 = int_to_ptr.vmem [resolvable:$false] %s2678_s14 }
  0x75   : > { %s2680_s15 = scalar_lea.vmem %s2679_s14, 36864  ;;  %p2681_p11 = scmp.lt.s32.totalorder %s2983_s8, %s2679_s14 }
  0x76   : > { %p2676_p12 = pnand %p2674_p6, %p2630_p1  ;;  %p2682_p3 = scmp.lt.s32.totalorder %s2680_s15, %s2673_s11 }
  0x78   : > { %p2677_p13 = pneg %p2676_p12  ;;  %p2683_p10 = por %p2682_p3, %p2681_p11 }
  0x7a   : > { %p2684_p2 = pnand %p2683_p10, %p2677_p13 }
  0x7c   : > { %2687 = shalt.err (!%p2684_p2)
}
  0x7d   : > { %2472 = dma.hbm_to_vmem [thread:$0]  (!%p5590_p9), %s2980_s27, 18432, %s2983_s8, %s2987_s24, %s2771_s22, %s2771_s22, %s2772_s25  }
  0x7e   : > { %p5591_p1 = scmp.ne.s32.totalorder %s5585_s6, 0 }
  0x80   : > { %232 = sbr.rel (%p5591_p1) target bundleno = 666 (0x29a), region = 36 }
  0x87   : > { %s3019_s1 = sand.u32 1, %s2758_s18   ;;  %p5592_p8 = scmp.ne.s32.totalorder %s5582_s28, 0 }
  0x88   : > { %s3022_s9 = smul.u32 1152, %s3019_s1  ;;  %s235_s10 = scalar_lea.sflag [#allocation5], %s3019_s1 }
  0x8a   : > { %s3026_s7 = scalar_lea.vmem [#allocation4], %s3022_s9 }
  0x8b   : > { %2733 = dma.done.wait (%p5592_p8), %s235_s10, 18432  }
  0x8c   : > { %2735 = vsyncadd (%p5592_p8), %s235_s10, 4294948864  ;;  %s243_s6 = sand.u32 1, %s2828_s21   ;;  %s3034_s25 = scalar_lea.vmem [#allocation7], %s3022_s9 }
  0x8d   : > { %s244_s22 = scalar_lea.sflag [#allocation8], %s243_s6 }
  0x8e   : > { %2737 = dma.done.wait (%p5592_p8), %s244_s22, 18432  }
  0x8f   : > { %2739 = vsyncadd (%p5592_p8), %s244_s22, 4294948864  ;;  %p5593_p9 = scmp.eq.s32.totalorder %s2828_s21, 0 }
  0x91   : > { %2741 = dma.done.wait (%p5593_p9), [#allocation8], 96   ;;  %p5594_p4 = pmov %p5593_p9 }
  0x93   : > { %2743 = vsyncadd (%p5594_p4), [#allocation8], 4294967200  ;;  %p5595_p5 = pmov %p5594_p4 }
  0x94   : > { %p5596_p0 = pmov %p5594_p4 }
  0x95   : > { %2745 = dma.done.wait (%p5595_p5), [#allocation11], 96  }
  0x96   : > { %2747 = vsyncadd (%p5596_p0), [#allocation11], 4294967200  ;;  %v300_v0 = vld [vmem:[%s3026_s7 + $0x60] sm:$0xff]  ;;  %v301_v1 = vld [vmem:[%s3026_s7 + $0x68] sm:$0xff]  ;;  %s4405_s28 = scalar_lea.vmem [#allocation12], %s3022_s9  ;;  %s2484_s27 = smul.u32 18432, %s2828_s21 }
  0x97   : > { %v302_v2 = vld [vmem:[%s3026_s7 + $0x70] sm:$0xff]  ;;  %v303_v3 = vld [vmem:[%s3026_s7 + $0x78] sm:$0xff]  ;;  %v444_v4 = vld [vmem:[%s3034_s25 + $0x60] sm:$0xff]  ;;  %s2311_s8 = sshll.u32 %s4405_s28, 4  ;;  %s2297_s12 = scalar_lea.sflag [#allocation6], %s3019_s1  ;;  %s5292_s8 = int_to_ptr.vmem [resolvable:$true] %s2311_s8 }
  0x98   : > { %v445_v5 = vld [vmem:[%s3034_s25 + $0x68] sm:$0xff]  ;;  %v446_v6 = vld [vmem:[%s3034_s25 + $0x70] sm:$0xff]  ;;  %v304_v7 = vld [vmem:[%s3026_s7 + $0x80] sm:$0xff]  ;;  %v3058_v10 = vadd.f32 %v444_v4, %v300_v0  ;;  %s5290_s16 = scalar_lea.hbm %s5347_s5, %s2484_s27  ;;  %s2688_s13 = scalar_lea.vmem %s5292_s8, 18432 }
  0x99   : > { %v447_v8 = vld [vmem:[%s3034_s25 + $0x78] sm:$0xff]  ;;  %v448_v9 = vld [vmem:[%s3034_s25 + $0x80] sm:$0xff]  ;;  %v3060_v11 = vadd.f32 %v445_v5, %v301_v1  ;;  %v3062_v12 = vadd.f32 %v446_v6, %v302_v2  ;;  %v305_v13 = vld [vmem:[%s3026_s7 + $0x88] sm:$0xff]  ;;  %p2689_p7 = scmp.ne.s32.totalorder %s5292_s8, %s2688_s13  ;;  %p5984_p6 = scmp.ne.s32.totalorder %s5583_s29, 0 }
  0x9a   : > { %5597 = vst [vmem:[#allocation18_spill] sm:$0xff] %v3058_v10  ;;  %v288_v14 = vld [vmem:[%s3026_s7] sm:$0xff]  ;;  %v289_v15 = vld [vmem:[%s3026_s7 + $0x8] sm:$0xff]  ;;  %v290_v16 = vld [vmem:[%s3026_s7 + $0x10] sm:$0xff]  ;;  %v3069_v18 = vadd.f32 %v447_v8, %v303_v3  ;;  %v3075_v22 = vadd.f32 %v448_v9, %v304_v7  ;;  %v900_v6 = vmul.f32 %v3058_v10, %v3058_v10  ;;  %s2774_s11 = smov [#allocation12]  }
  0x9b   : > { %5598 = vst [vmem:[#allocation19_spill] sm:$0xff] %v3060_v11  ;;  %5599 = vst [vmem:[#allocation20_spill] sm:$0xff] %v3062_v12  ;;  %v449_v17 = vld [vmem:[%s3034_s25 + $0x88] sm:$0xff]  ;;  %v734_v19 = vadd.f32 %v3060_v11, %v3058_v10  ;;  %v291_v20 = vld [vmem:[%s3026_s7 + $0x18] sm:$0xff]  ;;  %p2690_p12 = pnand %p2689_p7, %p5984_p6  ;;  %s2692_s17 = sshll.u32 %s2774_s11, 4  ;;  %s2693_s17 = int_to_ptr.vmem [resolvable:$false] %s2692_s17 }
  0x9c   : > { %5600 = vst [vmem:[#allocation21_spill] sm:$0xff] %v3069_v18  ;;  %v292_v21 = vld [vmem:[%s3026_s7 + $0x20] sm:$0xff]  ;;  %5601 = vst [vmem:[#allocation22_spill] sm:$0xff] %v3075_v22  ;;  %v433_v24 = vld [vmem:[%s3034_s25 + $0x8] sm:$0xff]  ;;  %v3093_v36 = vadd.f32 %v449_v17, %v305_v13  ;;  %s2694_s14 = scalar_lea.vmem %s2693_s17, 36864  ;;  %p2695_p11 = scmp.lt.s32.totalorder %s5292_s8, %s2693_s17 }
  0x9d   : > { %v432_v23 = vld [vmem:[%s3034_s25] sm:$0xff]  ;;  %v434_v25 = vld [vmem:[%s3034_s25 + $0x10] sm:$0xff]  ;;  %v735_v26 = vadd.f32 %v734_v19, %v3062_v12  ;;  %v293_v27 = vld [vmem:[%s3026_s7 + $0x28] sm:$0xff]  ;;  %v3086_v31 = vadd.f32 %v433_v24, %v289_v15  ;;  %v901_v24 = vmul.f32 %v3060_v11, %v3060_v11  ;;  %p2691_p13 = pneg %p2690_p12  ;;  %p2696_p3 = scmp.lt.s32.totalorder %s2694_s14, %s2688_s13 }
  0x9e   : > { %v435_v28 = vld [vmem:[%s3034_s25 + $0x18] sm:$0xff]  ;;  %v436_v29 = vld [vmem:[%s3034_s25 + $0x20] sm:$0xff]  ;;  %v3084_v30 = vadd.f32 %v432_v23, %v288_v14  ;;  %v3088_v32 = vadd.f32 %v434_v25, %v290_v16  ;;  %v437_v33 = vld [vmem:[%s3034_s25 + $0x28] sm:$0xff]  ;;  %5605 = vst [vmem:[#allocation26_spill] sm:$0xff] %v3093_v36  ;;  %v3160_v25 = vmul.f32 %v3062_v12, %v3062_v12 }
  0x9f   : > { %5603 = vst [vmem:[#allocation24_spill] sm:$0xff] %v3086_v31  ;;  %v306_v34 = vld [vmem:[%s3026_s7 + $0x90] sm:$0xff]  ;;  %v307_v35 = vld [vmem:[%s3026_s7 + $0x98] sm:$0xff]  ;;  %v736_v37 = vadd.f32 %v735_v26, %v3069_v18  ;;  %v3096_v38 = vadd.f32 %v435_v28, %v291_v20  ;;  %v308_v40 = vld [vmem:[%s3026_s7 + $0xa0] sm:$0xff]  ;;  %v3103_v43 = vadd.f32 %v436_v29, %v292_v21  ;;  %v3117_v54 = vadd.f32 %v437_v33, %v293_v27  ;;  %p2697_p10 = por %p2696_p3, %p2695_p11 }
  0xa0   : > { %5602 = vst [vmem:[#allocation23_spill] sm:$0xff] %v3084_v30  ;;  %5604 = vst [vmem:[#allocation25_spill] sm:$0xff] %v3088_v32  ;;  %v720_v39 = vadd.f32 %v3086_v31, %v3084_v30  ;;  %v309_v41 = vld [vmem:[%s3026_s7 + $0xa8] sm:$0xff]  ;;  %v310_v42 = vld [vmem:[%s3026_s7 + $0xb0] sm:$0xff] }
  0xa1   : > { %5606 = vst [vmem:[#allocation27_spill] sm:$0xff] %v3096_v38  ;;  %5607 = vst [vmem:[#allocation28_spill] sm:$0xff] %v3103_v43  ;;  %v450_v44 = vld [vmem:[%s3034_s25 + $0x90] sm:$0xff]  ;;  %v451_v45 = vld [vmem:[%s3034_s25 + $0x98] sm:$0xff]  ;;  %v737_v47 = vadd.f32 %v736_v37, %v3075_v22  ;;  %p2698_p2 = pnand %p2697_p10, %p2691_p13 }
  0xa2   : > { %v452_v46 = vld [vmem:[%s3034_s25 + $0xa0] sm:$0xff]  ;;  %v721_v48 = vadd.f32 %v720_v39, %v3088_v32  ;;  %v311_v49 = vld [vmem:[%s3026_s7 + $0xb8] sm:$0xff]  ;;  %v453_v50 = vld [vmem:[%s3034_s25 + $0xa8] sm:$0xff]  ;;  %v3113_v52 = vadd.f32 %v450_v44, %v306_v34  ;;  %v3115_v53 = vadd.f32 %v451_v45, %v307_v35  ;;  %5610 = vst [vmem:[#allocation31_spill] sm:$0xff] %v3117_v54  ;;  %v3182_v44 = vmul.f32 %v3075_v22, %v3075_v22 }
  0xa3   : > { %v454_v51 = vld [vmem:[%s3034_s25 + $0xb0] sm:$0xff]  ;;  %v455_v55 = vld [vmem:[%s3034_s25 + $0xb8] sm:$0xff]  ;;  %v3120_v56 = vadd.f32 %v452_v46, %v308_v40  ;;  %v738_v59 = vadd.f32 %v737_v47, %v3093_v36  ;;  %v3126_v61 = vadd.f32 %v453_v50, %v309_v41  ;;  %v296_v63 = vld [vmem:[%s3026_s7 + $0x40] sm:$0xff]  ;;  %v3186_v45 = vmul.f32 %v3093_v36, %v3093_v36 }
  0xa4   : > { %5608 = vst [vmem:[#allocation29_spill] sm:$0xff] %v3113_v52  ;;  %5609 = vst [vmem:[#allocation30_spill] sm:$0xff] %v3115_v53  ;;  %v294_v57 = vld [vmem:[%s3026_s7 + $0x30] sm:$0xff]  ;;  %v295_v58 = vld [vmem:[%s3026_s7 + $0x38] sm:$0xff]  ;;  %v722_v60 = vadd.f32 %v721_v48, %v3096_v38  ;;  %v741_v62 = vadd.f32 %v3115_v53, %v3113_v52  ;;  %v3133_v2 = vadd.f32 %v454_v51, %v310_v42 }
  0xa5   : > { %5611 = vst [vmem:[#allocation32_spill] sm:$0xff] %v3120_v56  ;;  %5612 = vst [vmem:[#allocation33_spill] sm:$0xff] %v3126_v61  ;;  %v297_v0 = vld [vmem:[%s3026_s7 + $0x48] sm:$0xff]  ;;  %v298_v1 = vld [vmem:[%s3026_s7 + $0x50] sm:$0xff]  ;;  %739 = vadd.xlane.f32.xlu1 %v738_v59  ;;  %v3149_v17 = vadd.f32 %v455_v55, %v311_v49  ;;  %v3178_v42 = vmul.f32 %v3069_v18, %v3069_v18  ;;  %v3296_v10 = vmul.f32 %v3120_v56, %v3120_v56 }
  0xa6   : > { %5613 = vst [vmem:[#allocation34_spill] sm:$0xff] %v3133_v2  ;;  %v438_v3 = vld [vmem:[%s3034_s25 + $0x30] sm:$0xff]  ;;  %v439_v4 = vld [vmem:[%s3034_s25 + $0x38] sm:$0xff]  ;;  %v440_v5 = vld [vmem:[%s3034_s25 + $0x40] sm:$0xff]  ;;  %v723_v7 = vadd.f32 %v722_v60, %v3103_v43  ;;  %v742_v8 = vadd.f32 %v741_v62, %v3120_v56 }
  0xa7   : > { %v299_v9 = vld [vmem:[%s3026_s7 + $0x58] sm:$0xff]  ;;  %v441_v13 = vld [vmem:[%s3034_s25 + $0x48] sm:$0xff]  ;;  %v442_v14 = vld [vmem:[%s3034_s25 + $0x50] sm:$0xff]  ;;  %v3145_v15 = vadd.f32 %v438_v3, %v294_v57  ;;  %v3147_v16 = vadd.f32 %v439_v4, %v295_v58  ;;  %5616 = vst [vmem:[#allocation37_spill] sm:$0xff] %v3149_v17  ;;  %v3152_v20 = vadd.f32 %v440_v5, %v296_v63  ;;  %v888_v63 = vmul.f32 %v3084_v30, %v3084_v30 }
  0xa8   : > { %v443_v19 = vld [vmem:[%s3034_s25 + $0x58] sm:$0xff]  ;;  %v318_v21 = vld [vmem:[%s3026_s7 + $0xf0] sm:$0xff]  ;;  %v724_v26 = vadd.f32 %v723_v7, %v3117_v54  ;;  %v743_v27 = vadd.f32 %v742_v8, %v3126_v61  ;;  %v3164_v28 = vadd.f32 %v441_v13, %v297_v0  ;;  %v320_v33 = vld [vmem:[%s3026_s7 + $0x100] sm:$0xff]  ;;  %v3171_v37 = vadd.f32 %v442_v14, %v298_v1 }
  0xa9   : > { %5614 = vst [vmem:[#allocation35_spill] sm:$0xff] %v3145_v15  ;;  %5615 = vst [vmem:[#allocation36_spill] sm:$0xff] %v3147_v16  ;;  %v319_v23 = vld [vmem:[%s3026_s7 + $0xf8] sm:$0xff]  ;;  %v727_v29 = vadd.f32 %v3147_v16, %v3145_v15  ;;  %v321_v34 = vld [vmem:[%s3026_s7 + $0x108] sm:$0xff]  ;;  %v3197_v57 = vadd.f32 %v443_v19, %v299_v9  ;;  %v3206_v0 = vadd.f32 %v901_v24, %v900_v6 }
  0xaa   : > { %5617 = vst [vmem:[#allocation38_spill] sm:$0xff] %v3152_v20  ;;  %5618 = vst [vmem:[#allocation39_spill] sm:$0xff] %v3164_v28  ;;  %v322_v35 = vld [vmem:[%s3026_s7 + $0x110] sm:$0xff]  ;;  %v463_v40 = vld [vmem:[%s3034_s25 + $0xf8] sm:$0xff]  ;;  %725 = vadd.xlane.f32.xlu0 %v724_v26  ;;  %v744_v46 = vadd.f32 %v743_v27, %v3133_v2  ;;  %v3230_v24 = vmul.f32 %v3096_v38, %v3096_v38 }
  0xab   : > { %5619 = vst [vmem:[#allocation40_spill] sm:$0xff] %v3171_v37  ;;  %v462_v39 = vld [vmem:[%s3034_s25 + $0xf0] sm:$0xff]  ;;  %v464_v41 = vld [vmem:[%s3034_s25 + $0x100] sm:$0xff]  ;;  %v728_v47 = vadd.f32 %v727_v29, %v3152_v20  ;;  %v323_v48 = vld [vmem:[%s3026_s7 + $0x118] sm:$0xff]  ;;  %v3195_v55 = vadd.f32 %v463_v40, %v319_v23  ;;  %v3226_v23 = vmul.f32 %v3088_v32, %v3088_v32 }
  0xac   : > { %v465_v49 = vld [vmem:[%s3034_s25 + $0x108] sm:$0xff]  ;;  %v466_v50 = vld [vmem:[%s3034_s25 + $0x110] sm:$0xff]  ;;  %v3193_v51 = vadd.f32 %v462_v39, %v318_v21  ;;  %5622 = vst [vmem:[#allocation43_spill] sm:$0xff] %v3197_v57  ;;  %v467_v58 = vld [vmem:[%s3034_s25 + $0x118] sm:$0xff]  ;;  %v3200_v59 = vadd.f32 %v464_v41, %v320_v33  ;;  %v745_v1 = vadd.f32 %v744_v46, %v3149_v17  ;;  %v889_v21 = vmul.f32 %v3086_v31, %v3086_v31 }
  0xad   : > { %5621 = vst [vmem:[#allocation42_spill] sm:$0xff] %v3195_v55  ;;  %v312_v60 = vld [vmem:[%s3026_s7 + $0xc0] sm:$0xff]  ;;  %v313_v62 = vld [vmem:[%s3026_s7 + $0xc8] sm:$0xff]  ;;  %v729_v3 = vadd.f32 %v728_v47, %v3164_v28  ;;  %v3210_v4 = vadd.f32 %v465_v49, %v321_v34  ;;  %v314_v7 = vld [vmem:[%s3026_s7 + $0xd0] sm:$0xff]  ;;  %v3217_v13 = vadd.f32 %v466_v50, %v322_v35  ;;  %v3241_v40 = vadd.f32 %v467_v58, %v323_v48 }
  0xae   : > { %5620 = vst [vmem:[#allocation41_spill] sm:$0xff] %v3193_v51  ;;  %5623 = vst [vmem:[#allocation44_spill] sm:$0xff] %v3200_v59  ;;  %v755_v5 = vadd.f32 %v3195_v55, %v3193_v51  ;;  %v315_v8 = vld [vmem:[%s3026_s7 + $0xd8] sm:$0xff]  ;;  %v316_v9 = vld [vmem:[%s3026_s7 + $0xe0] sm:$0xff]  ;;  %746 = vadd.xlane.f32.xlu1 %v745_v1  ;;  %v3250_v50 = vmul.f32 %v3103_v43, %v3103_v43 }
  0xaf   : > { %5624 = vst [vmem:[#allocation45_spill] sm:$0xff] %v3210_v4  ;;  %5625 = vst [vmem:[#allocation46_spill] sm:$0xff] %v3217_v13  ;;  %v456_v6 = vld [vmem:[%s3034_s25 + $0xc0] sm:$0xff]  ;;  %v457_v14 = vld [vmem:[%s3034_s25 + $0xc8] sm:$0xff]  ;;  %v730_v26 = vadd.f32 %v729_v3, %v3171_v37 }
  0xb0   : > { %v458_v19 = vld [vmem:[%s3034_s25 + $0xd0] sm:$0xff]  ;;  %v756_v27 = vadd.f32 %v755_v5, %v3200_v59  ;;  %v317_v29 = vld [vmem:[%s3026_s7 + $0xe8] sm:$0xff]  ;;  %v459_v33 = vld [vmem:[%s3034_s25 + $0xd8] sm:$0xff]  ;;  %v3237_v35 = vadd.f32 %v456_v6, %v312_v60  ;;  %v3239_v39 = vadd.f32 %v457_v14, %v313_v62  ;;  %5628 = vst [vmem:[#allocation49_spill] sm:$0xff] %v3241_v40  ;;  %v3254_v60 = vmul.f32 %v3117_v54, %v3117_v54 }
  0xb1   : > { %v460_v34 = vld [vmem:[%s3034_s25 + $0xe0] sm:$0xff]  ;;  %v461_v41 = vld [vmem:[%s3034_s25 + $0xe8] sm:$0xff]  ;;  %v3244_v46 = vadd.f32 %v458_v19, %v314_v7  ;;  %v330_v47 = vld [vmem:[%s3026_s7 + $0x150] sm:$0xff]  ;;  %v731_v62 = vadd.f32 %v730_v26, %v3197_v57  ;;  %v3258_v58 = vadd.f32 %v459_v33, %v315_v8  ;;  %v3272_v8 = vmul.f32 %v3113_v52, %v3113_v52 }
  0xb2   : > { %5626 = vst [vmem:[#allocation47_spill] sm:$0xff] %v3237_v35  ;;  %5627 = vst [vmem:[#allocation48_spill] sm:$0xff] %v3239_v39  ;;  %v331_v49 = vld [vmem:[%s3026_s7 + $0x158] sm:$0xff]  ;;  %v757_v48 = vadd.f32 %v756_v27, %v3210_v4  ;;  %v748_v1 = vadd.f32 %v3239_v39, %v3237_v35  ;;  %v332_v3 = vld [vmem:[%s3026_s7 + $0x160] sm:$0xff]  ;;  %v3265_v6 = vadd.f32 %v460_v34, %v316_v9 }
  0xb3   : > { %5629 = vst [vmem:[#allocation50_spill] sm:$0xff] %v3244_v46  ;;  %5630 = vst [vmem:[#allocation51_spill] sm:$0xff] %v3258_v58  ;;  %v333_v5 = vld [vmem:[%s3026_s7 + $0x168] sm:$0xff]  ;;  %v334_v7 = vld [vmem:[%s3026_s7 + $0x170] sm:$0xff]  ;;  %v1032_v27 = vadd.f32 %v889_v21, %v888_v63  ;;  %v3276_v33 = vmul.f32 %v3115_v53, %v3115_v53  ;;  %732 = vadd.xlane.f32.xlu0 %v731_v62  ;;  %v3287_v12 = vadd.f32 %v461_v41, %v317_v29 }
  0xb4   : > { %5631 = vst [vmem:[#allocation52_spill] sm:$0xff] %v3265_v6  ;;  %v474_v14 = vld [vmem:[%s3034_s25 + $0x150] sm:$0xff]  ;;  %v475_v19 = vld [vmem:[%s3034_s25 + $0x158] sm:$0xff]  ;;  %v476_v26 = vld [vmem:[%s3034_s25 + $0x160] sm:$0xff]  ;;  %v758_v36 = vadd.f32 %v757_v48, %v3217_v13  ;;  %v749_v9 = vadd.f32 %v748_v1, %v3244_v46 }
  0xb5   : > { %v335_v34 = vld [vmem:[%s3026_s7 + $0x178] sm:$0xff]  ;;  %v477_v22 = vld [vmem:[%s3034_s25 + $0x168] sm:$0xff]  ;;  %v478_v18 = vld [vmem:[%s3034_s25 + $0x170] sm:$0xff]  ;;  %v3283_v63 = vadd.f32 %v474_v14, %v330_v47  ;;  %v3285_v21 = vadd.f32 %v475_v19, %v331_v49  ;;  %5634 = vst [vmem:[#allocation55_spill] sm:$0xff] %v3287_v12  ;;  %v3290_v62 = vadd.f32 %v476_v26, %v332_v3  ;;  %v3300_v47 = vmul.f32 %v3126_v61, %v3126_v61 }
  0xb6   : > { %v479_v11 = vld [vmem:[%s3034_s25 + $0x178] sm:$0xff]  ;;  %v324_v48 = vld [vmem:[%s3026_s7 + $0x120] sm:$0xff]  ;;  %v325_v1 = vld [vmem:[%s3026_s7 + $0x128] sm:$0xff]  ;;  %v759_v49 = vadd.f32 %v758_v36, %v3241_v40  ;;  %v750_v29 = vadd.f32 %v749_v9, %v3258_v58  ;;  %v3304_v41 = vadd.f32 %v477_v22, %v333_v5  ;;  %v3311_v56 = vadd.f32 %v478_v18, %v334_v7 }
  0xb7   : > { %5632 = vst [vmem:[#allocation53_spill] sm:$0xff] %v3283_v63  ;;  %5633 = vst [vmem:[#allocation54_spill] sm:$0xff] %v3285_v21  ;;  %v769_v3 = vadd.f32 %v3285_v21, %v3283_v63  ;;  %v326_v14 = vld [vmem:[%s3026_s7 + $0x130] sm:$0xff]  ;;  %v327_v19 = vld [vmem:[%s3026_s7 + $0x138] sm:$0xff]  ;;  %v894_v22 = vmul.f32 %v3145_v15, %v3145_v15  ;;  %v895_v5 = vmul.f32 %v3147_v16, %v3147_v16 }
  0xb8   : > { %5635 = vst [vmem:[#allocation56_spill] sm:$0xff] %v3290_v62  ;;  %5636 = vst [vmem:[#allocation57_spill] sm:$0xff] %v3304_v41  ;;  %v328_v26 = vld [vmem:[%s3026_s7 + $0x140] sm:$0xff]  ;;  %v469_v53 = vld [vmem:[%s3034_s25 + $0x128] sm:$0xff]  ;;  %v896_v9 = vmul.f32 %v3152_v20, %v3152_v20  ;;  %760 = vadd.xlane.f32.xlu1 %v759_v49  ;;  %v751_v52 = vadd.f32 %v750_v29, %v3265_v6  ;;  %v3331_v31 = vadd.f32 %v479_v11, %v335_v34 }
  0xb9   : > { %5637 = vst [vmem:[#allocation58_spill] sm:$0xff] %v3311_v56  ;;  %v468_v61 = vld [vmem:[%s3034_s25 + $0x120] sm:$0xff]  ;;  %v470_v36 = vld [vmem:[%s3034_s25 + $0x130] sm:$0xff]  ;;  %v770_v18 = vadd.f32 %v769_v3, %v3290_v62  ;;  %v329_v7 = vld [vmem:[%s3026_s7 + $0x148] sm:$0xff]  ;;  %v3329_v32 = vadd.f32 %v469_v53, %v325_v1  ;;  %v3340_v20 = vmul.f32 %v3164_v28, %v3164_v28 }
  0xba   : > { %v471_v54 = vld [vmem:[%s3034_s25 + $0x138] sm:$0xff]  ;;  %v472_v43 = vld [vmem:[%s3034_s25 + $0x140] sm:$0xff]  ;;  %v3327_v38 = vadd.f32 %v468_v61, %v324_v48  ;;  %5640 = vst [vmem:[#allocation61_spill] sm:$0xff] %v3331_v31  ;;  %v473_v30 = vld [vmem:[%s3034_s25 + $0x148] sm:$0xff]  ;;  %v3334_v49 = vadd.f32 %v470_v36, %v326_v14  ;;  %v3344_v61 = vmul.f32 %v3171_v37, %v3171_v37  ;;  %v752_v53 = vadd.f32 %v751_v52, %v3287_v12 }
  0xbb   : > { %5639 = vst [vmem:[#allocation60_spill] sm:$0xff] %v3329_v32  ;;  %v342_v29 = vld [vmem:[%s3026_s7 + $0x1b0] sm:$0xff]  ;;  %v343_v3 = vld [vmem:[%s3026_s7 + $0x1b8] sm:$0xff]  ;;  %v771_v11 = vadd.f32 %v770_v18, %v3304_v41  ;;  %v3348_v34 = vadd.f32 %v471_v54, %v327_v19  ;;  %v344_v1 = vld [vmem:[%s3026_s7 + $0x1c0] sm:$0xff]  ;;  %v3355_v28 = vadd.f32 %v472_v43, %v328_v26  ;;  %v3362_v54 = vmul.f32 %v3197_v57, %v3197_v57 }
  0xbc   : > { %5638 = vst [vmem:[#allocation59_spill] sm:$0xff] %v3327_v38  ;;  %5641 = vst [vmem:[#allocation62_spill] sm:$0xff] %v3334_v49  ;;  %v762_v48 = vadd.f32 %v3329_v32, %v3327_v38  ;;  %v345_v14 = vld [vmem:[%s3026_s7 + $0x1c8] sm:$0xff]  ;;  %v346_v36 = vld [vmem:[%s3026_s7 + $0x1d0] sm:$0xff]  ;;  %v1039_v19 = vadd.f32 %v895_v5, %v894_v22  ;;  %v1033_v18 = vadd.f32 %v1032_v27, %v3226_v23  ;;  %753 = vadd.xlane.f32.xlu0 %v752_v53 }
  0xbd   : > { %5642 = vst [vmem:[#allocation63_spill] sm:$0xff] %v3348_v34  ;;  %5643 = vst [vmem:[#allocation64_spill] sm:$0xff] %v3355_v28  ;;  %v486_v37 = vld [vmem:[%s3034_s25 + $0x1b0] sm:$0xff]  ;;  %v487_v16 = vld [vmem:[%s3034_s25 + $0x1b8] sm:$0xff]  ;;  %v772_v15 = vadd.f32 %v771_v11, %v3311_v56  ;;  %v3374_v57 = vadd.f32 %v473_v30, %v329_v7  ;;  %v3383_v53 = vmul.f32 %v3133_v2, %v3133_v2 }
  0xbe   : > { %v488_v52 = vld [vmem:[%s3034_s25 + $0x1c0] sm:$0xff]  ;;  %v763_v32 = vadd.f32 %v762_v48, %v3334_v49  ;;  %v347_v43 = vld [vmem:[%s3026_s7 + $0x1d8] sm:$0xff]  ;;  %v489_v26 = vld [vmem:[%s3034_s25 + $0x1c8] sm:$0xff]  ;;  %v3370_v41 = vadd.f32 %v486_v37, %v342_v29  ;;  %v3372_v62 = vadd.f32 %v487_v16, %v343_v3  ;;  %v3387_v37 = vmul.f32 %v3149_v17, %v3149_v17 }
  0xbf   : > { %v490_v38 = vld [vmem:[%s3034_s25 + $0x1d0] sm:$0xff]  ;;  %5646 = vst [vmem:[#allocation67_spill] sm:$0xff] %v3374_v57  ;;  %v491_v23 = vld [vmem:[%s3034_s25 + $0x1d8] sm:$0xff]  ;;  %v3377_v27 = vadd.f32 %v488_v52, %v344_v1  ;;  %v336_v22 = vld [vmem:[%s3026_s7 + $0x180] sm:$0xff]  ;;  %v773_v16 = vadd.f32 %v772_v15, %v3331_v31  ;;  %v3391_v7 = vadd.f32 %v489_v26, %v345_v14  ;;  %v1053_v14 = vadd.f32 %v3276_v33, %v3272_v8 }
  0xc0   : > { %5644 = vst [vmem:[#allocation65_spill] sm:$0xff] %v3370_v41  ;;  %5645 = vst [vmem:[#allocation66_spill] sm:$0xff] %v3372_v62  ;;  %v337_v5 = vld [vmem:[%s3026_s7 + $0x188] sm:$0xff]  ;;  %v764_v30 = vadd.f32 %v763_v32, %v3348_v34  ;;  %v783_v29 = vadd.f32 %v3372_v62, %v3370_v41  ;;  %v338_v3 = vld [vmem:[%s3026_s7 + $0x190] sm:$0xff]  ;;  %v3398_v1 = vadd.f32 %v490_v38, %v346_v36 }
  0xc1   : > { %5647 = vst [vmem:[#allocation68_spill] sm:$0xff] %v3377_v27  ;;  %5648 = vst [vmem:[#allocation69_spill] sm:$0xff] %v3391_v7  ;;  %v339_v11 = vld [vmem:[%s3026_s7 + $0x198] sm:$0xff]  ;;  %v340_v48 = vld [vmem:[%s3026_s7 + $0x1a0] sm:$0xff]  ;;  %v1040_v32 = vadd.f32 %v1039_v19, %v896_v9  ;;  %v1047_v26 = vadd.f32 %v3206_v0, %v3160_v25  ;;  %774 = vadd.xlane.f32.xlu1 %v773_v16  ;;  %v3416_v8 = vadd.f32 %v491_v23, %v347_v43 }
  0xc2   : > { %5649 = vst [vmem:[#allocation70_spill] sm:$0xff] %v3398_v1  ;;  %v480_v52 = vld [vmem:[%s3034_s25 + $0x180] sm:$0xff]  ;;  %v481_v17 = vld [vmem:[%s3034_s25 + $0x188] sm:$0xff]  ;;  %v482_v15 = vld [vmem:[%s3034_s25 + $0x190] sm:$0xff]  ;;  %v765_v2 = vadd.f32 %v764_v30, %v3355_v28  ;;  %v784_v62 = vadd.f32 %v783_v29, %v3377_v27  ;;  %v1034_v16 = vadd.f32 %v1033_v18, %v3230_v24  ;;  %v3426_v30 = vmul.f32 %v3193_v51, %v3193_v51 }
  0xc3   : > { %v341_v38 = vld [vmem:[%s3026_s7 + $0x1a8] sm:$0xff]  ;;  %v483_v36 = vld [vmem:[%s3034_s25 + $0x198] sm:$0xff]  ;;  %v484_v41 = vld [vmem:[%s3034_s25 + $0x1a0] sm:$0xff]  ;;  %v3412_v34 = vadd.f32 %v480_v52, %v336_v22  ;;  %v3414_v9 = vadd.f32 %v481_v17, %v337_v5  ;;  %5652 = vst [vmem:[#allocation73_spill] sm:$0xff] %v3416_v8  ;;  %v3419_v0 = vadd.f32 %v482_v15, %v338_v3  ;;  %v1048_v15 = vadd.f32 %v1047_v26, %v3178_v42 }
  0xc4   : > { %v485_v25 = vld [vmem:[%s3034_s25 + $0x1a8] sm:$0xff]  ;;  %v354_v33 = vld [vmem:[%s3026_s7 + $0x210] sm:$0xff]  ;;  %v355_v19 = vld [vmem:[%s3026_s7 + $0x218] sm:$0xff]  ;;  %v766_v22 = vadd.f32 %v765_v2, %v3374_v57  ;;  %v785_v17 = vadd.f32 %v784_v62, %v3391_v7  ;;  %v3430_v43 = vadd.f32 %v483_v36, %v339_v11  ;;  %v3437_v24 = vadd.f32 %v484_v41, %v340_v48 }
  0xc5   : > { %5650 = vst [vmem:[#allocation71_spill] sm:$0xff] %v3412_v34  ;;  %5651 = vst [vmem:[#allocation72_spill] sm:$0xff] %v3414_v9  ;;  %v776_v23 = vadd.f32 %v3414_v9, %v3412_v34  ;;  %v356_v5 = vld [vmem:[%s3026_s7 + $0x220] sm:$0xff]  ;;  %v357_v29 = vld [vmem:[%s3026_s7 + $0x228] sm:$0xff]  ;;  %v1041_v62 = vadd.f32 %v1040_v32, %v3340_v20  ;;  %v1054_v11 = vadd.f32 %v1053_v14, %v3296_v10 }
  0xc6   : > { %5653 = vst [vmem:[#allocation74_spill] sm:$0xff] %v3419_v0  ;;  %5654 = vst [vmem:[#allocation75_spill] sm:$0xff] %v3430_v43  ;;  %v358_v3 = vld [vmem:[%s3026_s7 + $0x230] sm:$0xff]  ;;  %v499_v52 = vld [vmem:[%s3034_s25 + $0x218] sm:$0xff]  ;;  %767 = vadd.xlane.f32.xlu0 %v766_v22  ;;  %v786_v36 = vadd.f32 %v785_v17, %v3398_v1  ;;  %v3454_v20 = vadd.f32 %v485_v25, %v341_v38  ;;  %v1035_v26 = vadd.f32 %v1034_v16, %v3250_v50 }
  0xc7   : > { %5655 = vst [vmem:[#allocation76_spill] sm:$0xff] %v3437_v24  ;;  %v498_v18 = vld [vmem:[%s3034_s25 + $0x210] sm:$0xff]  ;;  %v500_v2 = vld [vmem:[%s3034_s25 + $0x220] sm:$0xff]  ;;  %v777_v51 = vadd.f32 %v776_v23, %v3419_v0  ;;  %v359_v9 = vld [vmem:[%s3026_s7 + $0x238] sm:$0xff]  ;;  %v3452_v7 = vadd.f32 %v499_v52, %v355_v19  ;;  %v3464_v22 = vmul.f32 %v3195_v55, %v3195_v55 }
  0xc8   : > { %v501_v41 = vld [vmem:[%s3034_s25 + $0x228] sm:$0xff]  ;;  %v502_v48 = vld [vmem:[%s3034_s25 + $0x230] sm:$0xff]  ;;  %v3450_v34 = vadd.f32 %v498_v18, %v354_v33  ;;  %5658 = vst [vmem:[#allocation79_spill] sm:$0xff] %v3454_v20  ;;  %v503_v10 = vld [vmem:[%s3034_s25 + $0x238] sm:$0xff]  ;;  %v3457_v42 = vadd.f32 %v500_v2, %v356_v5  ;;  %v787_v33 = vadd.f32 %v786_v36, %v3416_v8  ;;  %v1049_v2 = vadd.f32 %v1048_v15, %v3182_v44 }
  0xc9   : > { %5657 = vst [vmem:[#allocation78_spill] sm:$0xff] %v3452_v7  ;;  %v348_v32 = vld [vmem:[%s3026_s7 + $0x1e0] sm:$0xff]  ;;  %v349_v14 = vld [vmem:[%s3026_s7 + $0x1e8] sm:$0xff]  ;;  %v778_v19 = vadd.f32 %v777_v51, %v3430_v43  ;;  %v3468_v38 = vadd.f32 %v501_v41, %v357_v29  ;;  %v350_v17 = vld [vmem:[%s3026_s7 + $0x1f0] sm:$0xff]  ;;  %v3475_v50 = vadd.f32 %v502_v48, %v358_v3  ;;  %v1042_v51 = vadd.f32 %v1041_v62, %v3344_v61 }
  0xca   : > { %5656 = vst [vmem:[#allocation77_spill] sm:$0xff] %v3450_v34  ;;  %5659 = vst [vmem:[#allocation80_spill] sm:$0xff] %v3457_v42  ;;  %v797_v25 = vadd.f32 %v3452_v7, %v3450_v34  ;;  %v351_v23 = vld [vmem:[%s3026_s7 + $0x1f8] sm:$0xff]  ;;  %v352_v5 = vld [vmem:[%s3026_s7 + $0x200] sm:$0xff]  ;;  %v1055_v29 = vadd.f32 %v1054_v11, %v3300_v47  ;;  %788 = vadd.xlane.f32.xlu1 %v787_v33  ;;  %v3492_v61 = vadd.f32 %v503_v10, %v359_v9 }
  0xcb   : > { %5660 = vst [vmem:[#allocation81_spill] sm:$0xff] %v3468_v38  ;;  %5661 = vst [vmem:[#allocation82_spill] sm:$0xff] %v3475_v50  ;;  %v492_v16 = vld [vmem:[%s3034_s25 + $0x1e0] sm:$0xff]  ;;  %v493_v18 = vld [vmem:[%s3034_s25 + $0x1e8] sm:$0xff]  ;;  %v779_v36 = vadd.f32 %v778_v19, %v3437_v24  ;;  %v3500_v15 = vadd.f32 %v1035_v26, %v3254_v60  ;;  %v3504_v33 = vmul.f32 %v3200_v59, %v3200_v59 }
  0xcc   : > { %v494_v52 = vld [vmem:[%s3034_s25 + $0x1f0] sm:$0xff]  ;;  %v798_v41 = vadd.f32 %v797_v25, %v3457_v42  ;;  %v353_v55 = vld [vmem:[%s3026_s7 + $0x208] sm:$0xff]  ;;  %v495_v3 = vld [vmem:[%s3034_s25 + $0x1f8] sm:$0xff]  ;;  %v3488_v8 = vadd.f32 %v492_v16, %v348_v32  ;;  %v3490_v43 = vadd.f32 %v493_v18, %v349_v14  ;;  %5664 = vst [vmem:[#allocation85_spill] sm:$0xff] %v3492_v61 }
  0xcd   : > { %v496_v48 = vld [vmem:[%s3034_s25 + $0x200] sm:$0xff]  ;;  %v497_v44 = vld [vmem:[%s3034_s25 + $0x208] sm:$0xff]  ;;  %v3495_v47 = vadd.f32 %v494_v52, %v350_v17  ;;  %v366_v62 = vld [vmem:[%s3026_s7 + $0x270] sm:$0xff]  ;;  %5666 = vst [vmem:[#allocation87_spill] sm:$0xff] %v3500_v15  ;;  %v780_v32 = vadd.f32 %v779_v36, %v3454_v20  ;;  %v3508_v9 = vadd.f32 %v495_v3, %v351_v23  ;;  %v3521_v52 = vadd.f32 %v1042_v51, %v3362_v54 }
  0xce   : > { %5662 = vst [vmem:[#allocation83_spill] sm:$0xff] %v3488_v8  ;;  %5663 = vst [vmem:[#allocation84_spill] sm:$0xff] %v3490_v43  ;;  %v367_v11 = vld [vmem:[%s3026_s7 + $0x278] sm:$0xff]  ;;  %v799_v14 = vadd.f32 %v798_v41, %v3468_v38  ;;  %v790_v10 = vadd.f32 %v3490_v43, %v3488_v8  ;;  %v368_v19 = vld [vmem:[%s3026_s7 + $0x280] sm:$0xff]  ;;  %v3515_v26 = vadd.f32 %v496_v48, %v352_v5 }
  0xcf   : > { %5665 = vst [vmem:[#allocation86_spill] sm:$0xff] %v3495_v47  ;;  %5667 = vst [vmem:[#allocation88_spill] sm:$0xff] %v3508_v9  ;;  %v369_v25 = vld [vmem:[%s3026_s7 + $0x288] sm:$0xff]  ;;  %v370_v60 = vld [vmem:[%s3026_s7 + $0x290] sm:$0xff]  ;;  %v1056_v23 = vadd.f32 %v1055_v29, %v3383_v53  ;;  %v3525_v36 = vadd.f32 %v1049_v2, %v3186_v45  ;;  %781 = vadd.xlane.f32.xlu0 %v780_v32  ;;  %v3536_v53 = vadd.f32 %v497_v44, %v353_v55 }
  0xd0   : > { %5668 = vst [vmem:[#allocation89_spill] sm:$0xff] %v3515_v26  ;;  %v510_v17 = vld [vmem:[%s3034_s25 + $0x270] sm:$0xff]  ;;  %v511_v16 = vld [vmem:[%s3034_s25 + $0x278] sm:$0xff]  ;;  %v512_v18 = vld [vmem:[%s3034_s25 + $0x280] sm:$0xff]  ;;  %v800_v41 = vadd.f32 %v799_v14, %v3475_v50  ;;  %v791_v5 = vadd.f32 %v790_v10, %v3495_v47  ;;  %v3545_v32 = vmul.f32 %v3210_v4, %v3210_v4 }
  0xd1   : > { %5669 = vst [vmem:[#allocation90_spill] sm:$0xff] %v3521_v52  ;;  %5670 = vst [vmem:[#allocation91_spill] sm:$0xff] %v3525_v36  ;;  %v371_v3 = vld [vmem:[%s3026_s7 + $0x298] sm:$0xff]  ;;  %v513_v48 = vld [vmem:[%s3034_s25 + $0x288] sm:$0xff]  ;;  %v3532_v15 = vadd.f32 %v510_v17, %v366_v62  ;;  %v3534_v54 = vadd.f32 %v511_v16, %v367_v11  ;;  %v3539_v51 = vadd.f32 %v512_v18, %v368_v19 }
  0xd2   : > { %v514_v59 = vld [vmem:[%s3034_s25 + $0x290] sm:$0xff]  ;;  %5673 = vst [vmem:[#allocation94_spill] sm:$0xff] %v3536_v53  ;;  %v515_v45 = vld [vmem:[%s3034_s25 + $0x298] sm:$0xff]  ;;  %v360_v29 = vld [vmem:[%s3026_s7 + $0x240] sm:$0xff]  ;;  %v3549_v62 = vmul.f32 %v3217_v13, %v3217_v13  ;;  %v801_v11 = vadd.f32 %v800_v41, %v3492_v61  ;;  %v792_v55 = vadd.f32 %v791_v5, %v3508_v9  ;;  %v3553_v44 = vadd.f32 %v513_v48, %v369_v25 }
  0xd3   : > { %5671 = vst [vmem:[#allocation92_spill] sm:$0xff] %v3532_v15  ;;  %5672 = vst [vmem:[#allocation93_spill] sm:$0xff] %v3534_v54  ;;  %v361_v2 = vld [vmem:[%s3026_s7 + $0x248] sm:$0xff]  ;;  %v811_v14 = vadd.f32 %v3534_v54, %v3532_v15  ;;  %v362_v10 = vld [vmem:[%s3026_s7 + $0x250] sm:$0xff]  ;;  %v3560_v16 = vadd.f32 %v514_v59, %v370_v60  ;;  %v3566_v5 = vadd.f32 %v1056_v23, %v3387_v37 }
  0xd4   : > { %5674 = vst [vmem:[#allocation95_spill] sm:$0xff] %v3539_v51  ;;  %5675 = vst [vmem:[#allocation96_spill] sm:$0xff] %v3553_v44  ;;  %v363_v19 = vld [vmem:[%s3026_s7 + $0x258] sm:$0xff]  ;;  %v364_v17 = vld [vmem:[%s3026_s7 + $0x260] sm:$0xff]  ;;  %v3570_v25 = vmul.f32 %v3241_v40, %v3241_v40  ;;  %v1067_v48 = vadd.f32 %v3464_v22, %v3426_v30  ;;  %802 = vadd.xlane.f32.xlu1 %v801_v11  ;;  %v793_v59 = vadd.f32 %v792_v55, %v3515_v26 }
  0xd5   : > { %5676 = vst [vmem:[#allocation97_spill] sm:$0xff] %v3560_v16  ;;  %v504_v18 = vld [vmem:[%s3034_s25 + $0x240] sm:$0xff]  ;;  %v505_v13 = vld [vmem:[%s3034_s25 + $0x248] sm:$0xff]  ;;  %v506_v41 = vld [vmem:[%s3034_s25 + $0x250] sm:$0xff]  ;;  %v812_v60 = vadd.f32 %v811_v14, %v3539_v51  ;;  %v3583_v40 = vadd.f32 %v515_v45, %v371_v3  ;;  %v912_v14 = vmul.f32 %v3237_v35, %v3237_v35 }
  0xd6   : > { %5677 = vst [vmem:[#allocation98_spill] sm:$0xff] %v3566_v5  ;;  %v365_v4 = vld [vmem:[%s3026_s7 + $0x268] sm:$0xff]  ;;  %v507_v36 = vld [vmem:[%s3034_s25 + $0x258] sm:$0xff]  ;;  %v508_v61 = vld [vmem:[%s3034_s25 + $0x260] sm:$0xff]  ;;  %v3579_v37 = vadd.f32 %v504_v18, %v360_v29  ;;  %v3581_v23 = vadd.f32 %v505_v13, %v361_v2  ;;  %v3586_v22 = vadd.f32 %v506_v41, %v362_v10  ;;  %v913_v5 = vmul.f32 %v3239_v39, %v3239_v39 }
  0xd7   : > { %5680 = vst [vmem:[#allocation101_spill] sm:$0xff] %v3583_v40  ;;  %v509_v30 = vld [vmem:[%s3034_s25 + $0x268] sm:$0xff]  ;;  %v378_v11 = vld [vmem:[%s3026_s7 + $0x2d0] sm:$0xff]  ;;  %v379_v55 = vld [vmem:[%s3026_s7 + $0x2d8] sm:$0xff]  ;;  %v794_v29 = vadd.f32 %v793_v59, %v3536_v53  ;;  %v813_v13 = vadd.f32 %v812_v60, %v3553_v44  ;;  %v3596_v3 = vadd.f32 %v507_v36, %v363_v19  ;;  %v3603_v41 = vadd.f32 %v508_v61, %v364_v17 }
  0xd8   : > { %5678 = vst [vmem:[#allocation99_spill] sm:$0xff] %v3579_v37  ;;  %5679 = vst [vmem:[#allocation100_spill] sm:$0xff] %v3581_v23  ;;  %v804_v45 = vadd.f32 %v3581_v23, %v3579_v37  ;;  %v380_v2 = vld [vmem:[%s3026_s7 + $0x2e0] sm:$0xff]  ;;  %v381_v10 = vld [vmem:[%s3026_s7 + $0x2e8] sm:$0xff]  ;;  %v1068_v60 = vadd.f32 %v1067_v48, %v3504_v33  ;;  %v914_v36 = vmul.f32 %v3244_v46, %v3244_v46 }
  0xd9   : > { %5681 = vst [vmem:[#allocation102_spill] sm:$0xff] %v3586_v22  ;;  %5682 = vst [vmem:[#allocation103_spill] sm:$0xff] %v3596_v3  ;;  %v382_v18 = vld [vmem:[%s3026_s7 + $0x2f0] sm:$0xff]  ;;  %v523_v39 = vld [vmem:[%s3034_s25 + $0x2d8] sm:$0xff]  ;;  %v3613_v19 = vmul.f32 %v3258_v58, %v3258_v58  ;;  %795 = vadd.xlane.f32.xlu0 %v794_v29  ;;  %v814_v53 = vadd.f32 %v813_v13, %v3560_v16  ;;  %v3624_v48 = vadd.f32 %v509_v30, %v365_v4 }
  0xda   : > { %5683 = vst [vmem:[#allocation104_spill] sm:$0xff] %v3603_v41  ;;  %v522_v35 = vld [vmem:[%s3034_s25 + $0x2d0] sm:$0xff]  ;;  %v524_v59 = vld [vmem:[%s3034_s25 + $0x2e0] sm:$0xff]  ;;  %v805_v61 = vadd.f32 %v804_v45, %v3586_v22  ;;  %v383_v17 = vld [vmem:[%s3026_s7 + $0x2f8] sm:$0xff]  ;;  %v3622_v33 = vadd.f32 %v523_v39, %v379_v55  ;;  %v3633_v46 = vmul.f32 %v3265_v6, %v3265_v6 }
  0xdb   : > { %v525_v26 = vld [vmem:[%s3034_s25 + $0x2e8] sm:$0xff]  ;;  %v526_v20 = vld [vmem:[%s3034_s25 + $0x2f0] sm:$0xff]  ;;  %v3620_v52 = vadd.f32 %v522_v35, %v378_v11  ;;  %5686 = vst [vmem:[#allocation107_spill] sm:$0xff] %v3624_v48  ;;  %v527_v58 = vld [vmem:[%s3034_s25 + $0x2f8] sm:$0xff]  ;;  %v3627_v29 = vadd.f32 %v524_v59, %v380_v2  ;;  %v3637_v35 = vmul.f32 %v3287_v12, %v3287_v12  ;;  %v815_v39 = vadd.f32 %v814_v53, %v3583_v40 }
  0xdc   : > { %5685 = vst [vmem:[#allocation106_spill] sm:$0xff] %v3622_v33  ;;  %v372_v13 = vld [vmem:[%s3026_s7 + $0x2a0] sm:$0xff]  ;;  %v373_v45 = vld [vmem:[%s3026_s7 + $0x2a8] sm:$0xff]  ;;  %v806_v4 = vadd.f32 %v805_v61, %v3596_v3  ;;  %v3641_v30 = vadd.f32 %v525_v26, %v381_v10  ;;  %v374_v55 = vld [vmem:[%s3026_s7 + $0x2b0] sm:$0xff]  ;;  %v3648_v6 = vadd.f32 %v526_v20, %v382_v18  ;;  %v1069_v61 = vadd.f32 %v1068_v60, %v3545_v32 }
  0xdd   : > { %5684 = vst [vmem:[#allocation105_spill] sm:$0xff] %v3620_v52  ;;  %5687 = vst [vmem:[#allocation108_spill] sm:$0xff] %v3627_v29  ;;  %v825_v11 = vadd.f32 %v3622_v33, %v3620_v52  ;;  %v375_v2 = vld [vmem:[%s3026_s7 + $0x2b8] sm:$0xff]  ;;  %v376_v59 = vld [vmem:[%s3026_s7 + $0x2c0] sm:$0xff]  ;;  %v1060_v26 = vadd.f32 %v913_v5, %v912_v14  ;;  %v930_v10 = vmul.f32 %v3283_v63, %v3283_v63  ;;  %816 = vadd.xlane.f32.xlu1 %v815_v39 }
  0xde   : > { %5688 = vst [vmem:[#allocation109_spill] sm:$0xff] %v3641_v30  ;;  %5689 = vst [vmem:[#allocation110_spill] sm:$0xff] %v3648_v6  ;;  %v516_v12 = vld [vmem:[%s3034_s25 + $0x2a0] sm:$0xff]  ;;  %v517_v16 = vld [vmem:[%s3034_s25 + $0x2a8] sm:$0xff]  ;;  %v807_v40 = vadd.f32 %v806_v4, %v3603_v41  ;;  %v3665_v32 = vadd.f32 %v527_v58, %v383_v17  ;;  %v931_v4 = vmul.f32 %v3285_v21, %v3285_v21 }
  0xdf   : > { %v518_v53 = vld [vmem:[%s3034_s25 + $0x2b0] sm:$0xff]  ;;  %v826_v3 = vadd.f32 %v825_v11, %v3627_v29  ;;  %v377_v33 = vld [vmem:[%s3026_s7 + $0x2c8] sm:$0xff]  ;;  %v519_v20 = vld [vmem:[%s3034_s25 + $0x2b8] sm:$0xff]  ;;  %v3661_v52 = vadd.f32 %v516_v12, %v372_v13  ;;  %v3663_v22 = vadd.f32 %v517_v16, %v373_v45 }
  0xe0   : > { %v520_v18 = vld [vmem:[%s3034_s25 + $0x2c0] sm:$0xff]  ;;  %5692 = vst [vmem:[#allocation113_spill] sm:$0xff] %v3665_v32  ;;  %v521_v5 = vld [vmem:[%s3034_s25 + $0x2c8] sm:$0xff]  ;;  %v3668_v14 = vadd.f32 %v518_v53, %v374_v55  ;;  %v390_v60 = vld [vmem:[%s3026_s7 + $0x330] sm:$0xff]  ;;  %v808_v12 = vadd.f32 %v807_v40, %v3624_v48  ;;  %v3680_v58 = vadd.f32 %v519_v20, %v375_v2  ;;  %v1061_v2 = vadd.f32 %v1060_v26, %v914_v36 }
  0xe1   : > { %5690 = vst [vmem:[#allocation111_spill] sm:$0xff] %v3661_v52  ;;  %5691 = vst [vmem:[#allocation112_spill] sm:$0xff] %v3663_v22  ;;  %v391_v39 = vld [vmem:[%s3026_s7 + $0x338] sm:$0xff]  ;;  %v827_v16 = vadd.f32 %v826_v3, %v3641_v30  ;;  %v818_v17 = vadd.f32 %v3663_v22, %v3661_v52  ;;  %v392_v13 = vld [vmem:[%s3026_s7 + $0x340] sm:$0xff]  ;;  %v3687_v53 = vadd.f32 %v520_v18, %v376_v59 }
  0xe2   : > { %5693 = vst [vmem:[#allocation114_spill] sm:$0xff] %v3668_v14  ;;  %v5694_v11 = vld [vmem:[#allocation56_spill] sm:$0xff]  ;;  %5695 = vst [vmem:[#allocation115_spill] sm:$0xff] %v3680_v58  ;;  %v393_v45 = vld [vmem:[%s3026_s7 + $0x348] sm:$0xff]  ;;  %v1070_v3 = vadd.f32 %v1069_v61, %v3549_v62  ;;  %809 = vadd.xlane.f32.xlu0 %v808_v12  ;;  %v3706_v62 = vadd.f32 %v521_v5, %v377_v33 }
  0xe3   : > { %v3676_v63 = vmul.f32 %v5694_v11, %v5694_v11  ;;  %v394_v55 = vld [vmem:[%s3026_s7 + $0x350] sm:$0xff]  ;;  %5696 = vst [vmem:[#allocation116_spill] sm:$0xff] %v3687_v53  ;;  %v535_v21 = vld [vmem:[%s3034_s25 + $0x338] sm:$0xff]  ;;  %v536_v40 = vld [vmem:[%s3034_s25 + $0x340] sm:$0xff]  ;;  %v828_v30 = vadd.f32 %v827_v16, %v3648_v6  ;;  %v819_v41 = vadd.f32 %v818_v17, %v3668_v14  ;;  %v3715_v16 = vmul.f32 %v3311_v56, %v3311_v56 }
  0xe4   : > { %v534_v11 = vld [vmem:[%s3034_s25 + $0x330] sm:$0xff]  ;;  %v5697_v20 = vld [vmem:[#allocation57_spill] sm:$0xff]  ;;  %v395_v59 = vld [vmem:[%s3026_s7 + $0x358] sm:$0xff]  ;;  %v3704_v52 = vadd.f32 %v535_v21, %v391_v39  ;;  %5700 = vst [vmem:[#allocation119_spill] sm:$0xff] %v3706_v62  ;;  %v3709_v61 = vadd.f32 %v536_v40, %v392_v13 }
  0xe5   : > { %v3695_v48 = vmul.f32 %v5697_v20, %v5697_v20  ;;  %v537_v18 = vld [vmem:[%s3034_s25 + $0x348] sm:$0xff]  ;;  %v538_v29 = vld [vmem:[%s3034_s25 + $0x350] sm:$0xff]  ;;  %v3702_v22 = vadd.f32 %v534_v11, %v390_v60  ;;  %v539_v36 = vld [vmem:[%s3034_s25 + $0x358] sm:$0xff]  ;;  %v3719_v60 = vmul.f32 %v3331_v31, %v3331_v31  ;;  %v829_v21 = vadd.f32 %v828_v30, %v3665_v32 }
  0xe6   : > { %5699 = vst [vmem:[#allocation118_spill] sm:$0xff] %v3704_v52  ;;  %5701 = vst [vmem:[#allocation120_spill] sm:$0xff] %v3709_v61  ;;  %v384_v26 = vld [vmem:[%s3026_s7 + $0x300] sm:$0xff]  ;;  %v385_v12 = vld [vmem:[%s3026_s7 + $0x308] sm:$0xff]  ;;  %v820_v33 = vadd.f32 %v819_v41, %v3680_v58  ;;  %v3723_v5 = vadd.f32 %v537_v18, %v393_v45  ;;  %v3730_v40 = vadd.f32 %v538_v29, %v394_v55 }
  0xe7   : > { %5698 = vst [vmem:[#allocation117_spill] sm:$0xff] %v3702_v22  ;;  %v839_v39 = vadd.f32 %v3704_v52, %v3702_v22  ;;  %v386_v11 = vld [vmem:[%s3026_s7 + $0x310] sm:$0xff]  ;;  %v387_v17 = vld [vmem:[%s3026_s7 + $0x318] sm:$0xff]  ;;  %v388_v13 = vld [vmem:[%s3026_s7 + $0x320] sm:$0xff]  ;;  %v3736_v41 = vadd.f32 %v1070_v3, %v3570_v25  ;;  %v1062_v45 = vadd.f32 %v1061_v2, %v3613_v19  ;;  %v1081_v18 = vadd.f32 %v931_v4, %v930_v10 }
  0xe8   : > { %5702 = vst [vmem:[#allocation121_spill] sm:$0xff] %v3723_v5  ;;  %5703 = vst [vmem:[#allocation122_spill] sm:$0xff] %v3730_v40  ;;  %v528_v31 = vld [vmem:[%s3034_s25 + $0x300] sm:$0xff]  ;;  %v529_v56 = vld [vmem:[%s3034_s25 + $0x308] sm:$0xff]  ;;  %830 = vadd.xlane.f32.xlu1 %v829_v21  ;;  %v821_v20 = vadd.f32 %v820_v33, %v3687_v53  ;;  %v3748_v25 = vadd.f32 %v539_v36, %v395_v59 }
  0xe9   : > { %v530_v30 = vld [vmem:[%s3034_s25 + $0x310] sm:$0xff]  ;;  %v840_v32 = vadd.f32 %v839_v39, %v3709_v61  ;;  %v389_v6 = vld [vmem:[%s3026_s7 + $0x328] sm:$0xff]  ;;  %v531_v29 = vld [vmem:[%s3034_s25 + $0x318] sm:$0xff]  ;;  %v3744_v58 = vadd.f32 %v528_v31, %v384_v26  ;;  %v3746_v52 = vadd.f32 %v529_v56, %v385_v12 }
  0xea   : > { %v532_v55 = vld [vmem:[%s3034_s25 + $0x320] sm:$0xff]  ;;  %5706 = vst [vmem:[#allocation125_spill] sm:$0xff] %v3748_v25  ;;  %v533_v19 = vld [vmem:[%s3034_s25 + $0x328] sm:$0xff]  ;;  %v3751_v10 = vadd.f32 %v530_v30, %v386_v11  ;;  %v402_v4 = vld [vmem:[%s3026_s7 + $0x390] sm:$0xff]  ;;  %v822_v31 = vadd.f32 %v821_v20, %v3706_v62  ;;  %v3761_v59 = vadd.f32 %v531_v29, %v387_v17  ;;  %v1082_v17 = vadd.f32 %v1081_v18, %v3676_v63 }
  0xeb   : > { %5704 = vst [vmem:[#allocation123_spill] sm:$0xff] %v3744_v58  ;;  %5705 = vst [vmem:[#allocation124_spill] sm:$0xff] %v3746_v52  ;;  %v403_v3 = vld [vmem:[%s3026_s7 + $0x398] sm:$0xff]  ;;  %v841_v56 = vadd.f32 %v840_v32, %v3723_v5  ;;  %v832_v36 = vadd.f32 %v3746_v52, %v3744_v58  ;;  %v404_v26 = vld [vmem:[%s3026_s7 + $0x3a0] sm:$0xff]  ;;  %v3768_v30 = vadd.f32 %v532_v55, %v388_v13 }
  0xec   : > { %5707 = vst [vmem:[#allocation126_spill] sm:$0xff] %v3751_v10  ;;  %v5708_v2 = vld [vmem:[#allocation59_spill] sm:$0xff]  ;;  %v5709_v33 = vld [vmem:[#allocation60_spill] sm:$0xff]  ;;  %5710 = vst [vmem:[#allocation127_spill] sm:$0xff] %v3761_v59  ;;  %v1063_v32 = vadd.f32 %v1062_v45, %v3633_v46  ;;  %v926_v29 = vmul.f32 %v3334_v49, %v3334_v49  ;;  %823 = vadd.xlane.f32.xlu0 %v822_v31  ;;  %v3786_v46 = vadd.f32 %v533_v19, %v389_v6 }
  0xed   : > { %v924_v21 = vmul.f32 %v5708_v2, %v5708_v2  ;;  %v925_v39 = vmul.f32 %v5709_v33, %v5709_v33  ;;  %v405_v12 = vld [vmem:[%s3026_s7 + $0x3a8] sm:$0xff]  ;;  %v406_v11 = vld [vmem:[%s3026_s7 + $0x3b0] sm:$0xff]  ;;  %5711 = vst [vmem:[#allocation128_spill] sm:$0xff] %v3768_v30  ;;  %v547_v33 = vld [vmem:[%s3034_s25 + $0x398] sm:$0xff]  ;;  %v842_v62 = vadd.f32 %v841_v56, %v3730_v40  ;;  %v833_v5 = vadd.f32 %v832_v36, %v3751_v10 }
  0xee   : > { %v546_v2 = vld [vmem:[%s3034_s25 + $0x390] sm:$0xff]  ;;  %v548_v20 = vld [vmem:[%s3034_s25 + $0x3a0] sm:$0xff]  ;;  %v407_v13 = vld [vmem:[%s3026_s7 + $0x3b8] sm:$0xff]  ;;  %v3784_v58 = vadd.f32 %v547_v33, %v403_v3  ;;  %5714 = vst [vmem:[#allocation131_spill] sm:$0xff] %v3786_v46 }
  0xef   : > { %v549_v55 = vld [vmem:[%s3034_s25 + $0x3a8] sm:$0xff]  ;;  %v550_v53 = vld [vmem:[%s3034_s25 + $0x3b0] sm:$0xff]  ;;  %v3782_v52 = vadd.f32 %v546_v2, %v402_v4  ;;  %v551_v63 = vld [vmem:[%s3034_s25 + $0x3b8] sm:$0xff]  ;;  %v3789_v45 = vadd.f32 %v548_v20, %v404_v26  ;;  %v1074_v49 = vadd.f32 %v925_v39, %v924_v21  ;;  %v843_v40 = vadd.f32 %v842_v62, %v3748_v25 }
  0xf0   : > { %5713 = vst [vmem:[#allocation130_spill] sm:$0xff] %v3784_v58  ;;  %v396_v18 = vld [vmem:[%s3026_s7 + $0x360] sm:$0xff]  ;;  %v397_v31 = vld [vmem:[%s3026_s7 + $0x368] sm:$0xff]  ;;  %v5716_v56 = vld [vmem:[#allocation63_spill] sm:$0xff]  ;;  %v834_v4 = vadd.f32 %v833_v5, %v3761_v59  ;;  %v3797_v3 = vadd.f32 %v549_v55, %v405_v12  ;;  %v3804_v26 = vadd.f32 %v550_v53, %v406_v11  ;;  %v3810_v5 = vadd.f32 %v1063_v32, %v3637_v35 }
  0xf1   : > { %5712 = vst [vmem:[#allocation129_spill] sm:$0xff] %v3782_v52  ;;  %5715 = vst [vmem:[#allocation132_spill] sm:$0xff] %v3789_v45  ;;  %v927_v36 = vmul.f32 %v5716_v56, %v5716_v56  ;;  %v853_v6 = vadd.f32 %v3784_v58, %v3782_v52  ;;  %v398_v19 = vld [vmem:[%s3026_s7 + $0x370] sm:$0xff]  ;;  %v399_v2 = vld [vmem:[%s3026_s7 + $0x378] sm:$0xff]  ;;  %v1083_v39 = vadd.f32 %v1082_v17, %v3695_v48  ;;  %844 = vadd.xlane.f32.xlu1 %v843_v40 }
  0xf2   : > { %5717 = vst [vmem:[#allocation133_spill] sm:$0xff] %v3797_v3  ;;  %v400_v33 = vld [vmem:[%s3026_s7 + $0x380] sm:$0xff]  ;;  %5718 = vst [vmem:[#allocation134_spill] sm:$0xff] %v3804_v26  ;;  %v541_v21 = vld [vmem:[%s3034_s25 + $0x368] sm:$0xff]  ;;  %v3815_v12 = vmul.f32 %v3355_v28, %v3355_v28  ;;  %v835_v55 = vadd.f32 %v834_v4, %v3768_v30  ;;  %v3826_v48 = vadd.f32 %v551_v63, %v407_v13 }
  0xf3   : > { %v540_v20 = vld [vmem:[%s3034_s25 + $0x360] sm:$0xff]  ;;  %v542_v62 = vld [vmem:[%s3034_s25 + $0x370] sm:$0xff]  ;;  %v854_v53 = vadd.f32 %v853_v6, %v3789_v45  ;;  %v401_v11 = vld [vmem:[%s3026_s7 + $0x388] sm:$0xff]  ;;  %v3824_v35 = vadd.f32 %v541_v21, %v397_v31  ;;  %v3835_v6 = vmul.f32 %v3374_v57, %v3374_v57  ;;  %v1075_v28 = vadd.f32 %v1074_v49, %v926_v29 }
  0xf4   : > { %v543_v56 = vld [vmem:[%s3034_s25 + $0x378] sm:$0xff]  ;;  %v544_v59 = vld [vmem:[%s3034_s25 + $0x380] sm:$0xff]  ;;  %v3822_v25 = vadd.f32 %v540_v20, %v396_v18  ;;  %5721 = vst [vmem:[#allocation137_spill] sm:$0xff] %v3826_v48  ;;  %v545_v32 = vld [vmem:[%s3034_s25 + $0x388] sm:$0xff]  ;;  %v3829_v40 = vadd.f32 %v542_v62, %v398_v19  ;;  %v836_v18 = vadd.f32 %v835_v55, %v3786_v46  ;;  %v1084_v55 = vadd.f32 %v1083_v39, %v3715_v16 }
  0xf5   : > { %5720 = vst [vmem:[#allocation136_spill] sm:$0xff] %v3824_v35  ;;  %v414_v17 = vld [vmem:[%s3026_s7 + $0x3f0] sm:$0xff]  ;;  %v415_v4 = vld [vmem:[%s3026_s7 + $0x3f8] sm:$0xff]  ;;  %v855_v31 = vadd.f32 %v854_v53, %v3797_v3  ;;  %v3839_v20 = vadd.f32 %v543_v56, %v399_v2  ;;  %v416_v63 = vld [vmem:[%s3026_s7 + $0x400] sm:$0xff]  ;;  %v3846_v62 = vadd.f32 %v544_v59, %v400_v33  ;;  %v3865_v39 = vadd.f32 %v545_v32, %v401_v11 }
  0xf6   : > { %5719 = vst [vmem:[#allocation135_spill] sm:$0xff] %v3822_v25  ;;  %5722 = vst [vmem:[#allocation138_spill] sm:$0xff] %v3829_v40  ;;  %v846_v13 = vadd.f32 %v3824_v35, %v3822_v25  ;;  %v417_v19 = vld [vmem:[%s3026_s7 + $0x408] sm:$0xff]  ;;  %v418_v21 = vld [vmem:[%s3026_s7 + $0x410] sm:$0xff]  ;;  %837 = vadd.xlane.f32.xlu0 %v836_v18 }
  0xf7   : > { %5723 = vst [vmem:[#allocation139_spill] sm:$0xff] %v3839_v20  ;;  %5724 = vst [vmem:[#allocation140_spill] sm:$0xff] %v3846_v62  ;;  %v558_v57 = vld [vmem:[%s3034_s25 + $0x3f0] sm:$0xff]  ;;  %v559_v49 = vld [vmem:[%s3034_s25 + $0x3f8] sm:$0xff]  ;;  %v856_v3 = vadd.f32 %v855_v31, %v3804_v26  ;;  %v3874_v26 = vmul.f32 %v3377_v27, %v3377_v27  ;;  %v3899_v27 = vmul.f32 %v3398_v1, %v3398_v1 }
  0xf8   : > { %v560_v29 = vld [vmem:[%s3034_s25 + $0x400] sm:$0xff]  ;;  %v5726_v53 = vld [vmem:[#allocation66_spill] sm:$0xff]  ;;  %v847_v59 = vadd.f32 %v846_v13, %v3829_v40  ;;  %v419_v33 = vld [vmem:[%s3026_s7 + $0x418] sm:$0xff]  ;;  %v3861_v25 = vadd.f32 %v558_v57, %v414_v17  ;;  %v3863_v16 = vadd.f32 %v559_v49, %v415_v4  ;;  %5729 = vst [vmem:[#allocation143_spill] sm:$0xff] %v3865_v39 }
  0xf9   : > { %v5725_v56 = vld [vmem:[#allocation65_spill] sm:$0xff]  ;;  %v943_v46 = vmul.f32 %v5726_v53, %v5726_v53  ;;  %v562_v35 = vld [vmem:[%s3034_s25 + $0x410] sm:$0xff]  ;;  %v563_v53 = vld [vmem:[%s3034_s25 + $0x418] sm:$0xff]  ;;  %v3868_v18 = vadd.f32 %v560_v29, %v416_v63  ;;  %v857_v57 = vadd.f32 %v856_v3, %v3826_v48 }
  0xfa   : > { %v942_v2 = vmul.f32 %v5725_v56, %v5725_v56  ;;  %v561_v30 = vld [vmem:[%s3034_s25 + $0x408] sm:$0xff]  ;;  %5727 = vst [vmem:[#allocation141_spill] sm:$0xff] %v3861_v25  ;;  %5728 = vst [vmem:[#allocation142_spill] sm:$0xff] %v3863_v16  ;;  %v408_v31 = vld [vmem:[%s3026_s7 + $0x3c0] sm:$0xff]  ;;  %v1076_v56 = vadd.f32 %v1075_v28, %v927_v36  ;;  %v848_v17 = vadd.f32 %v847_v59, %v3839_v20 }
  0xfb   : > { %5730 = vst [vmem:[#allocation144_spill] sm:$0xff] %v3868_v18  ;;  %v409_v13 = vld [vmem:[%s3026_s7 + $0x3c8] sm:$0xff]  ;;  %v3878_v4 = vadd.f32 %v561_v30, %v417_v19  ;;  %v867_v11 = vadd.f32 %v3863_v16, %v3861_v25  ;;  %v410_v32 = vld [vmem:[%s3026_s7 + $0x3d0] sm:$0xff]  ;;  %v411_v63 = vld [vmem:[%s3026_s7 + $0x3d8] sm:$0xff]  ;;  %v3885_v36 = vadd.f32 %v562_v35, %v418_v21  ;;  %v3891_v59 = vadd.f32 %v1084_v55, %v3719_v60 }
  0xfc   : > { %v412_v28 = vld [vmem:[%s3026_s7 + $0x3e0] sm:$0xff]  ;;  %v553_v29 = vld [vmem:[%s3034_s25 + $0x3c8] sm:$0xff]  ;;  %v554_v3 = vld [vmem:[%s3034_s25 + $0x3d0] sm:$0xff]  ;;  %858 = vadd.xlane.f32.xlu1 %v857_v57  ;;  %v849_v35 = vadd.f32 %v848_v17, %v3846_v62  ;;  %v3911_v16 = vadd.f32 %v563_v53, %v419_v33  ;;  %v3919_v62 = vadd.f32 %v1076_v56, %v3815_v12 }
  0xfd   : > { %5731 = vst [vmem:[#allocation145_spill] sm:$0xff] %v3878_v4  ;;  %5732 = vst [vmem:[#allocation146_spill] sm:$0xff] %v3885_v36  ;;  %v552_v49 = vld [vmem:[%s3034_s25 + $0x3c0] sm:$0xff]  ;;  %v868_v21 = vadd.f32 %v867_v11, %v3868_v18  ;;  %v413_v48 = vld [vmem:[%s3026_s7 + $0x3e8] sm:$0xff]  ;;  %v3913_v57 = vadd.f32 %v554_v3, %v410_v32  ;;  %v1095_v18 = vadd.f32 %v943_v46, %v942_v2 }
  0xfe   : > { %v5733_v30 = vld [vmem:[#allocation69_spill] sm:$0xff]  ;;  %v555_v20 = vld [vmem:[%s3034_s25 + $0x3d8] sm:$0xff]  ;;  %v3907_v55 = vadd.f32 %v552_v49, %v408_v31  ;;  %5736 = vst [vmem:[#allocation149_spill] sm:$0xff] %v3911_v16  ;;  %v426_v17 = vld [vmem:[%s3026_s7 + $0x450] sm:$0xff]  ;;  %v850_v25 = vadd.f32 %v849_v35, %v3865_v39  ;;  %v938_v35 = vmul.f32 %v3419_v0, %v3419_v0 }
  0xff   : > { %v3895_v19 = vmul.f32 %v5733_v30, %v5733_v30  ;;  %v556_v40 = vld [vmem:[%s3034_s25 + $0x3e0] sm:$0xff]  ;;  %v557_v60 = vld [vmem:[%s3034_s25 + $0x3e8] sm:$0xff]  ;;  %v3909_v30 = vadd.f32 %v553_v29, %v409_v13  ;;  %5737 = vst [vmem:[#allocation150_spill] sm:$0xff] %v3913_v57  ;;  %v427_v11 = vld [vmem:[%s3026_s7 + $0x458] sm:$0xff]  ;;  %v869_v31 = vadd.f32 %v868_v21, %v3878_v4  ;;  %v3923_v13 = vadd.f32 %v555_v20, %v411_v63 }
 0x100   : > { %5734 = vst [vmem:[#allocation147_spill] sm:$0xff] %v3907_v55  ;;  %v428_v1 = vld [vmem:[%s3026_s7 + $0x460] sm:$0xff]  ;;  %v429_v33 = vld [vmem:[%s3026_s7 + $0x468] sm:$0xff]  ;;  %v430_v32 = vld [vmem:[%s3026_s7 + $0x470] sm:$0xff]  ;;  %v3930_v29 = vadd.f32 %v556_v40, %v412_v28  ;;  %851 = vadd.xlane.f32.xlu0 %v850_v25 }
 0x101   : > { %5735 = vst [vmem:[#allocation148_spill] sm:$0xff] %v3909_v30  ;;  %5738 = vst [vmem:[#allocation151_spill] sm:$0xff] %v3923_v13  ;;  %v860_v53 = vadd.f32 %v3909_v30, %v3907_v55  ;;  %v431_v49 = vld [vmem:[%s3026_s7 + $0x478] sm:$0xff]  ;;  %v570_v12 = vld [vmem:[%s3034_s25 + $0x450] sm:$0xff]  ;;  %v870_v21 = vadd.f32 %v869_v31, %v3885_v36  ;;  %v955_v36 = vmul.f32 %v3452_v7, %v3452_v7 }
 0x102   : > { %5739 = vst [vmem:[#allocation152_spill] sm:$0xff] %v3930_v29  ;;  %v571_v46 = vld [vmem:[%s3034_s25 + $0x458] sm:$0xff]  ;;  %v572_v56 = vld [vmem:[%s3034_s25 + $0x460] sm:$0xff]  ;;  %v573_v28 = vld [vmem:[%s3034_s25 + $0x468] sm:$0xff]  ;;  %v3946_v30 = vadd.f32 %v570_v12, %v426_v17 }
 0x103   : > { %v5740_v2 = vld [vmem:[#allocation71_spill] sm:$0xff]  ;;  %v5741_v20 = vld [vmem:[#allocation72_spill] sm:$0xff]  ;;  %v861_v40 = vadd.f32 %v860_v53, %v3913_v57  ;;  %v3952_v0 = vadd.f32 %v572_v56, %v428_v1  ;;  %v421_v31 = vld [vmem:[%s3026_s7 + $0x428] sm:$0xff]  ;;  %v954_v53 = vmul.f32 %v3450_v34, %v3450_v34  ;;  %v871_v17 = vadd.f32 %v870_v21, %v3911_v16 }
 0x104   : > { %v936_v3 = vmul.f32 %v5740_v2, %v5740_v2  ;;  %v937_v63 = vmul.f32 %v5741_v20, %v5741_v20  ;;  %v574_v39 = vld [vmem:[%s3034_s25 + $0x470] sm:$0xff]  ;;  %v575_v4 = vld [vmem:[%s3034_s25 + $0x478] sm:$0xff]  ;;  %5742 = vst [vmem:[#allocation153_spill] sm:$0xff] %v3946_v30  ;;  %v3948_v2 = vadd.f32 %v571_v46, %v427_v11  ;;  %v3950_v20 = vadd.f32 %v557_v60, %v413_v48  ;;  %v420_v25 = vld [vmem:[%s3026_s7 + $0x420] sm:$0xff] }
 0x105   : > { %5745 = vst [vmem:[#allocation156_spill] sm:$0xff] %v3952_v0  ;;  %v862_v11 = vadd.f32 %v861_v40, %v3923_v13  ;;  %v3962_v12 = vadd.f32 %v573_v28, %v429_v33  ;;  %v422_v1 = vld [vmem:[%s3026_s7 + $0x430] sm:$0xff]  ;;  %v423_v60 = vld [vmem:[%s3026_s7 + $0x438] sm:$0xff]  ;;  %v3968_v46 = vadd.f32 %v574_v39, %v430_v32  ;;  %v3970_v56 = vadd.f32 %v575_v4, %v431_v49  ;;  %v564_v34 = vld [vmem:[%s3034_s25 + $0x420] sm:$0xff] }
 0x106   : > { %5743 = vst [vmem:[#allocation154_spill] sm:$0xff] %v3948_v2  ;;  %5744 = vst [vmem:[#allocation155_spill] sm:$0xff] %v3950_v20  ;;  %v881_v48 = vadd.f32 %v3948_v2, %v3946_v30  ;;  %v565_v7 = vld [vmem:[%s3034_s25 + $0x428] sm:$0xff]  ;;  %v566_v57 = vld [vmem:[%s3034_s25 + $0x430] sm:$0xff]  ;;  %v1088_v21 = vadd.f32 %v937_v63, %v936_v3  ;;  %v956_v33 = vmul.f32 %v3457_v42, %v3457_v42  ;;  %872 = vadd.xlane.f32.xlu1 %v871_v17 }
 0x107   : > { %5746 = vst [vmem:[#allocation157_spill] sm:$0xff] %v3962_v12  ;;  %5747 = vst [vmem:[#allocation158_spill] sm:$0xff] %v3968_v46  ;;  %v863_v40 = vadd.f32 %v862_v11, %v3930_v29  ;;  %v567_v16 = vld [vmem:[%s3034_s25 + $0x438] sm:$0xff]  ;;  %v3980_v13 = vadd.f32 %v564_v34, %v420_v25  ;;  %v3982_v39 = vadd.f32 %v565_v7, %v421_v31  ;;  %v424_v4 = vld [vmem:[%s3026_s7 + $0x440] sm:$0xff] }
 0x108   : > { %5748 = vst [vmem:[#allocation159_spill] sm:$0xff] %v3970_v56  ;;  %v882_v28 = vadd.f32 %v881_v48, %v3952_v0  ;;  %v568_v32 = vld [vmem:[%s3034_s25 + $0x440] sm:$0xff]  ;;  %v3986_v49 = vadd.f32 %v566_v57, %v422_v1  ;;  %v1109_v3 = vadd.f32 %v955_v36, %v954_v53  ;;  %v948_v63 = vmul.f32 %v3488_v8, %v3488_v8  ;;  %v425_v42 = vld [vmem:[%s3026_s7 + $0x448] sm:$0xff]  ;;  %v5753_v36 = vld [vmem:[#allocation75_spill] sm:$0xff] }
 0x109   : > { %5749 = vst [vmem:[#allocation160_spill] sm:$0xff] %v3980_v13  ;;  %5750 = vst [vmem:[#allocation161_spill] sm:$0xff] %v3982_v39  ;;  %v949_v17 = vmul.f32 %v3490_v43, %v3490_v43  ;;  %v864_v11 = vadd.f32 %v863_v40, %v3950_v20  ;;  %v569_v34 = vld [vmem:[%s3034_s25 + $0x448] sm:$0xff]  ;;  %v3996_v25 = vadd.f32 %v567_v16, %v423_v60 }
 0x10a   : > { %5751 = vst [vmem:[#allocation162_spill] sm:$0xff] %v3986_v49  ;;  %v883_v48 = vadd.f32 %v882_v28, %v3962_v12  ;;  %v874_v7 = vadd.f32 %v3982_v39, %v3980_v13  ;;  %v1096_v57 = vadd.f32 %v1095_v18, %v3874_v26  ;;  %v939_v31 = vmul.f32 %v5753_v36, %v5753_v36  ;;  %v5770_v8 = vld [vmem:[#allocation98_spill] sm:$0xff] }
 0x10b   : > { %5752 = vst [vmem:[#allocation163_spill] sm:$0xff] %v3996_v25  ;;  %v1089_v53 = vadd.f32 %v1088_v21, %v938_v35  ;;  %v957_v1 = vmul.f32 %v3468_v38, %v3468_v38  ;;  %865 = vadd.xlane.f32.xlu0 %v864_v11  ;;  %v4006_v28 = vadd.f32 %v568_v32, %v424_v4  ;;  %v5829_v38 = vld [vmem:[#allocation40_spill] sm:$0xff] }
 0x10c   : > { %v884_v40 = vadd.f32 %v883_v48, %v3968_v46  ;;  %v875_v16 = vadd.f32 %v874_v7, %v3986_v49  ;;  %v950_v60 = vmul.f32 %v3495_v47, %v3495_v47  ;;  %v4011_v43 = vadd.f32 %v569_v34, %v425_v42  ;;  %v5756_v48 = vld [vmem:[#allocation73_spill] sm:$0xff]  ;;  %v5768_v47 = vld [vmem:[#allocation108_spill] sm:$0xff] }
 0x10d   : > { %5754 = vst [vmem:[#allocation164_spill] sm:$0xff] %v4006_v28  ;;  %v1110_v26 = vadd.f32 %v1109_v3, %v956_v33  ;;  %v966_v18 = vmul.f32 %v3532_v15, %v3532_v15  ;;  %v967_v35 = vmul.f32 %v3534_v54, %v3534_v54  ;;  %v1102_v4 = vadd.f32 %v949_v17, %v948_v63  ;;  %v5765_v15 = vld [vmem:[#allocation111_spill] sm:$0xff] }
 0x10e   : > { %5755 = vst [vmem:[#allocation165_spill] sm:$0xff] %v4011_v43  ;;  %v885_v21 = vadd.f32 %v884_v40, %v3970_v56  ;;  %v876_v11 = vadd.f32 %v875_v16, %v3996_v25  ;;  %v968_v32 = vmul.f32 %v3539_v51, %v3539_v51  ;;  %v947_v7 = vmul.f32 %v5756_v48, %v5756_v48 }
 0x10f   : > { %v1097_v42 = vadd.f32 %v1096_v57, %v3895_v19  ;;  %v940_v33 = vmul.f32 %v3437_v24, %v3437_v24  ;;  %v1123_v3 = vadd.f32 %v967_v35, %v966_v18  ;;  %v1090_v54 = vadd.f32 %v1089_v53, %v939_v31 }
 0x110   : > { %886 = vadd.xlane.f32.xlu1 %v885_v21  ;;  %v877_v34 = vadd.f32 %v876_v11, %v4006_v28  ;;  %v960_v40 = vmul.f32 %v3579_v37, %v3579_v37  ;;  %v961_v63 = vmul.f32 %v3581_v23, %v3581_v23  ;;  %v4033_v17 = vadd.f32 %v3919_v62, %v3835_v6  ;;  %v5757_v21 = vld [vmem:[#allocation102_spill] sm:$0xff]  ;;  %v5758_v6 = vld [vmem:[#allocation105_spill] sm:$0xff] }
 0x111   : > { %v958_v19 = vmul.f32 %v3475_v50, %v3475_v50  ;;  %v1111_v57 = vadd.f32 %v1110_v26, %v957_v1  ;;  %v951_v16 = vmul.f32 %v3508_v9, %v3508_v9  ;;  %v1103_v31 = vadd.f32 %v1102_v4, %v950_v60  ;;  %v5759_v37 = vld [vmem:[#allocation106_spill] sm:$0xff]  ;;  %v5761_v60 = vld [vmem:[#allocation79_spill] sm:$0xff] }
 0x112   : > { %v878_v18 = vadd.f32 %v877_v34, %v4011_v43  ;;  %v969_v53 = vmul.f32 %v3553_v44, %v3553_v44  ;;  %v1124_v35 = vadd.f32 %v1123_v3, %v968_v32  ;;  %v962_v11 = vmul.f32 %v5757_v21, %v5757_v21  ;;  %v5760_v26 = vld [vmem:[#allocation90_spill] sm:$0xff]  ;;  %v5762_v32 = vld [vmem:[#allocation85_spill] sm:$0xff]  ;;  %v5767_v9 = vld [vmem:[#allocation103_spill] sm:$0xff] }
 0x113   : > { %v1116_v23 = vadd.f32 %v961_v63, %v960_v40  ;;  %v978_v62 = vmul.f32 %v5758_v6, %v5758_v6  ;;  %v979_v1 = vmul.f32 %v5759_v37, %v5759_v37  ;;  %v1098_v34 = vadd.f32 %v1097_v42, %v3899_v27  ;;  %v5763_v40 = vld [vmem:[#allocation89_spill] sm:$0xff]  ;;  %v5766_v27 = vld [vmem:[#allocation112_spill] sm:$0xff] }
 0x114   : > { %879 = vadd.xlane.f32.xlu0 %v878_v18  ;;  %1044 = vadd.xlane.f32.xlu1 %v5760_v26  ;;  %v941_v4 = vmul.f32 %v5761_v60, %v5761_v60  ;;  %v1091_v44 = vadd.f32 %v1090_v54, %v940_v33  ;;  %v959_v3 = vmul.f32 %v5762_v32, %v5762_v32  ;;  %v5764_v6 = vld [vmem:[#allocation97_spill] sm:$0xff] }
 0x115   : > { %v1112_v21 = vadd.f32 %v1111_v57, %v958_v19  ;;  %v952_v63 = vmul.f32 %v5763_v40, %v5763_v40  ;;  %v970_v51 = vmul.f32 %v5764_v6, %v5764_v6  ;;  %v1104_v37 = vadd.f32 %v1103_v31, %v951_v16  ;;  %v5769_v40 = vld [vmem:[#allocation87_spill] sm:$0xff] }
 0x116   : > { %v1125_v18 = vadd.f32 %v1124_v35, %v969_v53  ;;  %v972_v26 = vmul.f32 %v5765_v15, %v5765_v15  ;;  %v973_v42 = vmul.f32 %v5766_v27, %v5766_v27  ;;  %v963_v54 = vmul.f32 %v5767_v9, %v5767_v9  ;;  %v5771_v53 = vld [vmem:[#allocation94_spill] sm:$0xff]  ;;  %v5775_v9 = vld [vmem:[#allocation109_spill] sm:$0xff] }
 0x117   : > { %v1117_v33 = vadd.f32 %v1116_v23, %v962_v11  ;;  %v980_v19 = vmul.f32 %v5768_v47, %v5768_v47  ;;  %v1137_v57 = vadd.f32 %v979_v1, %v978_v62  ;;  %v1099_v16 = vadd.f32 %v1098_v34, %v947_v7  ;;  %v5772_v11 = vld [vmem:[#allocation118_spill] sm:$0xff]  ;;  %v5773_v47 = vld [vmem:[#allocation101_spill] sm:$0xff]  ;;  %v5774_v7 = vld [vmem:[#allocation104_spill] sm:$0xff] }
 0x118   : > { %1037 = vadd.xlane.f32.xlu0 %v5769_v40  ;;  %1058 = vadd.xlane.f32.xlu1 %v5770_v8  ;;  %v4068_v31 = vadd.f32 %v1091_v44, %v941_v4  ;;  %v953_v35 = vmul.f32 %v5771_v53, %v5771_v53  ;;  %v974_v27 = vmul.f32 %v3668_v14, %v3668_v14 }
 0x119   : > { %v1130_v15 = vadd.f32 %v973_v42, %v972_v26  ;;  %v990_v23 = vmul.f32 %v3702_v22, %v3702_v22  ;;  %v991_v62 = vmul.f32 %v5772_v11, %v5772_v11  ;;  %v1113_v1 = vadd.f32 %v1112_v21, %v959_v3  ;;  %v5776_v42 = vld [vmem:[#allocation91_spill] sm:$0xff]  ;;  %v5780_v11 = vld [vmem:[#allocation124_spill] sm:$0xff] }
 0x11a   : > { %v1105_v40 = vadd.f32 %v1104_v37, %v952_v63  ;;  %v971_v8 = vmul.f32 %v5773_v47, %v5773_v47  ;;  %v1126_v44 = vadd.f32 %v1125_v18, %v970_v51  ;;  %v964_v34 = vmul.f32 %v5774_v7, %v5774_v7  ;;  %v5777_v22 = vld [vmem:[#allocation107_spill] sm:$0xff] }
 0x11b   : > { %v1118_v4 = vadd.f32 %v1117_v33, %v963_v54  ;;  %v981_v14 = vmul.f32 %v5775_v9, %v5775_v9  ;;  %v1138_v26 = vadd.f32 %v1137_v57, %v980_v19  ;;  %v965_v21 = vmul.f32 %v5777_v22, %v5777_v22  ;;  %v5778_v51 = vld [vmem:[#allocation115_spill] sm:$0xff]  ;;  %v5782_v22 = vld [vmem:[#allocation113_spill] sm:$0xff] }
 0x11c   : > { %1051 = vadd.xlane.f32.xlu0 %v5776_v42  ;;  %1072 = vadd.xlane.f32.xlu1 %v3736_v41  ;;  %v992_v37 = vmul.f32 %v3709_v61, %v3709_v61  ;;  %v1151_v3 = vadd.f32 %v991_v62, %v990_v23  ;;  %v975_v63 = vmul.f32 %v5778_v51, %v5778_v51  ;;  %v5779_v54 = vld [vmem:[#allocation123_spill] sm:$0xff]  ;;  %v5781_v41 = vld [vmem:[#allocation110_spill] sm:$0xff] }
 0x11d   : > { %v1131_v18 = vadd.f32 %v1130_v15, %v974_v27  ;;  %v984_v33 = vmul.f32 %v5779_v54, %v5779_v54  ;;  %v985_v19 = vmul.f32 %v5780_v11, %v5780_v11  ;;  %v1106_v57 = vadd.f32 %v1105_v40, %v953_v35  ;;  %v5783_v27 = vld [vmem:[#allocation116_spill] sm:$0xff]  ;;  %v5784_v40 = vld [vmem:[#allocation121_spill] sm:$0xff]  ;;  %v5785_v11 = vld [vmem:[#allocation119_spill] sm:$0xff] }
 0x11e   : > { %v1127_v42 = vadd.f32 %v1126_v44, %v971_v8  ;;  %v982_v9 = vmul.f32 %v5781_v41, %v5781_v41  ;;  %v983_v7 = vmul.f32 %v5782_v22, %v5782_v22  ;;  %v1119_v61 = vadd.f32 %v1118_v4, %v964_v34  ;;  %v5787_v54 = vld [vmem:[#allocation136_spill] sm:$0xff] }
 0x11f   : > { %v1139_v23 = vadd.f32 %v1138_v26, %v981_v14  ;;  %v1002_v62 = vmul.f32 %v3782_v52, %v3782_v52  ;;  %v1003_v15 = vmul.f32 %v3784_v58, %v3784_v58  ;;  %v976_v35 = vmul.f32 %v5783_v27, %v5783_v27 }
 0x120   : > { %1065 = vadd.xlane.f32.xlu0 %v3810_v5  ;;  %1086 = vadd.xlane.f32.xlu1 %v3891_v59  ;;  %v993_v8 = vmul.f32 %v5784_v40, %v5784_v40  ;;  %v1152_v44 = vadd.f32 %v1151_v3, %v992_v37  ;;  %v977_v14 = vmul.f32 %v5785_v11, %v5785_v11  ;;  %v5786_v59 = vld [vmem:[#allocation135_spill] sm:$0xff]  ;;  %v5788_v3 = vld [vmem:[#allocation122_spill] sm:$0xff] }
 0x121   : > { %v1132_v34 = vadd.f32 %v1131_v18, %v975_v63  ;;  %v986_v4 = vmul.f32 %v3751_v10, %v3751_v10  ;;  %v1144_v26 = vadd.f32 %v985_v19, %v984_v33  ;;  %v1004_v5 = vmul.f32 %v3789_v45, %v3789_v45  ;;  %v5789_v63 = vld [vmem:[#allocation125_spill] sm:$0xff]  ;;  %v5790_v19 = vld [vmem:[#allocation127_spill] sm:$0xff] }
 0x122   : > { %v1165_v58 = vadd.f32 %v1003_v15, %v1002_v62  ;;  %v996_v52 = vmul.f32 %v5786_v59, %v5786_v59  ;;  %v997_v27 = vmul.f32 %v5787_v54, %v5787_v54  ;;  %v1120_v40 = vadd.f32 %v1119_v61, %v965_v21  ;;  %v5791_v15 = vld [vmem:[#allocation128_spill] sm:$0xff]  ;;  %v5792_v61 = vld [vmem:[#allocation141_spill] sm:$0xff]  ;;  %v5793_v21 = vld [vmem:[#allocation142_spill] sm:$0xff] }
 0x123   : > { %v1140_v37 = vadd.f32 %v1139_v23, %v982_v9  ;;  %v994_v11 = vmul.f32 %v5788_v3, %v5788_v3  ;;  %v995_v18 = vmul.f32 %v5789_v63, %v5789_v63  ;;  %v1153_v33 = vadd.f32 %v1152_v44, %v993_v8  ;;  %v5794_v10 = vld [vmem:[#allocation133_spill] sm:$0xff]  ;;  %v5796_v3 = vld [vmem:[#allocation144_spill] sm:$0xff] }
 0x124   : > { %1079 = vadd.xlane.f32.xlu0 %v4033_v17  ;;  %1100 = vadd.xlane.f32.xlu1 %v1099_v16  ;;  %v987_v62 = vmul.f32 %v5790_v19, %v5790_v19  ;;  %v988_v59 = vmul.f32 %v5791_v15, %v5791_v15  ;;  %v1133_v45 = vadd.f32 %v1132_v34, %v976_v35  ;;  %v5795_v16 = vld [vmem:[#allocation138_spill] sm:$0xff] }
 0x125   : > { %v1145_v54 = vadd.f32 %v1144_v26, %v986_v4  ;;  %v1014_v9 = vmul.f32 %v5792_v61, %v5792_v61  ;;  %v1015_v23 = vmul.f32 %v5793_v21, %v5793_v21  ;;  %v1005_v63 = vmul.f32 %v5794_v10, %v5794_v10  ;;  %v5797_v26 = vld [vmem:[#allocation131_spill] sm:$0xff] }
 0x126   : > { %v1166_v17 = vadd.f32 %v1165_v58, %v1004_v5  ;;  %v998_v8 = vmul.f32 %v5795_v16, %v5795_v16  ;;  %v1158_v44 = vadd.f32 %v997_v27, %v996_v52  ;;  %v1141_v19 = vadd.f32 %v1140_v37, %v983_v7  ;;  %v5798_v58 = vld [vmem:[#allocation148_spill] sm:$0xff]  ;;  %v5799_v7 = vld [vmem:[#allocation134_spill] sm:$0xff]  ;;  %v5800_v37 = vld [vmem:[#allocation139_spill] sm:$0xff] }
 0x127   : > { %v1016_v15 = vmul.f32 %v5796_v3, %v5796_v3  ;;  %v1179_v35 = vadd.f32 %v1015_v23, %v1014_v9  ;;  %v1008_v34 = vmul.f32 %v3907_v55, %v3907_v55  ;;  %v1154_v4 = vadd.f32 %v1153_v33, %v994_v11  ;;  %v5801_v3 = vld [vmem:[#allocation145_spill] sm:$0xff]  ;;  %v5802_v33 = vld [vmem:[#allocation150_spill] sm:$0xff] }
 0x128   : > { %1093 = vadd.xlane.f32.xlu0 %v4068_v31  ;;  %1114 = vadd.xlane.f32.xlu1 %v1113_v1  ;;  %v989_v21 = vmul.f32 %v5797_v26, %v5797_v26  ;;  %v1009_v5 = vmul.f32 %v5798_v58, %v5798_v58  ;;  %v1134_v61 = vadd.f32 %v1133_v45, %v977_v14 }
 0x129   : > { %v1146_v52 = vadd.f32 %v1145_v54, %v987_v62  ;;  %v1006_v27 = vmul.f32 %v5799_v7, %v5799_v7  ;;  %v999_v9 = vmul.f32 %v5800_v37, %v5800_v37  ;;  %v1167_v23 = vadd.f32 %v1166_v17, %v1005_v63  ;;  %v5803_v62 = vld [vmem:[#allocation137_spill] sm:$0xff] }
 0x12a   : > { %v1159_v55 = vadd.f32 %v1158_v44, %v998_v8  ;;  %v1017_v31 = vmul.f32 %v5801_v3, %v5801_v3  ;;  %v1026_v11 = vmul.f32 %v3946_v30, %v3946_v30  ;;  %v1180_v1 = vadd.f32 %v1179_v35, %v1016_v15  ;;  %v5804_v44 = vld [vmem:[#allocation140_spill] sm:$0xff] }
 0x12b   : > { %v1010_v58 = vmul.f32 %v5802_v33, %v5802_v33  ;;  %v1172_v45 = vadd.f32 %v1009_v5, %v1008_v34  ;;  %v1027_v54 = vmul.f32 %v3948_v2, %v3948_v2  ;;  %v1155_v14 = vadd.f32 %v1154_v4, %v995_v18  ;;  %v5805_v2 = vld [vmem:[#allocation146_spill] sm:$0xff]  ;;  %v5806_v4 = vld [vmem:[#allocation151_spill] sm:$0xff] }
 0x12c   : > { %1107 = vadd.xlane.f32.xlu0 %v1106_v57  ;;  %1128 = vadd.xlane.f32.xlu1 %v1127_v42  ;;  %v1007_v63 = vmul.f32 %v5803_v62, %v5803_v62  ;;  %v1028_v17 = vmul.f32 %v3952_v0, %v3952_v0  ;;  %v1147_v8 = vadd.f32 %v1146_v52, %v988_v59 }
 0x12d   : > { %v1000_v15 = vmul.f32 %v5804_v44, %v5804_v44  ;;  %v1193_v35 = vadd.f32 %v1027_v54, %v1026_v11  ;;  %v1020_v34 = vmul.f32 %v3980_v13, %v3980_v13  ;;  %v1168_v5 = vadd.f32 %v1167_v23, %v1006_v27 }
 0x12e   : > { %v1160_v30 = vadd.f32 %v1159_v55, %v999_v9  ;;  %v1018_v57 = vmul.f32 %v5805_v2, %v5805_v2  ;;  %v1021_v42 = vmul.f32 %v3982_v39, %v3982_v39  ;;  %v1181_v18 = vadd.f32 %v1180_v1, %v1017_v31  ;;  %v5807_v9 = vld [vmem:[#allocation143_spill] sm:$0xff]  ;;  %v5808_v31 = vld [vmem:[#allocation149_spill] sm:$0xff] }
 0x12f   : > { %v1011_v0 = vmul.f32 %v5806_v4, %v5806_v4  ;;  %v1173_v59 = vadd.f32 %v1172_v45, %v1010_v58  ;;  %v1029_v52 = vmul.f32 %v3962_v12, %v3962_v12  ;;  %v1194_v11 = vadd.f32 %v1193_v35, %v1028_v17 }
 0x130   : > { %1121 = vadd.xlane.f32.xlu0 %v1120_v40  ;;  %1142 = vadd.xlane.f32.xlu1 %v1141_v19  ;;  %v1022_v55 = vmul.f32 %v3986_v49, %v3986_v49  ;;  %v1186_v27 = vadd.f32 %v1021_v42, %v1020_v34  ;;  %v1001_v23 = vmul.f32 %v5807_v9, %v5807_v9 }
 0x131   : > { %v1148_v54 = vadd.f32 %v1147_v8, %v989_v21  ;;  %v1169_v39 = vadd.f32 %v1168_v5, %v1007_v63  ;;  %v1019_v1 = vmul.f32 %v5808_v31, %v5808_v31  ;;  %v1012_v58 = vmul.f32 %v3930_v29, %v3930_v29 }
 0x132   : > { %v1161_v45 = vadd.f32 %v1160_v30, %v1000_v15  ;;  %v1182_v13 = vadd.f32 %v1181_v18, %v1018_v57  ;;  %v1174_v40 = vadd.f32 %v1173_v59, %v1011_v0  ;;  %v1030_v19 = vmul.f32 %v3968_v46, %v3968_v46  ;;  %v740_v59 = vpop.xlane.xlu1 %739 }
 0x133   : > { %v1195_v17 = vadd.f32 %v1194_v11, %v1029_v52  ;;  %v1023_v35 = vmul.f32 %v3996_v25, %v3996_v25  ;;  %v1187_v21 = vadd.f32 %v1186_v27, %v1022_v55  ;;  %v1013_v63 = vmul.f32 %v3950_v20, %v3950_v20  ;;  %v1369_v25 = vld [vmem:[#allocation10] sm:$0x3f] }
 0x134   : > { %1135 = vadd.xlane.f32.xlu0 %v1134_v61  ;;  %1156 = vadd.xlane.f32.xlu1 %v1155_v14  ;;  %v1162_v8 = vadd.f32 %v1161_v45, %v1001_v23  ;;  %v1183_v34 = vadd.f32 %v1182_v13, %v1019_v1  ;;  %v1031_v30 = vmul.f32 %v3970_v56, %v3970_v56 }
 0x135   : > { %v1024_v0 = vmul.f32 %v4006_v28, %v4006_v28  ;;  %v1175_v61 = vadd.f32 %v1174_v40, %v1012_v58  ;;  %v1196_v14 = vadd.f32 %v1195_v17, %v1030_v19  ;;  %v1188_v15 = vadd.f32 %v1187_v21, %v1023_v35 }
 0x136   : > { %v1025_v5 = vmul.f32 %v4011_v43, %v4011_v43 }
 0x137   : > { %v1176_v57 = vadd.f32 %v1175_v61, %v1013_v63  ;;  %v1197_v42 = vadd.f32 %v1196_v14, %v1031_v30  ;;  %v1189_v18 = vadd.f32 %v1188_v15, %v1024_v0  ;;  %v726_v52 = vpop.xlane.xlu0 %725  ;;  %v1371_v30 = vlaneseq }
 0x138   : > { %1149 = vadd.xlane.f32.xlu0 %v1148_v54  ;;  %1170 = vadd.xlane.f32.xlu1 %v1169_v39  ;;  %v4232_v31 = vmul.f32 0.0013020834, %v726_v52 }
 0x139   : > { %v1190_v13 = vadd.f32 %v1189_v18, %v1025_v5  ;;  %v1372_v61 = vshrl.u32 %v1371_v30, 7  ;;  %v1368_v18 = vld [vmem:[#allocation9] sm:$0x3f] }
 0x13b   : > { %v747_v11 = vpop.xlane.xlu1 %746  ;;  %v1373_v15 = vsub.s32 0, %v1372_v61  ;;  %v1377_v5 = vsub.s32 1, %v1372_v61  ;;  %v1389_v43 = vsub.s32 4, %v1372_v61  ;;  %v1393_v28 = vsub.s32 5, %v1372_v61 }
 0x13c   : > { %1163 = vadd.xlane.f32.xlu0 %v1162_v8  ;;  %1184 = vadd.xlane.f32.xlu1 %v1183_v34 }
 0x13d   : > { %v4216_v46 = vrot.slane %v1368_v18, %v1373_v15  ;;  %v4218_v12 = vrot.slane %v1368_v18, %v1377_v5  ;;  %v4224_v29 = vrot.slane %v1368_v18, %v1389_v43  ;;  %v4226_v4 = vrot.slane %v1368_v18, %v1393_v28 }
 0x13e   : > { %v4228_v33 = vrot.slane %v1369_v25, %v1373_v15  ;;  %v4236_v2 = vrot.slane %v1369_v25, %v1377_v5  ;;  %v4260_v62 = vrot.slane %v1369_v25, %v1393_v28 }
 0x140   : > { %1177 = vadd.xlane.f32.xlu0 %v1176_v57  ;;  %1198 = vadd.xlane.f32.xlu1 %v1197_v42  ;;  %v733_v55 = vpop.xlane.xlu0 %732  ;;  %v1381_v57 = vsub.s32 2, %v1372_v61 }
 0x141   : > { %v4214_v56 = vmul.f32 0.0013020834, %v733_v55  ;;  %v4234_v55 = vmul.f32 0.0013020834, %v747_v11 }
 0x142   : > { %v4220_v30 = vrot.slane %v1368_v18, %v1381_v57  ;;  %v4244_v37 = vrot.slane %v1369_v25, %v1381_v57 }
 0x143   : > { %v1249_v11 = vmul.f32 %v4214_v56, %v4214_v56 }
 0x144   : > { %1191 = vadd.xlane.f32.xlu0 %v1190_v13  ;;  %v1385_v13 = vsub.s32 3, %v1372_v61  ;;  %v4230_v61 = vmul.f32 0.0013020834, %v740_v59  ;;  %v4250_v59 = vrot.slane %v1369_v25, %v1389_v43  ;;  %v1251_v43 = vmul.f32 %v4234_v55, %v4234_v55 }
 0x145   : > { %v761_v39 = vpop.xlane.xlu1 %760 }
 0x146   : > { %v4222_v20 = vrot.slane %v1368_v18, %v1385_v13  ;;  %v4238_v3 = vmul.f32 0.0013020834, %v761_v39  ;;  %v4246_v18 = vrot.slane %v1369_v25, %v1385_v13  ;;  %v1248_v13 = vmul.f32 %v4232_v31, %v4232_v31 }
 0x148   : > { %v1253_v25 = vmul.f32 %v4238_v3, %v4238_v3 }
 0x149   : > { %v754_v27 = vpop.xlane.xlu0 %753 }
 0x14a   : > { %v4240_v9 = vmul.f32 0.0013020834, %v754_v27 }
 0x14c   : > { %v1252_v28 = vmul.f32 %v4240_v9, %v4240_v9 }
 0x14e   : > { %v775_v23 = vpop.xlane.xlu1 %774 }
 0x14f   : > { %v4248_v16 = vmul.f32 0.0013020834, %v775_v23  ;;  %v1250_v23 = vmul.f32 %v4230_v61, %v4230_v61 }
 0x151   : > { %v1255_v10 = vmul.f32 %v4248_v16, %v4248_v16 }
 0x153   : > { %v768_v54 = vpop.xlane.xlu0 %767 }
 0x154   : > { %v4254_v5 = vmul.f32 0.0013020834, %v768_v54 }
 0x157   : > { %v789_v1 = vpop.xlane.xlu1 %788 }
 0x158   : > { %v4256_v39 = vmul.f32 0.0013020834, %v789_v1 }
 0x15c   : > { %v782_v58 = vpop.xlane.xlu0 %781 }
 0x15d   : > { %v4258_v27 = vmul.f32 0.0013020834, %v782_v58 }
 0x15f   : > { %5809 = vst [vmem:[#allocation73_spill] sm:$0xff] %v4258_v27  ;;  %v4290_v51 = vmul.f32 %v4258_v27, %v4258_v27 }
 0x161   : > { %v803_v45 = vpop.xlane.xlu1 %802 }
 0x166   : > { %v796_v40 = vpop.xlane.xlu0 %795 }
 0x167   : > { %v4270_v54 = vmul.f32 0.0013020834, %v796_v40  ;;  %v4286_v40 = vmul.f32 %v4256_v39, %v4256_v39 }
 0x169   : > { %5811 = vst [vmem:[#allocation87_spill] sm:$0xff] %v4270_v54  ;;  %v4307_v32 = vmul.f32 %v4270_v54, %v4270_v54 }
 0x16a   : > { %v817_v19 = vpop.xlane.xlu1 %816 }
 0x16b   : > { %v4278_v26 = vmul.f32 0.0013020834, %v817_v19 }
 0x16d   : > { %5812 = vst [vmem:[#allocation98_spill] sm:$0xff] %v4278_v26 }
 0x16f   : > { %v4194_v17 = vpop.xlane.xlu0 %809 }
 0x175   : > { %v4196_v35 = vpop.xlane.xlu1 %830 }
 0x176   : > { %v4296_v19 = vmul.f32 0.0013020834, %v4196_v35 }
 0x178   : > { %5814 = vst [vmem:[#allocation166_spill] sm:$0xff] %v4296_v19 }
 0x179   : > { %v4198_v21 = vpop.xlane.xlu0 %823 }
 0x17a   : > { %v4299_v41 = vmul.f32 0.0013020834, %v4198_v21 }
 0x17c   : > { %5815 = vst [vmem:[#allocation167_spill] sm:$0xff] %v4299_v41 }
 0x17e   : > { %v4200_v63 = vpop.xlane.xlu1 %844 }
 0x17f   : > { %v4310_v35 = vmul.f32 0.0013020834, %v4200_v63 }
 0x181   : > { %5816 = vst [vmem:[#allocation168_spill] sm:$0xff] %v4310_v35 }
 0x183   : > { %v4202_v8 = vpop.xlane.xlu0 %837 }
 0x184   : > { %v4313_v21 = vmul.f32 0.0013020834, %v4202_v8 }
 0x186   : > { %5817 = vst [vmem:[#allocation169_spill] sm:$0xff] %v4313_v21 }
 0x189   : > { %v4204_v34 = vpop.xlane.xlu1 %858 }
 0x18d   : > { %v4206_v0 = vpop.xlane.xlu0 %851 }
 0x193   : > { %v4208_v14 = vpop.xlane.xlu1 %872 }
 0x198   : > { %v4210_v42 = vpop.xlane.xlu0 %865 }
 0x19d   : > { %v4212_v49 = vpop.xlane.xlu1 %886 }
 0x1a1   : > { %v4242_v44 = vpop.xlane.xlu0 %879  ;;  %v1045_v15 = vpop.xlane.xlu1 %1044 }
 0x1a2   : > { %v1225_v52 = vmul.f32 0.0013020834, %v1045_v15  ;;  %v4268_v15 = vmul.f32 0.0013020834, %v803_v45  ;;  %v4282_v45 = vmul.f32 %v4254_v5, %v4254_v5 }
 0x1a4   : > { %v1273_v57 = vsub.f32 %v1225_v52, %v1249_v11  ;;  %5810 = vst [vmem:[#allocation90_spill] sm:$0xff] %v4268_v15  ;;  %v4303_v53 = vmul.f32 %v4268_v15, %v4268_v15 }
 0x1a5   : > { %v1038_v1 = vpop.xlane.xlu0 %1037  ;;  %v1059_v7 = vpop.xlane.xlu1 %1058 }
 0x1a6   : > { %v1297_v58 = vmax.f32 %v1273_v57, 0.0  ;;  %v1224_v52 = vmul.f32 0.0013020834, %v1038_v1  ;;  %v1227_v11 = vmul.f32 0.0013020834, %v1059_v7 }
 0x1a7   : > { %v4293_v57 = vmul.f32 0.0013020834, %v4194_v17 }
 0x1a8   : > { %v1321_v7 = vadd.f32 1e-12, %v1297_v58  ;;  %v1272_v1 = vsub.f32 %v1224_v52, %v1248_v13  ;;  %v1275_v22 = vsub.f32 %v1227_v11, %v1251_v43  ;;  %v4317_v52 = vmul.f32 %v4278_v26, %v4278_v26 }
 0x1a9   : > { %5813 = vst [vmem:[#allocation91_spill] sm:$0xff] %v4293_v57  ;;  %v1052_v47 = vpop.xlane.xlu0 %1051  ;;  %v1073_v6 = vpop.xlane.xlu1 %1072  ;;  %v4320_v11 = vmul.f32 0.0013020834, %v4204_v34 }
 0x1aa   : > { %2524 = vrsqrt.f32 %v1321_v7  ;;  %v1296_v17 = vmax.f32 %v1272_v1, 0.0  ;;  %v1299_v13 = vmax.f32 %v1275_v22, 0.0  ;;  %v1226_v43 = vmul.f32 0.0013020834, %v1052_v47 }
 0x1ab   : > { %v1229_v58 = vmul.f32 0.0013020834, %v1073_v6  ;;  %5818 = vst [vmem:[#allocation170_spill] sm:$0xff] %v4320_v11  ;;  %v4324_v22 = vmul.f32 %v4293_v57, %v4293_v57  ;;  %v4327_v47 = vmul.f32 0.0013020834, %v4206_v0  ;;  %v4331_v1 = vmul.f32 %v4296_v19, %v4296_v19 }
 0x1ac   : > { %v1320_v54 = vadd.f32 1e-12, %v1296_v17  ;;  %v1274_v15 = vsub.f32 %v1226_v43, %v1250_v23  ;;  %v1323_v63 = vadd.f32 1e-12, %v1299_v13  ;;  %v4335_v43 = vmul.f32 %v4299_v41, %v4299_v41  ;;  %v5828_v41 = vld [vmem:[#allocation39_spill] sm:$0xff] }
 0x1ad   : > { %5819 = vst [vmem:[#allocation171_spill] sm:$0xff] %v4327_v47  ;;  %v1277_v8 = vsub.f32 %v1229_v58, %v1253_v25  ;;  %v1066_v7 = vpop.xlane.xlu0 %1065  ;;  %v1087_v6 = vpop.xlane.xlu1 %1086  ;;  %v4339_v0 = vmul.f32 %v4310_v35, %v4310_v35  ;;  %v4343_v25 = vmul.f32 %v4313_v21, %v4313_v21  ;;  %v4354_v35 = vmul.f32 %v4327_v47, %v4327_v47 }
 0x1ae   : > { %2526 = vrsqrt.f32 %v1320_v54  ;;  %v1298_v34 = vmax.f32 %v1274_v15, 0.0  ;;  %v1228_v26 = vmul.f32 0.0013020834, %v1066_v7  ;;  %v1231_v17 = vmul.f32 0.0013020834, %v1087_v6 }
 0x1af   : > { %v1301_v23 = vmax.f32 %v1277_v8, 0.0  ;;  %5820 = vst [vmem:[#allocation172_spill] sm:$0xff] %v4339_v0  ;;  %5821 = vst [vmem:[#allocation173_spill] sm:$0xff] %v4343_v25  ;;  %v4347_v15 = vmul.f32 %v4320_v11, %v4320_v11  ;;  %v4350_v54 = vmul.f32 0.0013020834, %v4208_v14  ;;  %2528 = vrsqrt.f32 %v1323_v63 }
 0x1b0   : > { %v1322_v13 = vadd.f32 1e-12, %v1298_v34  ;;  %v1276_v58 = vsub.f32 %v1228_v26, %v1252_v28  ;;  %v1279_v19 = vsub.f32 %v1231_v17, %v1255_v10  ;;  %5823 = vst [vmem:[#allocation175_spill] sm:$0xff] %v4354_v35  ;;  %v4357_v10 = vmul.f32 0.0013020834, %v4210_v42 }
 0x1b1   : > { %5822 = vst [vmem:[#allocation174_spill] sm:$0xff] %v4347_v15  ;;  %v1325_v8 = vadd.f32 1e-12, %v1301_v23  ;;  %v1080_v7 = vpop.xlane.xlu0 %1079  ;;  %v1101_v6 = vpop.xlane.xlu1 %1100  ;;  %v4360_v28 = vmul.f32 0.0013020834, %v4212_v49  ;;  %v5830_v15 = vld [vmem:[#allocation43_spill] sm:$0xff] }
 0x1b2   : > { %2530 = vrsqrt.f32 %v1322_v13  ;;  %v1300_v21 = vmax.f32 %v1276_v58, 0.0  ;;  %v1303_v34 = vmax.f32 %v1279_v19, 0.0  ;;  %v1230_v26 = vmul.f32 0.0013020834, %v1080_v7  ;;  %v5825_v7 = vld [vmem:[#allocation35_spill] sm:$0xff] }
 0x1b3   : > { %v4363_v14 = vmul.f32 0.0013020834, %v4242_v44  ;;  %2532 = vrsqrt.f32 %v1325_v8  ;;  %v4368_v13 = vmul.f32 0.0013020834, %v1101_v6 }
 0x1b4   : > { %v2525_v63 = vpop.eup %2524  ;;  %v1324_v17 = vadd.f32 1e-12, %v1300_v21  ;;  %v4365_v23 = vadd.f32 1e-12, %v1303_v34  ;;  %v1278_v47 = vsub.f32 %v1230_v26, %v4282_v45  ;;  %v5826_v45 = vld [vmem:[#allocation36_spill] sm:$0xff]  ;;  %v5827_v26 = vld [vmem:[#allocation38_spill] sm:$0xff] }
 0x1b5   : > { %5824 = vst [vmem:[#allocation176_spill] sm:$0xff] %v4363_v14  ;;  %v1407_v19 = vmul.f32 %v2525_v63, %v4216_v46  ;;  %v1408_v42 = vmul.f32 %v2525_v63, %v4218_v12  ;;  %v1409_v58 = vmul.f32 %v2525_v63, %v4220_v30  ;;  %v1410_v49 = vmul.f32 %v2525_v63, %v4222_v20 }
 0x1b6   : > { %v1411_v44 = vmul.f32 %v2525_v63, %v4224_v29  ;;  %v1412_v8 = vmul.f32 %v2525_v63, %v4226_v4  ;;  %2534 = vrsqrt.f32 %v1324_v17  ;;  %v4376_v21 = vmax.f32 %v1278_v47, 0.0 }
 0x1b7   : > { %v1551_v34 = vmul.f32 %v1407_v19, %v5825_v7  ;;  %v1552_v6 = vmul.f32 %v1408_v42, %v5826_v45  ;;  %v1553_v11 = vmul.f32 %v1409_v58, %v5827_v26  ;;  %v1554_v57 = vmul.f32 %v1410_v49, %v5828_v41 }
 0x1b8   : > { %v2527_v50 = vpop.eup %2526  ;;  %v1555_v35 = vmul.f32 %v1411_v44, %v5829_v38  ;;  %v1556_v25 = vmul.f32 %v1412_v8, %v5830_v15  ;;  %v1695_v0 = vmul.f32 %v1407_v19, %v4214_v56  ;;  %v1696_v63 = vmul.f32 %v1408_v42, %v4214_v56 }
 0x1b9   : > { %v1697_v47 = vmul.f32 %v1409_v58, %v4214_v56  ;;  %v1698_v17 = vmul.f32 %v1410_v49, %v4214_v56  ;;  %v1699_v7 = vmul.f32 %v1411_v44, %v4214_v56  ;;  %v1700_v45 = vmul.f32 %v1412_v8, %v4214_v56  ;;  %v2529_v19 = vpop.eup %2528 }
 0x1ba   : > { %v1870_v26 = vsub.f32 %v4228_v33, %v1695_v0  ;;  %v1871_v41 = vsub.f32 %v4236_v2, %v1696_v63  ;;  %v1401_v38 = vmul.f32 %v2527_v50, %v4216_v46  ;;  %v1402_v15 = vmul.f32 %v2527_v50, %v4218_v12 }
 0x1bb   : > { %v1872_v42 = vsub.f32 %v4244_v37, %v1697_v47  ;;  %v1873_v58 = vsub.f32 %v4246_v18, %v1698_v17  ;;  %v1874_v49 = vsub.f32 %v4250_v59, %v1699_v7  ;;  %v1875_v44 = vsub.f32 %v4260_v62, %v1700_v45  ;;  %v5831_v17 = vld [vmem:[#allocation23_spill] sm:$0xff] }
 0x1bc   : > { %v4398_v14 = vpop.eup %2530  ;;  %v2014_v56 = vadd.f32 %v1870_v26, %v1551_v34  ;;  %v2015_v0 = vadd.f32 %v1871_v41, %v1552_v6  ;;  %v1403_v8 = vmul.f32 %v2527_v50, %v4220_v30  ;;  %v1404_v63 = vmul.f32 %v2527_v50, %v4222_v20  ;;  %v5834_v45 = vld [vmem:[#allocation27_spill] sm:$0xff] }
 0x1bd   : > { %v4402_v60 = vpop.eup %2532  ;;  %v2016_v24 = vadd.f32 %v1872_v42, %v1553_v11  ;;  %v2017_v36 = vadd.f32 %v1873_v58, %v1554_v57  ;;  %v2018_v27 = vadd.f32 %v1874_v49, %v1555_v35  ;;  %v2019_v47 = vadd.f32 %v1875_v44, %v1556_v25  ;;  %v5832_v11 = vld [vmem:[#allocation24_spill] sm:$0xff]  ;;  %v5833_v35 = vld [vmem:[#allocation25_spill] sm:$0xff]  ;;  %v5836_v44 = vld [vmem:[#allocation31_spill] sm:$0xff] }
 0x1be   : > { %2158 = vst [vmem:[%s4405_s28 + $0x30] sm:$0xff] %v2014_v56  ;;  %2159 = vst [vmem:[%s4405_s28 + $0x38] sm:$0xff] %v2015_v0  ;;  %v1405_v34 = vmul.f32 %v2527_v50, %v4224_v29  ;;  %v1406_v6 = vmul.f32 %v2527_v50, %v4226_v4  ;;  %v1545_v7 = vmul.f32 %v1401_v38, %v5831_v17  ;;  %v5835_v49 = vld [vmem:[#allocation28_spill] sm:$0xff]  ;;  %2536 = vrsqrt.f32 %v4365_v23 }
 0x1bf   : > { %v1546_v57 = vmul.f32 %v1402_v15, %v5832_v11  ;;  %2160 = vst [vmem:[%s4405_s28 + $0x40] sm:$0xff] %v2016_v24  ;;  %2161 = vst [vmem:[%s4405_s28 + $0x48] sm:$0xff] %v2017_v36  ;;  %v1547_v25 = vmul.f32 %v1403_v8, %v5833_v35  ;;  %v1548_v26 = vmul.f32 %v1404_v63, %v5834_v45 }
 0x1c0   : > { %2162 = vst [vmem:[%s4405_s28 + $0x50] sm:$0xff] %v2018_v27  ;;  %2163 = vst [vmem:[%s4405_s28 + $0x58] sm:$0xff] %v2019_v47  ;;  %v1689_v41 = vmul.f32 %v1401_v38, %v4232_v31  ;;  %v1690_v42 = vmul.f32 %v1402_v15, %v4232_v31  ;;  %v4421_v58 = vpop.eup %2534  ;;  %v1549_v50 = vmul.f32 %v1405_v34, %v5835_v49 }
 0x1c1   : > { %v1550_v56 = vmul.f32 %v1406_v6, %v5836_v44  ;;  %v1691_v0 = vmul.f32 %v1403_v8, %v4232_v31  ;;  %v1692_v24 = vmul.f32 %v1404_v63, %v4232_v31  ;;  %v1693_v36 = vmul.f32 %v1405_v34, %v4232_v31 }
 0x1c2   : > { %v1694_v27 = vmul.f32 %v1406_v6, %v4232_v31  ;;  %v1864_v47 = vsub.f32 %v4228_v33, %v1689_v41  ;;  %v1865_v38 = vsub.f32 %v4236_v2, %v1690_v42  ;;  %v1419_v11 = vmul.f32 %v2529_v19, %v4216_v46 }
 0x1c3   : > { %v1866_v15 = vsub.f32 %v4244_v37, %v1691_v0  ;;  %v1867_v17 = vsub.f32 %v4246_v18, %v1692_v24  ;;  %v1420_v8 = vmul.f32 %v2529_v19, %v4218_v12  ;;  %v1868_v63 = vsub.f32 %v4250_v59, %v1693_v36 }
 0x1c4   : > { %v1869_v31 = vsub.f32 %v4260_v62, %v1694_v27  ;;  %v2008_v34 = vadd.f32 %v1864_v47, %v1545_v7  ;;  %v2009_v6 = vadd.f32 %v1865_v38, %v1546_v57  ;;  %v1421_v41 = vmul.f32 %v2529_v19, %v4220_v30  ;;  %v5837_v7 = vld [vmem:[#allocation29_spill] sm:$0xff] }
 0x1c5   : > { %v2010_v35 = vadd.f32 %v1866_v15, %v1547_v25  ;;  %v2011_v45 = vadd.f32 %v1867_v17, %v1548_v26  ;;  %v1422_v42 = vmul.f32 %v2529_v19, %v4222_v20  ;;  %v2012_v49 = vadd.f32 %v1868_v63, %v1549_v50  ;;  %v5838_v25 = vld [vmem:[#allocation30_spill] sm:$0xff]  ;;  %v5839_v26 = vld [vmem:[#allocation32_spill] sm:$0xff]  ;;  %v5840_v47 = vld [vmem:[#allocation33_spill] sm:$0xff] }
 0x1c6   : > { %v2013_v44 = vadd.f32 %v1869_v31, %v1550_v56  ;;  %2152 = vst [vmem:[%s4405_s28] sm:$0xff] %v2008_v34  ;;  %2153 = vst [vmem:[%s4405_s28 + $0x8] sm:$0xff] %v2009_v6  ;;  %v1423_v0 = vmul.f32 %v2529_v19, %v4224_v29  ;;  %v1424_v24 = vmul.f32 %v2529_v19, %v4226_v4  ;;  %v5841_v50 = vld [vmem:[#allocation34_spill] sm:$0xff]  ;;  %v5842_v15 = vld [vmem:[#allocation37_spill] sm:$0xff] }
 0x1c7   : > { %2154 = vst [vmem:[%s4405_s28 + $0x10] sm:$0xff] %v2010_v35  ;;  %2155 = vst [vmem:[%s4405_s28 + $0x18] sm:$0xff] %v2011_v45  ;;  %v1563_v57 = vmul.f32 %v1419_v11, %v5837_v7  ;;  %v1564_v36 = vmul.f32 %v1420_v8, %v5838_v25  ;;  %v1565_v27 = vmul.f32 %v1421_v41, %v5839_v26 }
 0x1c8   : > { %v1566_v38 = vmul.f32 %v1422_v42, %v5840_v47  ;;  %2156 = vst [vmem:[%s4405_s28 + $0x20] sm:$0xff] %v2012_v49  ;;  %2157 = vst [vmem:[%s4405_s28 + $0x28] sm:$0xff] %v2013_v44  ;;  %v1567_v56 = vmul.f32 %v1423_v0, %v5841_v50  ;;  %v1568_v17 = vmul.f32 %v1424_v24, %v5842_v15 }
 0x1c9   : > { %v1707_v63 = vmul.f32 %v1419_v11, %v4234_v55  ;;  %v1708_v19 = vmul.f32 %v1420_v8, %v4234_v55  ;;  %v1709_v31 = vmul.f32 %v1421_v41, %v4234_v55  ;;  %v1710_v34 = vmul.f32 %v1422_v42, %v4234_v55 }
 0x1ca   : > { %v1711_v6 = vmul.f32 %v1423_v0, %v4234_v55  ;;  %v1712_v35 = vmul.f32 %v1424_v24, %v4234_v55  ;;  %v1413_v44 = vmul.f32 %v4398_v14, %v4216_v46  ;;  %v1414_v11 = vmul.f32 %v4398_v14, %v4218_v12 }
 0x1cb   : > { %v1882_v45 = vsub.f32 %v4228_v33, %v1707_v63  ;;  %v1883_v49 = vsub.f32 %v4236_v2, %v1708_v19  ;;  %v1884_v8 = vsub.f32 %v4244_v37, %v1709_v31  ;;  %v1885_v41 = vsub.f32 %v4246_v18, %v1710_v34  ;;  %v5844_v31 = vld [vmem:[#allocation19_spill] sm:$0xff] }
 0x1cc   : > { %v1886_v42 = vsub.f32 %v4250_v59, %v1711_v6  ;;  %v1887_v55 = vsub.f32 %v4260_v62, %v1712_v35  ;;  %v1415_v7 = vmul.f32 %v4398_v14, %v4220_v30  ;;  %v1416_v25 = vmul.f32 %v4398_v14, %v4222_v20 }
 0x1cd   : > { %v2026_v0 = vadd.f32 %v1882_v45, %v1563_v57  ;;  %v2027_v24 = vadd.f32 %v1883_v49, %v1564_v36  ;;  %v2028_v26 = vadd.f32 %v1884_v8, %v1565_v27  ;;  %v2029_v47 = vadd.f32 %v1885_v41, %v1566_v38  ;;  %v5843_v36 = vld [vmem:[#allocation18_spill] sm:$0xff]  ;;  %v5845_v27 = vld [vmem:[#allocation20_spill] sm:$0xff] }
 0x1ce   : > { %v2030_v50 = vadd.f32 %v1886_v42, %v1567_v56  ;;  %v2031_v15 = vadd.f32 %v1887_v55, %v1568_v17  ;;  %v1417_v63 = vmul.f32 %v4398_v14, %v4224_v29  ;;  %v1418_v57 = vmul.f32 %v4398_v14, %v4226_v4  ;;  %v5846_v56 = vld [vmem:[#allocation21_spill] sm:$0xff]  ;;  %v5847_v45 = vld [vmem:[#allocation22_spill] sm:$0xff] }
 0x1cf   : > { %2170 = vst [vmem:[%s4405_s28 + $0x90] sm:$0xff] %v2026_v0  ;;  %2171 = vst [vmem:[%s4405_s28 + $0x98] sm:$0xff] %v2027_v24  ;;  %v1557_v19 = vmul.f32 %v1413_v44, %v5843_v36  ;;  %v1558_v34 = vmul.f32 %v1414_v11, %v5844_v31  ;;  %v1559_v38 = vmul.f32 %v1415_v7, %v5845_v27  ;;  %v5848_v8 = vld [vmem:[#allocation26_spill] sm:$0xff] }
 0x1d0   : > { %2172 = vst [vmem:[%s4405_s28 + $0xa0] sm:$0xff] %v2028_v26  ;;  %2173 = vst [vmem:[%s4405_s28 + $0xa8] sm:$0xff] %v2029_v47  ;;  %v1560_v17 = vmul.f32 %v1416_v25, %v5846_v56  ;;  %v1701_v6 = vmul.f32 %v1413_v44, %v4230_v61  ;;  %v1702_v35 = vmul.f32 %v1414_v11, %v4230_v61 }
 0x1d1   : > { %2174 = vst [vmem:[%s4405_s28 + $0xb0] sm:$0xff] %v2030_v50  ;;  %2175 = vst [vmem:[%s4405_s28 + $0xb8] sm:$0xff] %v2031_v15  ;;  %v1561_v49 = vmul.f32 %v1417_v63, %v5847_v45  ;;  %v1562_v14 = vmul.f32 %v1418_v57, %v5848_v8  ;;  %v1703_v41 = vmul.f32 %v1415_v7, %v4230_v61  ;;  %v5851_v8 = vld [vmem:[#allocation44_spill] sm:$0xff] }
 0x1d2   : > { %v1704_v42 = vmul.f32 %v1416_v25, %v4230_v61  ;;  %v1705_v55 = vmul.f32 %v1417_v63, %v4230_v61  ;;  %v1706_v0 = vmul.f32 %v1418_v57, %v4230_v61  ;;  %v1876_v24 = vsub.f32 %v4228_v33, %v1701_v6  ;;  %v4503_v25 = vpop.xlane.xlu0 %1093 }
 0x1d3   : > { %v1877_v26 = vsub.f32 %v4236_v2, %v1702_v35  ;;  %v1878_v44 = vsub.f32 %v4244_v37, %v1703_v41  ;;  %v1431_v47 = vmul.f32 %v4402_v60, %v4216_v46  ;;  %v1432_v7 = vmul.f32 %v4402_v60, %v4218_v12 }
 0x1d4   : > { %v1879_v11 = vsub.f32 %v4246_v18, %v1704_v42  ;;  %v1880_v61 = vsub.f32 %v4250_v59, %v1705_v55  ;;  %v1881_v50 = vsub.f32 %v4260_v62, %v1706_v0  ;;  %v2020_v15 = vadd.f32 %v1876_v24, %v1557_v19  ;;  %v5852_v42 = vld [vmem:[#allocation45_spill] sm:$0xff] }
 0x1d5   : > { %v2021_v63 = vadd.f32 %v1877_v26, %v1558_v34  ;;  %v2022_v57 = vadd.f32 %v1878_v44, %v1559_v38  ;;  %v1433_v31 = vmul.f32 %v4402_v60, %v4220_v30  ;;  %v1434_v27 = vmul.f32 %v4402_v60, %v4222_v20  ;;  %v5849_v34 = vld [vmem:[#allocation41_spill] sm:$0xff]  ;;  %v4529_v44 = vpop.xlane.xlu1 %1114 }
 0x1d6   : > { %v2023_v36 = vadd.f32 %v1879_v11, %v1560_v17  ;;  %v2024_v56 = vadd.f32 %v1880_v61, %v1561_v49  ;;  %v2025_v6 = vadd.f32 %v1881_v50, %v1562_v14  ;;  %2164 = vst [vmem:[%s4405_s28 + $0x60] sm:$0xff] %v2020_v15  ;;  %v1435_v35 = vmul.f32 %v4402_v60, %v4224_v29  ;;  %v5850_v17 = vld [vmem:[#allocation42_spill] sm:$0xff]  ;;  %v5854_v0 = vld [vmem:[#allocation49_spill] sm:$0xff] }
 0x1d7   : > { %2165 = vst [vmem:[%s4405_s28 + $0x68] sm:$0xff] %v2021_v63  ;;  %v1436_v19 = vmul.f32 %v4402_v60, %v4226_v4  ;;  %2166 = vst [vmem:[%s4405_s28 + $0x70] sm:$0xff] %v2022_v57  ;;  %v1575_v38 = vmul.f32 %v1431_v47, %v5849_v34  ;;  %v1576_v45 = vmul.f32 %v1432_v7, %v5850_v17  ;;  %v5853_v49 = vld [vmem:[#allocation46_spill] sm:$0xff]  ;;  %v4535_v63 = vpop.xlane.xlu0 %1107 }
 0x1d8   : > { %2167 = vst [vmem:[%s4405_s28 + $0x78] sm:$0xff] %v2023_v36  ;;  %v1577_v41 = vmul.f32 %v1433_v31, %v5851_v8  ;;  %v1578_v55 = vmul.f32 %v1434_v27, %v5852_v42  ;;  %2168 = vst [vmem:[%s4405_s28 + $0x80] sm:$0xff] %v2024_v56  ;;  %v1579_v14 = vmul.f32 %v1435_v35, %v5853_v49 }
 0x1d9   : > { %2169 = vst [vmem:[%s4405_s28 + $0x88] sm:$0xff] %v2025_v6  ;;  %v1580_v24 = vmul.f32 %v1436_v19, %v5854_v0  ;;  %v1719_v26 = vmul.f32 %v1431_v47, %v4238_v3  ;;  %v1720_v60 = vmul.f32 %v1432_v7, %v4238_v3  ;;  %v1721_v11 = vmul.f32 %v1433_v31, %v4238_v3 }
 0x1da   : > { %v1722_v61 = vmul.f32 %v1434_v27, %v4238_v3  ;;  %v1723_v50 = vmul.f32 %v1435_v35, %v4238_v3  ;;  %v1724_v15 = vmul.f32 %v1436_v19, %v4238_v3  ;;  %v1425_v47 = vmul.f32 %v4421_v58, %v4216_v46 }
 0x1db   : > { %v1894_v57 = vsub.f32 %v4228_v33, %v1719_v26  ;;  %v1895_v36 = vsub.f32 %v4236_v2, %v1720_v60  ;;  %v1426_v7 = vmul.f32 %v4421_v58, %v4218_v12  ;;  %v1896_v31 = vsub.f32 %v4244_v37, %v1721_v11  ;;  %v5856_v60 = vld [vmem:[#allocation48_spill] sm:$0xff] }
 0x1dc   : > { %v1897_v27 = vsub.f32 %v4246_v18, %v1722_v61  ;;  %v1898_v3 = vsub.f32 %v4250_v59, %v1723_v50  ;;  %v1899_v56 = vsub.f32 %v4260_v62, %v1724_v15  ;;  %v1427_v19 = vmul.f32 %v4421_v58, %v4220_v30  ;;  %v1129_v61 = vpop.xlane.xlu1 %1128 }
 0x1dd   : > { %v2038_v6 = vadd.f32 %v1894_v57, %v1575_v38  ;;  %v2039_v35 = vadd.f32 %v1895_v36, %v1576_v45  ;;  %v1428_v34 = vmul.f32 %v4421_v58, %v4222_v20  ;;  %v2040_v17 = vadd.f32 %v1896_v31, %v1577_v41  ;;  %v5855_v45 = vld [vmem:[#allocation47_spill] sm:$0xff]  ;;  %v5857_v41 = vld [vmem:[#allocation50_spill] sm:$0xff]  ;;  %v1122_v57 = vpop.xlane.xlu0 %1121  ;;  %v5859_v36 = vld [vmem:[#allocation52_spill] sm:$0xff] }
 0x1de   : > { %v2041_v8 = vadd.f32 %v1897_v27, %v1578_v55  ;;  %v2042_v42 = vadd.f32 %v1898_v3, %v1579_v14  ;;  %v2043_v49 = vadd.f32 %v1899_v56, %v1580_v24  ;;  %v1429_v0 = vmul.f32 %v4421_v58, %v4224_v29  ;;  %v5858_v14 = vld [vmem:[#allocation51_spill] sm:$0xff] }
 0x1df   : > { %2182 = vst [vmem:[%s4405_s28 + $0xf0] sm:$0xff] %v2038_v6  ;;  %2183 = vst [vmem:[%s4405_s28 + $0xf8] sm:$0xff] %v2039_v35  ;;  %v1430_v38 = vmul.f32 %v4421_v58, %v4226_v4  ;;  %v1569_v26 = vmul.f32 %v1425_v47, %v5855_v45  ;;  %v1570_v11 = vmul.f32 %v1426_v7, %v5856_v60  ;;  %v5860_v31 = vld [vmem:[#allocation55_spill] sm:$0xff] }
 0x1e0   : > { %2184 = vst [vmem:[%s4405_s28 + $0x100] sm:$0xff] %v2040_v17  ;;  %2185 = vst [vmem:[%s4405_s28 + $0x108] sm:$0xff] %v2041_v8  ;;  %v1571_v55 = vmul.f32 %v1427_v19, %v5857_v41  ;;  %v1572_v24 = vmul.f32 %v1428_v34, %v5858_v14  ;;  %v1713_v50 = vmul.f32 %v1425_v47, %v4240_v9  ;;  %v1143_v60 = vpop.xlane.xlu1 %1142  ;;  %v1235_v14 = vmul.f32 0.0013020834, %v4529_v44 }
 0x1e1   : > { %2186 = vst [vmem:[%s4405_s28 + $0x110] sm:$0xff] %v2042_v42  ;;  %2187 = vst [vmem:[%s4405_s28 + $0x118] sm:$0xff] %v2043_v49  ;;  %v1714_v15 = vmul.f32 %v1426_v7, %v4240_v9  ;;  %v1573_v58 = vmul.f32 %v1429_v0, %v5859_v36  ;;  %v1574_v27 = vmul.f32 %v1430_v38, %v5860_v31 }
 0x1e2   : > { %v1715_v3 = vmul.f32 %v1427_v19, %v4240_v9  ;;  %v1716_v56 = vmul.f32 %v1428_v34, %v4240_v9  ;;  %v1717_v6 = vmul.f32 %v1429_v0, %v4240_v9  ;;  %v1718_v35 = vmul.f32 %v1430_v38, %v4240_v9 }
 0x1e3   : > { %v1888_v17 = vsub.f32 %v4228_v33, %v1713_v50  ;;  %v1889_v8 = vsub.f32 %v4236_v2, %v1714_v15  ;;  %v1326_v19 = vadd.f32 1e-12, %v4376_v21  ;;  %v1281_v45 = vsub.f32 %v4368_v13, %v4286_v40  ;;  %v1136_v50 = vpop.xlane.xlu0 %1135 }
 0x1e4   : > { %v1890_v47 = vsub.f32 %v4244_v37, %v1715_v3  ;;  %v1891_v7 = vsub.f32 %v4246_v18, %v1716_v56  ;;  %v1892_v34 = vsub.f32 %v4250_v59, %v1717_v6  ;;  %v1893_v42 = vsub.f32 %v4260_v62, %v1718_v35  ;;  %v2537_v35 = vpop.eup %2536 }
 0x1e5   : > { %v2032_v9 = vadd.f32 %v1888_v17, %v1569_v26  ;;  %v2033_v49 = vadd.f32 %v1889_v8, %v1570_v11  ;;  %2538 = vrsqrt.f32 %v1326_v19  ;;  %v1232_v21 = vmul.f32 0.0013020834, %v4503_v25 }
 0x1e6   : > { %v2034_v0 = vadd.f32 %v1890_v47, %v1571_v55  ;;  %v2035_v38 = vadd.f32 %v1891_v7, %v1572_v24  ;;  %v2036_v23 = vadd.f32 %v1892_v34, %v1573_v58  ;;  %v2037_v41 = vadd.f32 %v1893_v42, %v1574_v27 }
 0x1e7   : > { %2176 = vst [vmem:[%s4405_s28 + $0xc0] sm:$0xff] %v2032_v9  ;;  %2177 = vst [vmem:[%s4405_s28 + $0xc8] sm:$0xff] %v2033_v49  ;;  %v1305_v26 = vmax.f32 %v1281_v45, 0.0  ;;  %v1234_v11 = vmul.f32 0.0013020834, %v4535_v63  ;;  %v4592_v40 = vmul.f32 %v4350_v54, %v4350_v54  ;;  %v1280_v13 = vsub.f32 %v1232_v21, %v4290_v51  ;;  %v5862_v45 = vld [vmem:[#allocation54_spill] sm:$0xff] }
 0x1e8   : > { %2178 = vst [vmem:[%s4405_s28 + $0xd0] sm:$0xff] %v2034_v0  ;;  %2179 = vst [vmem:[%s4405_s28 + $0xd8] sm:$0xff] %v2035_v38  ;;  %v1237_v55 = vmul.f32 0.0013020834, %v1129_v61  ;;  %v1283_v24 = vsub.f32 %v1235_v14, %v4303_v53  ;;  %v1236_v25 = vmul.f32 0.0013020834, %v1122_v57  ;;  %v4605_v53 = vmul.f32 %v4357_v10, %v4357_v10 }
 0x1e9   : > { %2180 = vst [vmem:[%s4405_s28 + $0xe0] sm:$0xff] %v2036_v23  ;;  %2181 = vst [vmem:[%s4405_s28 + $0xe8] sm:$0xff] %v2037_v41  ;;  %v1239_v15 = vmul.f32 0.0013020834, %v1143_v60  ;;  %v1329_v44 = vadd.f32 1e-12, %v1305_v26  ;;  %v1282_v36 = vsub.f32 %v1234_v11, %v4307_v32  ;;  %v1443_v8 = vmul.f32 %v2537_v35, %v4216_v46 }
 0x1ea   : > { %v1285_v58 = vsub.f32 %v1237_v55, %v4317_v52  ;;  %v1238_v31 = vmul.f32 0.0013020834, %v1136_v50  ;;  %v1304_v63 = vmax.f32 %v1280_v13, 0.0  ;;  %v1307_v61 = vmax.f32 %v1283_v24, 0.0  ;;  %v5861_v0 = vld [vmem:[#allocation53_spill] sm:$0xff]  ;;  %v5863_v23 = vld [vmem:[#allocation56_spill] sm:$0xff] }
 0x1eb   : > { %v1284_v27 = vsub.f32 %v1236_v25, %v4324_v22  ;;  %v1287_v3 = vsub.f32 %v1239_v15, %v4331_v1  ;;  %v1306_v56 = vmax.f32 %v1282_v36, 0.0  ;;  %2540 = vrsqrt.f32 %v1329_v44  ;;  %v5864_v21 = vld [vmem:[#allocation57_spill] sm:$0xff]  ;;  %v5865_v50 = vld [vmem:[#allocation58_spill] sm:$0xff] }
 0x1ec   : > { %v1309_v6 = vmax.f32 %v1285_v58, 0.0  ;;  %v1286_v51 = vsub.f32 %v1238_v31, %v4335_v43  ;;  %v1328_v57 = vadd.f32 1e-12, %v1304_v63  ;;  %v4607_v32 = vadd.f32 1e-12, %v1307_v61  ;;  %v5866_v11 = vld [vmem:[#allocation61_spill] sm:$0xff] }
 0x1ed   : > { %v4611_v52 = vmul.f32 %v4360_v28, %v4360_v28  ;;  %v4613_v22 = vadd.f32 1e-12, %v1306_v56  ;;  %v4617_v17 = vmax.f32 %v1284_v27, 0.0  ;;  %v4619_v43 = vmax.f32 %v1287_v3, 0.0 }
 0x1ee   : > { %v4615_v1 = vadd.f32 1e-12, %v1309_v6  ;;  %v1444_v47 = vmul.f32 %v2537_v35, %v4218_v12  ;;  %v1445_v7 = vmul.f32 %v2537_v35, %v4220_v30  ;;  %v1446_v19 = vmul.f32 %v2537_v35, %v4222_v20 }
 0x1ef   : > { %v2539_v34 = vpop.eup %2538  ;;  %v1447_v42 = vmul.f32 %v2537_v35, %v4224_v29  ;;  %v1448_v9 = vmul.f32 %v2537_v35, %v4226_v4  ;;  %2542 = vrsqrt.f32 %v1328_v57  ;;  %v4627_v49 = vmax.f32 %v1286_v51, 0.0 }
 0x1f0   : > { %v1587_v38 = vmul.f32 %v1443_v8, %v5861_v0  ;;  %v1588_v60 = vmul.f32 %v1444_v47, %v5862_v45  ;;  %v1589_v41 = vmul.f32 %v1445_v7, %v5863_v23  ;;  %v1590_v14 = vmul.f32 %v1446_v19, %v5864_v21  ;;  %v5869_v21 = vld [vmem:[#allocation62_spill] sm:$0xff] }
 0x1f1   : > { %v1591_v26 = vmul.f32 %v1447_v42, %v5865_v50  ;;  %v1592_v55 = vmul.f32 %v1448_v9, %v5866_v11  ;;  %v1731_v13 = vmul.f32 %v1443_v8, %v4248_v16  ;;  %v1732_v24 = vmul.f32 %v1444_v47, %v4248_v16 }
 0x1f2   : > { %v1733_v25 = vmul.f32 %v1445_v7, %v4248_v16  ;;  %v1734_v15 = vmul.f32 %v1446_v19, %v4248_v16  ;;  %v1735_v44 = vmul.f32 %v1447_v42, %v4248_v16  ;;  %v1736_v36 = vmul.f32 %v1448_v9, %v4248_v16 }
 0x1f3   : > { %v1906_v58 = vsub.f32 %v4228_v33, %v1731_v13  ;;  %v1907_v31 = vsub.f32 %v4236_v2, %v1732_v24  ;;  %v1437_v63 = vmul.f32 %v2539_v34, %v4216_v46  ;;  %v1438_v61 = vmul.f32 %v2539_v34, %v4218_v12  ;;  %v5871_v13 = vld [vmem:[#allocation64_spill] sm:$0xff]  ;;  %v5872_v24 = vld [vmem:[#allocation67_spill] sm:$0xff] }
 0x1f4   : > { %v1908_v27 = vsub.f32 %v4244_v37, %v1733_v25  ;;  %v1909_v3 = vsub.f32 %v4246_v18, %v1734_v15  ;;  %v1910_v56 = vsub.f32 %v4250_v59, %v1735_v44  ;;  %v1911_v6 = vsub.f32 %v4260_v62, %v1736_v36 }
 0x1f5   : > { %v2050_v16 = vadd.f32 %v1906_v58, %v1587_v38  ;;  %v2051_v51 = vadd.f32 %v1907_v31, %v1588_v60  ;;  %v1439_v57 = vmul.f32 %v2539_v34, %v4220_v30  ;;  %v1440_v35 = vmul.f32 %v2539_v34, %v4222_v20  ;;  %v2541_v8 = vpop.eup %2540  ;;  %v5867_v38 = vld [vmem:[#allocation59_spill] sm:$0xff]  ;;  %v5868_v60 = vld [vmem:[#allocation60_spill] sm:$0xff] }
 0x1f6   : > { %v2052_v47 = vadd.f32 %v1908_v27, %v1589_v41  ;;  %v2053_v7 = vadd.f32 %v1909_v3, %v1590_v14  ;;  %v2054_v19 = vadd.f32 %v1910_v56, %v1591_v26  ;;  %v2055_v42 = vadd.f32 %v1911_v6, %v1592_v55  ;;  %v5870_v41 = vld [vmem:[#allocation63_spill] sm:$0xff] }
 0x1f7   : > { %2194 = vst [vmem:[%s4405_s28 + $0x150] sm:$0xff] %v2050_v16  ;;  %2195 = vst [vmem:[%s4405_s28 + $0x158] sm:$0xff] %v2051_v51  ;;  %v1441_v9 = vmul.f32 %v2539_v34, %v4224_v29  ;;  %v1442_v0 = vmul.f32 %v2539_v34, %v4226_v4  ;;  %v1581_v45 = vmul.f32 %v1437_v63, %v5867_v38  ;;  %2544 = vrsqrt.f32 %v4607_v32 }
 0x1f8   : > { %v1582_v23 = vmul.f32 %v1438_v61, %v5868_v60  ;;  %2196 = vst [vmem:[%s4405_s28 + $0x160] sm:$0xff] %v2052_v47  ;;  %2197 = vst [vmem:[%s4405_s28 + $0x168] sm:$0xff] %v2053_v7  ;;  %v1583_v50 = vmul.f32 %v1439_v57, %v5869_v21  ;;  %v1584_v14 = vmul.f32 %v1440_v35, %v5870_v41  ;;  %v5873_v60 = vld [vmem:[#allocation65_spill] sm:$0xff]  ;;  %v5874_v21 = vld [vmem:[#allocation66_spill] sm:$0xff]  ;;  %2546 = vrsqrt.f32 %v4613_v22 }
 0x1f9   : > { %2198 = vst [vmem:[%s4405_s28 + $0x170] sm:$0xff] %v2054_v19  ;;  %2199 = vst [vmem:[%s4405_s28 + $0x178] sm:$0xff] %v2055_v42  ;;  %v1725_v26 = vmul.f32 %v1437_v63, %v4254_v5  ;;  %v1726_v11 = vmul.f32 %v1438_v61, %v4254_v5  ;;  %v4665_v55 = vpop.eup %2542  ;;  %v1585_v34 = vmul.f32 %v1441_v9, %v5871_v13  ;;  %v5875_v41 = vld [vmem:[#allocation68_spill] sm:$0xff]  ;;  %v5877_v13 = vld [vmem:[#allocation70_spill] sm:$0xff]  ;;  %v1334_v32 = vadd.f32 1e-12, %v4627_v49 }
 0x1fa   : > { %v1586_v25 = vmul.f32 %v1442_v0, %v5872_v24  ;;  %v1727_v15 = vmul.f32 %v1439_v57, %v4254_v5  ;;  %v1728_v44 = vmul.f32 %v1440_v35, %v4254_v5  ;;  %v1729_v36 = vmul.f32 %v1441_v9, %v4254_v5  ;;  %v4681_v57 = vpop.xlane.xlu1 %1156 }
 0x1fb   : > { %v1730_v58 = vmul.f32 %v1442_v0, %v4254_v5  ;;  %v1900_v31 = vsub.f32 %v4228_v33, %v1725_v26  ;;  %v1901_v63 = vsub.f32 %v4236_v2, %v1726_v11  ;;  %v1455_v3 = vmul.f32 %v2541_v8, %v4216_v46  ;;  %v5876_v26 = vld [vmem:[#allocation69_spill] sm:$0xff] }
 0x1fc   : > { %v1902_v61 = vsub.f32 %v4244_v37, %v1727_v15  ;;  %v1903_v27 = vsub.f32 %v4246_v18, %v1728_v44  ;;  %v1456_v56 = vmul.f32 %v2541_v8, %v4218_v12  ;;  %v1904_v6 = vsub.f32 %v4250_v59, %v1729_v36 }
 0x1fd   : > { %v1905_v16 = vsub.f32 %v4260_v62, %v1730_v58  ;;  %v2044_v5 = vadd.f32 %v1900_v31, %v1581_v45  ;;  %v2045_v51 = vadd.f32 %v1901_v63, %v1582_v23  ;;  %v1457_v7 = vmul.f32 %v2541_v8, %v4220_v30  ;;  %v4689_v45 = vpop.xlane.xlu0 %1149 }
 0x1fe   : > { %v2046_v35 = vadd.f32 %v1902_v61, %v1583_v50  ;;  %v2047_v47 = vadd.f32 %v1903_v27, %v1584_v14  ;;  %v1458_v19 = vmul.f32 %v2541_v8, %v4222_v20  ;;  %v2048_v42 = vadd.f32 %v1904_v6, %v1585_v34  ;;  %v1171_v27 = vpop.xlane.xlu1 %1170 }
 0x1ff   : > { %v2049_v9 = vadd.f32 %v1905_v16, %v1586_v25  ;;  %2188 = vst [vmem:[%s4405_s28 + $0x120] sm:$0xff] %v2044_v5  ;;  %2189 = vst [vmem:[%s4405_s28 + $0x128] sm:$0xff] %v2045_v51  ;;  %v1459_v0 = vmul.f32 %v2541_v8, %v4224_v29  ;;  %v1460_v38 = vmul.f32 %v2541_v8, %v4226_v4  ;;  %2548 = vrsqrt.f32 %v4615_v1 }
 0x200   : > { %2190 = vst [vmem:[%s4405_s28 + $0x130] sm:$0xff] %v2046_v35  ;;  %2191 = vst [vmem:[%s4405_s28 + $0x138] sm:$0xff] %v2047_v47  ;;  %v1599_v23 = vmul.f32 %v1455_v3, %v5873_v60  ;;  %v1600_v50 = vmul.f32 %v1456_v56, %v5874_v21  ;;  %v1601_v14 = vmul.f32 %v1457_v7, %v5875_v41  ;;  %v5878_v60 = vld [vmem:[#allocation71_spill] sm:$0xff]  ;;  %v1332_v21 = vadd.f32 1e-12, %v4617_v17 }
 0x201   : > { %v1602_v11 = vmul.f32 %v1458_v19, %v5876_v26  ;;  %2192 = vst [vmem:[%s4405_s28 + $0x140] sm:$0xff] %v2048_v42  ;;  %2193 = vst [vmem:[%s4405_s28 + $0x148] sm:$0xff] %v2049_v9  ;;  %v1603_v34 = vmul.f32 %v1459_v0, %v5877_v13  ;;  %v1604_v24 = vmul.f32 %v1460_v38, %v5756_v48  ;;  %v1164_v47 = vpop.xlane.xlu0 %1163 }
 0x202   : > { %v1743_v8 = vmul.f32 %v1455_v3, %v4256_v39  ;;  %v1744_v25 = vmul.f32 %v1456_v56, %v4256_v39  ;;  %v1745_v15 = vmul.f32 %v1457_v7, %v4256_v39  ;;  %v1746_v44 = vmul.f32 %v1458_v19, %v4256_v39 }
 0x203   : > { %v1747_v36 = vmul.f32 %v1459_v0, %v4256_v39  ;;  %v1748_v58 = vmul.f32 %v1460_v38, %v4256_v39  ;;  %v1449_v61 = vmul.f32 %v4665_v55, %v4216_v46  ;;  %v1450_v48 = vmul.f32 %v4665_v55, %v4218_v12 }
 0x204   : > { %v1918_v31 = vsub.f32 %v4228_v33, %v1743_v8  ;;  %v1919_v63 = vsub.f32 %v4236_v2, %v1744_v25  ;;  %v1920_v3 = vsub.f32 %v4244_v37, %v1745_v15  ;;  %v1921_v56 = vsub.f32 %v4246_v18, %v1746_v44  ;;  %v5883_v25 = vld [vmem:[#allocation76_spill] sm:$0xff]  ;;  %v1185_v44 = vpop.xlane.xlu1 %1184 }
 0x205   : > { %v1922_v6 = vsub.f32 %v4250_v59, %v1747_v36  ;;  %v1923_v39 = vsub.f32 %v4260_v62, %v1748_v58  ;;  %v1451_v51 = vmul.f32 %v4665_v55, %v4220_v30  ;;  %v1452_v35 = vmul.f32 %v4665_v55, %v4222_v20 }
 0x206   : > { %v2062_v16 = vadd.f32 %v1918_v31, %v1599_v23  ;;  %v2063_v5 = vadd.f32 %v1919_v63, %v1600_v50  ;;  %v2064_v7 = vadd.f32 %v1920_v3, %v1601_v14  ;;  %v2065_v19 = vadd.f32 %v1921_v56, %v1602_v11  ;;  %v5879_v50 = vld [vmem:[#allocation72_spill] sm:$0xff]  ;;  %v5880_v14 = vld [vmem:[#allocation74_spill] sm:$0xff]  ;;  %v5881_v11 = vld [vmem:[#allocation73_spill] sm:$0xff] }
 0x207   : > { %v2066_v42 = vadd.f32 %v1922_v6, %v1603_v34  ;;  %v2067_v9 = vadd.f32 %v1923_v39, %v1604_v24  ;;  %v1453_v0 = vmul.f32 %v4665_v55, %v4224_v29  ;;  %v1454_v38 = vmul.f32 %v4665_v55, %v4226_v4  ;;  %v5882_v24 = vld [vmem:[#allocation75_spill] sm:$0xff]  ;;  %v1178_v6 = vpop.xlane.xlu0 %1177 }
 0x208   : > { %2206 = vst [vmem:[%s4405_s28 + $0x1b0] sm:$0xff] %v2062_v16  ;;  %2207 = vst [vmem:[%s4405_s28 + $0x1b8] sm:$0xff] %v2063_v5  ;;  %v1593_v23 = vmul.f32 %v1449_v61, %v5878_v60  ;;  %v1594_v41 = vmul.f32 %v1450_v48, %v5879_v50  ;;  %v1595_v26 = vmul.f32 %v1451_v51, %v5880_v14  ;;  %v1243_v60 = vmul.f32 0.0013020834, %v1171_v27  ;;  %v1199_v50 = vpop.xlane.xlu1 %1198  ;;  %v5889_v27 = vld [vmem:[#allocation175_spill] sm:$0xff] }
 0x209   : > { %2208 = vst [vmem:[%s4405_s28 + $0x1c0] sm:$0xff] %v2064_v7  ;;  %2209 = vst [vmem:[%s4405_s28 + $0x1c8] sm:$0xff] %v2065_v19  ;;  %v1737_v13 = vmul.f32 %v1449_v61, %v5881_v11  ;;  %v1738_v34 = vmul.f32 %v1450_v48, %v5881_v11  ;;  %v1596_v8 = vmul.f32 %v1452_v35, %v5882_v24  ;;  %v5884_v61 = vld [vmem:[#allocation79_spill] sm:$0xff]  ;;  %v1335_v19 = vadd.f32 1e-12, %v4619_v43  ;;  %v5886_v43 = vld [vmem:[#allocation172_spill] sm:$0xff] }
 0x20a   : > { %2210 = vst [vmem:[%s4405_s28 + $0x1d0] sm:$0xff] %v2066_v42  ;;  %2211 = vst [vmem:[%s4405_s28 + $0x1d8] sm:$0xff] %v2067_v9  ;;  %v1597_v55 = vmul.f32 %v1453_v0, %v5883_v25  ;;  %v1739_v15 = vmul.f32 %v1451_v51, %v5881_v11  ;;  %v1740_v17 = vmul.f32 %v1452_v35, %v5881_v11  ;;  %v1245_v49 = vmul.f32 0.0013020834, %v1185_v44 }
 0x20b   : > { %v1741_v36 = vmul.f32 %v1453_v0, %v5881_v11  ;;  %v1742_v58 = vmul.f32 %v1454_v38, %v5881_v11  ;;  %v1912_v31 = vsub.f32 %v4228_v33, %v1737_v13  ;;  %v1913_v63 = vsub.f32 %v4236_v2, %v1738_v34  ;;  %v5888_v13 = vld [vmem:[#allocation174_spill] sm:$0xff]  ;;  %v1192_v34 = vpop.xlane.xlu0 %1191 }
 0x20c   : > { %v1598_v48 = vmul.f32 %v1454_v38, %v5884_v61  ;;  %v1914_v3 = vsub.f32 %v4244_v37, %v1739_v15  ;;  %v1915_v56 = vsub.f32 %v4246_v18, %v1740_v17  ;;  %v1241_v0 = vmul.f32 0.0013020834, %v4681_v57  ;;  %v5887_v57 = vld [vmem:[#allocation173_spill] sm:$0xff] }
 0x20d   : > { %v1916_v39 = vsub.f32 %v4250_v59, %v1741_v36  ;;  %v1917_v16 = vsub.f32 %v4260_v62, %v1742_v58  ;;  %v2056_v5 = vadd.f32 %v1912_v31, %v1593_v23  ;;  %v2057_v51 = vadd.f32 %v1913_v63, %v1594_v41  ;;  %v5885_v41 = vld [vmem:[#allocation176_spill] sm:$0xff]  ;;  %v2545_v58 = vpop.eup %2544 }
 0x20e   : > { %v2058_v35 = vadd.f32 %v1914_v3, %v1595_v26  ;;  %v2059_v7 = vadd.f32 %v1915_v56, %v1596_v8  ;;  %v1240_v38 = vmul.f32 0.0013020834, %v4689_v45  ;;  %v1242_v23 = vmul.f32 0.0013020834, %v1164_v47 }
 0x20f   : > { %v2060_v42 = vadd.f32 %v1916_v39, %v1597_v55  ;;  %v2061_v9 = vadd.f32 %v1917_v16, %v1598_v48  ;;  %2200 = vst [vmem:[%s4405_s28 + $0x180] sm:$0xff] %v2056_v5  ;;  %2201 = vst [vmem:[%s4405_s28 + $0x188] sm:$0xff] %v2057_v51  ;;  %v4762_v22 = vmul.f32 %v5885_v41, %v5885_v41  ;;  %v1244_v26 = vmul.f32 0.0013020834, %v1178_v6  ;;  %v2547_v6 = vpop.eup %2546  ;;  %v5890_v51 = vld [vmem:[#allocation77_spill] sm:$0xff] }
 0x210   : > { %2202 = vst [vmem:[%s4405_s28 + $0x190] sm:$0xff] %v2058_v35  ;;  %2203 = vst [vmem:[%s4405_s28 + $0x198] sm:$0xff] %v2059_v7  ;;  %v1289_v14 = vsub.f32 %v1241_v0, %v5886_v43  ;;  %2550 = vrsqrt.f32 %v1332_v21  ;;  %v1288_v11 = vsub.f32 %v1240_v38, %v5887_v57  ;;  %v1291_v45 = vsub.f32 %v1243_v60, %v5888_v13  ;;  %v5891_v7 = vld [vmem:[#allocation78_spill] sm:$0xff] }
 0x211   : > { %2204 = vst [vmem:[%s4405_s28 + $0x1a0] sm:$0xff] %v2060_v42  ;;  %2205 = vst [vmem:[%s4405_s28 + $0x1a8] sm:$0xff] %v2061_v9  ;;  %v1290_v47 = vsub.f32 %v1242_v23, %v5889_v27  ;;  %v1293_v8 = vsub.f32 %v1245_v49, %v4592_v40  ;;  %v1292_v25 = vsub.f32 %v1244_v26, %v4605_v53  ;;  %v4773_v55 = vmul.f32 0.0013020834, %v1199_v50  ;;  %v5892_v42 = vld [vmem:[#allocation80_spill] sm:$0xff]  ;;  %v5894_v38 = vld [vmem:[#allocation82_spill] sm:$0xff]  ;;  %v4803_v26 = vpop.eup %2548 }
 0x212   : > { %v1313_v24 = vmax.f32 %v1289_v14, 0.0  ;;  %2552 = vrsqrt.f32 %v1335_v19  ;;  %v1312_v1 = vmax.f32 %v1288_v11, 0.0  ;;  %v1315_v15 = vmax.f32 %v1291_v45, 0.0  ;;  %v5895_v23 = vld [vmem:[#allocation85_spill] sm:$0xff]  ;;  %v5896_v43 = vld [vmem:[#allocation90_spill] sm:$0xff] }
 0x213   : > { %v1314_v17 = vmax.f32 %v1290_v47, 0.0  ;;  %2554 = vrsqrt.f32 %v1334_v32  ;;  %v4775_v44 = vmax.f32 %v1293_v8, 0.0  ;;  %v4777_v36 = vmul.f32 0.0013020834, %v1192_v34  ;;  %v5893_v32 = vld [vmem:[#allocation81_spill] sm:$0xff] }
 0x214   : > { %v1337_v21 = vadd.f32 1e-12, %v1313_v24  ;;  %v4779_v31 = vadd.f32 1e-12, %v1312_v1  ;;  %v4781_v63 = vadd.f32 1e-12, %v1315_v15  ;;  %v1295_v53 = vsub.f32 %v4773_v55, %v4611_v52 }
 0x215   : > { %v4783_v40 = vmax.f32 %v1292_v25, 0.0  ;;  %v1467_v61 = vmul.f32 %v2545_v58, %v4216_v46  ;;  %v1468_v48 = vmul.f32 %v2545_v58, %v4218_v12  ;;  %v1469_v3 = vmul.f32 %v2545_v58, %v4220_v30 }
 0x216   : > { %v1470_v56 = vmul.f32 %v2545_v58, %v4222_v20  ;;  %v1471_v39 = vmul.f32 %v2545_v58, %v4224_v29  ;;  %v1472_v16 = vmul.f32 %v2545_v58, %v4226_v4  ;;  %2556 = vrsqrt.f32 %v1337_v21 }
 0x217   : > { %v4793_v5 = vadd.f32 1e-12, %v1314_v17  ;;  %v1611_v35 = vmul.f32 %v1467_v61, %v5890_v51  ;;  %v1612_v19 = vmul.f32 %v1468_v48, %v5891_v7  ;;  %v1613_v9 = vmul.f32 %v1469_v3, %v5892_v42 }
 0x218   : > { %v1614_v0 = vmul.f32 %v1470_v56, %v5893_v32  ;;  %v1615_v60 = vmul.f32 %v1471_v39, %v5894_v38  ;;  %v1616_v50 = vmul.f32 %v1472_v16, %v5895_v23  ;;  %v1755_v14 = vmul.f32 %v1467_v61, %v5896_v43  ;;  %v5897_v32 = vld [vmem:[#allocation83_spill] sm:$0xff]  ;;  %v5898_v38 = vld [vmem:[#allocation84_spill] sm:$0xff] }
 0x219   : > { %v1756_v49 = vmul.f32 %v1468_v48, %v5896_v43  ;;  %v1757_v57 = vmul.f32 %v1469_v3, %v5896_v43  ;;  %v1758_v11 = vmul.f32 %v1470_v56, %v5896_v43  ;;  %v1759_v13 = vmul.f32 %v1471_v39, %v5896_v43 }
 0x21a   : > { %v1760_v45 = vmul.f32 %v1472_v16, %v5896_v43  ;;  %v4809_v27 = vpop.eup %2550  ;;  %v1930_v47 = vsub.f32 %v4228_v33, %v1755_v14  ;;  %v1461_v24 = vmul.f32 %v2547_v6, %v4216_v46  ;;  %v1462_v8 = vmul.f32 %v2547_v6, %v4218_v12  ;;  %v5899_v43 = vld [vmem:[#allocation86_spill] sm:$0xff] }
 0x21b   : > { %v1931_v34 = vsub.f32 %v4236_v2, %v1756_v49  ;;  %v1932_v25 = vsub.f32 %v4244_v37, %v1757_v57  ;;  %v1933_v1 = vsub.f32 %v4246_v18, %v1758_v11  ;;  %v1934_v15 = vsub.f32 %v4250_v59, %v1759_v13  ;;  %v5902_v11 = vld [vmem:[#allocation89_spill] sm:$0xff]  ;;  %v5903_v13 = vld [vmem:[#allocation94_spill] sm:$0xff] }
 0x21c   : > { %v1935_v17 = vsub.f32 %v4260_v62, %v1760_v45  ;;  %v4819_v21 = vpop.eup %2552  ;;  %v2074_v58 = vadd.f32 %v1930_v47, %v1611_v35  ;;  %v1463_v48 = vmul.f32 %v2547_v6, %v4220_v30  ;;  %v1464_v3 = vmul.f32 %v2547_v6, %v4222_v20 }
 0x21d   : > { %v2075_v61 = vadd.f32 %v1931_v34, %v1612_v19  ;;  %v4823_v56 = vpop.eup %2554  ;;  %v2076_v39 = vadd.f32 %v1932_v25, %v1613_v9  ;;  %v2077_v16 = vadd.f32 %v1933_v1, %v1614_v0  ;;  %v2078_v51 = vadd.f32 %v1934_v15, %v1615_v60  ;;  %v5900_v9 = vld [vmem:[#allocation88_spill] sm:$0xff]  ;;  %v5901_v60 = vld [vmem:[#allocation87_spill] sm:$0xff] }
 0x21e   : > { %v2079_v7 = vadd.f32 %v1935_v17, %v1616_v50  ;;  %2218 = vst [vmem:[%s4405_s28 + $0x210] sm:$0xff] %v2074_v58  ;;  %v1465_v42 = vmul.f32 %v2547_v6, %v4224_v29  ;;  %v1466_v35 = vmul.f32 %v2547_v6, %v4226_v4  ;;  %v1605_v19 = vmul.f32 %v1461_v24, %v5897_v32 }
 0x21f   : > { %2219 = vst [vmem:[%s4405_s28 + $0x218] sm:$0xff] %v2075_v61  ;;  %v1606_v23 = vmul.f32 %v1462_v8, %v5898_v38  ;;  %2220 = vst [vmem:[%s4405_s28 + $0x220] sm:$0xff] %v2076_v39  ;;  %v1607_v14 = vmul.f32 %v1463_v48, %v5899_v43  ;;  %v1608_v0 = vmul.f32 %v1464_v3, %v5900_v9  ;;  %v5905_v9 = vld [vmem:[#allocation93_spill] sm:$0xff]  ;;  %2558 = vrsqrt.f32 %v4779_v31 }
 0x220   : > { %2221 = vst [vmem:[%s4405_s28 + $0x228] sm:$0xff] %v2077_v16  ;;  %2222 = vst [vmem:[%s4405_s28 + $0x230] sm:$0xff] %v2078_v51  ;;  %v1749_v50 = vmul.f32 %v1461_v24, %v5901_v60  ;;  %v1750_v49 = vmul.f32 %v1462_v8, %v5901_v60  ;;  %v4839_v57 = vpop.eup %2556  ;;  %v1609_v6 = vmul.f32 %v1465_v42, %v5902_v11  ;;  %2560 = vrsqrt.f32 %v4781_v63 }
 0x221   : > { %2223 = vst [vmem:[%s4405_s28 + $0x238] sm:$0xff] %v2079_v7  ;;  %v1610_v45 = vmul.f32 %v1466_v35, %v5903_v13  ;;  %v1751_v47 = vmul.f32 %v1463_v48, %v5901_v60  ;;  %v1752_v34 = vmul.f32 %v1464_v3, %v5901_v60  ;;  %v1753_v25 = vmul.f32 %v1465_v42, %v5901_v60 }
 0x222   : > { %v1754_v1 = vmul.f32 %v1466_v35, %v5901_v60  ;;  %v1924_v15 = vsub.f32 %v4228_v33, %v1749_v50  ;;  %v1925_v24 = vsub.f32 %v4236_v2, %v1750_v49  ;;  %v1479_v58 = vmul.f32 %v4803_v26, %v4216_v46  ;;  %v5906_v60 = vld [vmem:[#allocation95_spill] sm:$0xff]  ;;  %v5907_v49 = vld [vmem:[#allocation96_spill] sm:$0xff] }
 0x223   : > { %v1926_v8 = vsub.f32 %v4244_v37, %v1751_v47  ;;  %v1927_v17 = vsub.f32 %v4246_v18, %v1752_v34  ;;  %v1480_v61 = vmul.f32 %v4803_v26, %v4218_v12  ;;  %v1928_v48 = vsub.f32 %v4250_v59, %v1753_v25  ;;  %v5910_v34 = vld [vmem:[#allocation98_spill] sm:$0xff] }
 0x224   : > { %v1929_v3 = vsub.f32 %v4260_v62, %v1754_v1  ;;  %v2068_v39 = vadd.f32 %v1924_v15, %v1605_v19  ;;  %v2069_v16 = vadd.f32 %v1925_v24, %v1606_v23  ;;  %v1481_v42 = vmul.f32 %v4803_v26, %v4220_v30  ;;  %v5904_v23 = vld [vmem:[#allocation92_spill] sm:$0xff] }
 0x225   : > { %v2070_v51 = vadd.f32 %v1926_v8, %v1607_v14  ;;  %v2071_v7 = vadd.f32 %v1927_v17, %v1608_v0  ;;  %v1482_v35 = vmul.f32 %v4803_v26, %v4222_v20  ;;  %v2072_v32 = vadd.f32 %v1928_v48, %v1609_v6  ;;  %v5908_v6 = vld [vmem:[#allocation97_spill] sm:$0xff] }
 0x226   : > { %v2073_v38 = vadd.f32 %v1929_v3, %v1610_v45  ;;  %2212 = vst [vmem:[%s4405_s28 + $0x1e0] sm:$0xff] %v2068_v39  ;;  %2213 = vst [vmem:[%s4405_s28 + $0x1e8] sm:$0xff] %v2069_v16  ;;  %v1483_v43 = vmul.f32 %v4803_v26, %v4224_v29  ;;  %v1484_v19 = vmul.f32 %v4803_v26, %v4226_v4  ;;  %v5909_v45 = vld [vmem:[#allocation101_spill] sm:$0xff]  ;;  %v1319_v31 = vmax.f32 %v1295_v53, 0.0 }
 0x227   : > { %2214 = vst [vmem:[%s4405_s28 + $0x1f0] sm:$0xff] %v2070_v51  ;;  %2215 = vst [vmem:[%s4405_s28 + $0x1f8] sm:$0xff] %v2071_v7  ;;  %v1623_v14 = vmul.f32 %v1479_v58, %v5904_v23  ;;  %v1624_v0 = vmul.f32 %v1480_v61, %v5905_v9  ;;  %v1625_v50 = vmul.f32 %v1481_v42, %v5906_v60  ;;  %2562 = vrsqrt.f32 %v4793_v5  ;;  %v5939_v5 = vld [vmem:[#allocation123_spill] sm:$0xff] }
 0x228   : > { %v1626_v11 = vmul.f32 %v1482_v35, %v5907_v49  ;;  %2216 = vst [vmem:[%s4405_s28 + $0x200] sm:$0xff] %v2072_v32  ;;  %2217 = vst [vmem:[%s4405_s28 + $0x208] sm:$0xff] %v2073_v38  ;;  %v1627_v13 = vmul.f32 %v1483_v43, %v5908_v6  ;;  %v1628_v47 = vmul.f32 %v1484_v19, %v5909_v45  ;;  %v5912_v49 = vld [vmem:[#allocation100_spill] sm:$0xff]  ;;  %v1343_v63 = vadd.f32 1e-12, %v1319_v31 }
 0x229   : > { %v1767_v25 = vmul.f32 %v1479_v58, %v5910_v34  ;;  %v1768_v26 = vmul.f32 %v1480_v61, %v5910_v34  ;;  %v1769_v1 = vmul.f32 %v1481_v42, %v5910_v34  ;;  %v1770_v15 = vmul.f32 %v1482_v35, %v5910_v34  ;;  %v2559_v55 = vpop.eup %2558 }
 0x22a   : > { %v1771_v24 = vmul.f32 %v1483_v43, %v5910_v34  ;;  %v1772_v8 = vmul.f32 %v1484_v19, %v5910_v34  ;;  %v1473_v3 = vmul.f32 %v4809_v27, %v4216_v46  ;;  %v1474_v58 = vmul.f32 %v4809_v27, %v4218_v12 }
 0x22b   : > { %v1942_v17 = vsub.f32 %v4228_v33, %v1767_v25  ;;  %v1943_v48 = vsub.f32 %v4236_v2, %v1768_v26  ;;  %v1944_v61 = vsub.f32 %v4244_v37, %v1769_v1  ;;  %v1945_v39 = vsub.f32 %v4246_v18, %v1770_v15  ;;  %v5916_v26 = vld [vmem:[#allocation104_spill] sm:$0xff]  ;;  %v5917_v15 = vld [vmem:[#allocation107_spill] sm:$0xff] }
 0x22c   : > { %v1946_v16 = vsub.f32 %v4250_v59, %v1771_v24  ;;  %v1947_v51 = vsub.f32 %v4260_v62, %v1772_v8  ;;  %v1475_v35 = vmul.f32 %v4809_v27, %v4220_v30  ;;  %v1476_v32 = vmul.f32 %v4809_v27, %v4222_v20 }
 0x22d   : > { %v2086_v7 = vadd.f32 %v1942_v17, %v1623_v14  ;;  %v2087_v42 = vadd.f32 %v1943_v48, %v1624_v0  ;;  %v2088_v38 = vadd.f32 %v1944_v61, %v1625_v50  ;;  %v2089_v43 = vadd.f32 %v1945_v39, %v1626_v11  ;;  %v5911_v0 = vld [vmem:[#allocation99_spill] sm:$0xff]  ;;  %v5913_v50 = vld [vmem:[#allocation102_spill] sm:$0xff] }
 0x22e   : > { %v2090_v19 = vadd.f32 %v1946_v16, %v1627_v13  ;;  %v2091_v23 = vadd.f32 %v1947_v51, %v1628_v47  ;;  %v1477_v9 = vmul.f32 %v4809_v27, %v4224_v29  ;;  %v1478_v14 = vmul.f32 %v4809_v27, %v4226_v4  ;;  %v5914_v13 = vld [vmem:[#allocation103_spill] sm:$0xff] }
 0x22f   : > { %2230 = vst [vmem:[%s4405_s28 + $0x270] sm:$0xff] %v2086_v7  ;;  %2231 = vst [vmem:[%s4405_s28 + $0x278] sm:$0xff] %v2087_v42  ;;  %v1617_v60 = vmul.f32 %v1473_v3, %v5911_v0  ;;  %v1618_v6 = vmul.f32 %v1474_v58, %v5912_v49  ;;  %v1619_v11 = vmul.f32 %v1475_v35, %v5913_v50  ;;  %v5915_v47 = vld [vmem:[#allocation91_spill] sm:$0xff]  ;;  %v5918_v49 = vld [vmem:[#allocation105_spill] sm:$0xff] }
 0x230   : > { %2232 = vst [vmem:[%s4405_s28 + $0x280] sm:$0xff] %v2088_v38  ;;  %2233 = vst [vmem:[%s4405_s28 + $0x288] sm:$0xff] %v2089_v43  ;;  %v1620_v45 = vmul.f32 %v1476_v32, %v5914_v13  ;;  %v1761_v34 = vmul.f32 %v1473_v3, %v5915_v47  ;;  %v1762_v25 = vmul.f32 %v1474_v58, %v5915_v47  ;;  %v5919_v50 = vld [vmem:[#allocation106_spill] sm:$0xff]  ;;  %v5920_v13 = vld [vmem:[#allocation108_spill] sm:$0xff] }
 0x231   : > { %2234 = vst [vmem:[%s4405_s28 + $0x290] sm:$0xff] %v2090_v19  ;;  %2235 = vst [vmem:[%s4405_s28 + $0x298] sm:$0xff] %v2091_v23  ;;  %v1621_v1 = vmul.f32 %v1477_v9, %v5916_v26  ;;  %v1622_v27 = vmul.f32 %v1478_v14, %v5917_v15  ;;  %v1763_v24 = vmul.f32 %v1475_v35, %v5915_v47 }
 0x232   : > { %v1764_v8 = vmul.f32 %v1476_v32, %v5915_v47  ;;  %v1765_v17 = vmul.f32 %v1477_v9, %v5915_v47  ;;  %v1766_v48 = vmul.f32 %v1478_v14, %v5915_v47  ;;  %v1936_v61 = vsub.f32 %v4228_v33, %v1761_v34  ;;  %v5921_v47 = vld [vmem:[#allocation109_spill] sm:$0xff] }
 0x233   : > { %v1937_v39 = vsub.f32 %v4236_v2, %v1762_v25  ;;  %v1938_v3 = vsub.f32 %v4244_v37, %v1763_v24  ;;  %v1491_v16 = vmul.f32 %v4819_v21, %v4216_v46  ;;  %v1492_v51 = vmul.f32 %v4819_v21, %v4218_v12  ;;  %v5922_v25 = vld [vmem:[#allocation110_spill] sm:$0xff] }
 0x234   : > { %v1939_v58 = vsub.f32 %v4246_v18, %v1764_v8  ;;  %v1940_v7 = vsub.f32 %v4250_v59, %v1765_v17  ;;  %v1941_v42 = vsub.f32 %v4260_v62, %v1766_v48  ;;  %v2080_v35 = vadd.f32 %v1936_v61, %v1617_v60 }
 0x235   : > { %v2081_v32 = vadd.f32 %v1937_v39, %v1618_v6  ;;  %v2082_v38 = vadd.f32 %v1938_v3, %v1619_v11  ;;  %v1493_v19 = vmul.f32 %v4819_v21, %v4220_v30  ;;  %v1494_v23 = vmul.f32 %v4819_v21, %v4222_v20 }
 0x236   : > { %v2083_v43 = vadd.f32 %v1939_v58, %v1620_v45  ;;  %v2084_v9 = vadd.f32 %v1940_v7, %v1621_v1  ;;  %v2085_v14 = vadd.f32 %v1941_v42, %v1622_v27  ;;  %2224 = vst [vmem:[%s4405_s28 + $0x240] sm:$0xff] %v2080_v35  ;;  %v1495_v0 = vmul.f32 %v4819_v21, %v4224_v29  ;;  %v5923_v1 = vld [vmem:[#allocation113_spill] sm:$0xff]  ;;  %v5924_v27 = vld [vmem:[#allocation166_spill] sm:$0xff] }
 0x237   : > { %2225 = vst [vmem:[%s4405_s28 + $0x248] sm:$0xff] %v2081_v32  ;;  %v1496_v60 = vmul.f32 %v4819_v21, %v4226_v4  ;;  %2226 = vst [vmem:[%s4405_s28 + $0x250] sm:$0xff] %v2082_v38  ;;  %v1635_v6 = vmul.f32 %v1491_v16, %v5918_v49  ;;  %v1636_v11 = vmul.f32 %v1492_v51, %v5919_v50 }
 0x238   : > { %2227 = vst [vmem:[%s4405_s28 + $0x258] sm:$0xff] %v2083_v43  ;;  %v1637_v45 = vmul.f32 %v1493_v19, %v5920_v13  ;;  %v1638_v34 = vmul.f32 %v1494_v23, %v5921_v47  ;;  %2228 = vst [vmem:[%s4405_s28 + $0x260] sm:$0xff] %v2084_v9  ;;  %v1639_v26 = vmul.f32 %v1495_v0, %v5922_v25 }
 0x239   : > { %2229 = vst [vmem:[%s4405_s28 + $0x268] sm:$0xff] %v2085_v14  ;;  %v1640_v15 = vmul.f32 %v1496_v60, %v5923_v1  ;;  %v1779_v24 = vmul.f32 %v1491_v16, %v5924_v27  ;;  %v1780_v21 = vmul.f32 %v1492_v51, %v5924_v27  ;;  %v1781_v8 = vmul.f32 %v1493_v19, %v5924_v27 }
 0x23a   : > { %v1782_v17 = vmul.f32 %v1494_v23, %v5924_v27  ;;  %v1783_v48 = vmul.f32 %v1495_v0, %v5924_v27  ;;  %v1784_v61 = vmul.f32 %v1496_v60, %v5924_v27  ;;  %v1485_v58 = vmul.f32 %v4823_v56, %v4216_v46  ;;  %v5930_v27 = vld [vmem:[#allocation116_spill] sm:$0xff] }
 0x23b   : > { %v1954_v39 = vsub.f32 %v4228_v33, %v1779_v24  ;;  %v1955_v3 = vsub.f32 %v4236_v2, %v1780_v21  ;;  %v1486_v16 = vmul.f32 %v4823_v56, %v4218_v12  ;;  %v1956_v51 = vsub.f32 %v4244_v37, %v1781_v8  ;;  %v5931_v21 = vld [vmem:[#allocation119_spill] sm:$0xff] }
 0x23c   : > { %v1957_v7 = vsub.f32 %v4246_v18, %v1782_v17  ;;  %v1958_v42 = vsub.f32 %v4250_v59, %v1783_v48  ;;  %v1959_v35 = vsub.f32 %v4260_v62, %v1784_v61  ;;  %v1487_v43 = vmul.f32 %v4823_v56, %v4220_v30 }
 0x23d   : > { %v2098_v32 = vadd.f32 %v1954_v39, %v1635_v6  ;;  %v2099_v38 = vadd.f32 %v1955_v3, %v1636_v11  ;;  %v1488_v19 = vmul.f32 %v4823_v56, %v4222_v20  ;;  %v2100_v23 = vadd.f32 %v1956_v51, %v1637_v45  ;;  %v5925_v6 = vld [vmem:[#allocation111_spill] sm:$0xff]  ;;  %v5926_v11 = vld [vmem:[#allocation112_spill] sm:$0xff]  ;;  %v5927_v45 = vld [vmem:[#allocation114_spill] sm:$0xff] }
 0x23e   : > { %v2101_v9 = vadd.f32 %v1957_v7, %v1638_v34  ;;  %v2102_v14 = vadd.f32 %v1958_v42, %v1639_v26  ;;  %v2103_v0 = vadd.f32 %v1959_v35, %v1640_v15  ;;  %v1489_v60 = vmul.f32 %v4823_v56, %v4224_v29  ;;  %v5928_v34 = vld [vmem:[#allocation115_spill] sm:$0xff] }
 0x23f   : > { %2242 = vst [vmem:[%s4405_s28 + $0x2d0] sm:$0xff] %v2098_v32  ;;  %2243 = vst [vmem:[%s4405_s28 + $0x2d8] sm:$0xff] %v2099_v38  ;;  %v1490_v49 = vmul.f32 %v4823_v56, %v4226_v4  ;;  %v1629_v50 = vmul.f32 %v1485_v58, %v5925_v6  ;;  %v1630_v13 = vmul.f32 %v1486_v16, %v5926_v11  ;;  %v5929_v26 = vld [vmem:[#allocation167_spill] sm:$0xff]  ;;  %v5932_v6 = vld [vmem:[#allocation117_spill] sm:$0xff] }
 0x240   : > { %2244 = vst [vmem:[%s4405_s28 + $0x2e0] sm:$0xff] %v2100_v23  ;;  %2245 = vst [vmem:[%s4405_s28 + $0x2e8] sm:$0xff] %v2101_v9  ;;  %v1631_v47 = vmul.f32 %v1487_v43, %v5927_v45  ;;  %v1632_v25 = vmul.f32 %v1488_v19, %v5928_v34  ;;  %v1773_v1 = vmul.f32 %v1485_v58, %v5929_v26  ;;  %v5933_v11 = vld [vmem:[#allocation118_spill] sm:$0xff]  ;;  %v5934_v45 = vld [vmem:[#allocation120_spill] sm:$0xff] }
 0x241   : > { %2246 = vst [vmem:[%s4405_s28 + $0x2f0] sm:$0xff] %v2102_v14  ;;  %2247 = vst [vmem:[%s4405_s28 + $0x2f8] sm:$0xff] %v2103_v0  ;;  %v1774_v15 = vmul.f32 %v1486_v16, %v5929_v26  ;;  %v1633_v24 = vmul.f32 %v1489_v60, %v5930_v27  ;;  %v1634_v56 = vmul.f32 %v1490_v49, %v5931_v21  ;;  %v5937_v27 = vld [vmem:[#allocation168_spill] sm:$0xff] }
 0x242   : > { %v1775_v8 = vmul.f32 %v1487_v43, %v5929_v26  ;;  %v1776_v17 = vmul.f32 %v1488_v19, %v5929_v26  ;;  %v1777_v48 = vmul.f32 %v1489_v60, %v5929_v26  ;;  %v1778_v61 = vmul.f32 %v1490_v49, %v5929_v26 }
 0x243   : > { %v1948_v39 = vsub.f32 %v4228_v33, %v1773_v1  ;;  %v1949_v3 = vsub.f32 %v4236_v2, %v1774_v15  ;;  %v1503_v51 = vmul.f32 %v4839_v57, %v4216_v46  ;;  %v1504_v7 = vmul.f32 %v4839_v57, %v4218_v12  ;;  %v5936_v1 = vld [vmem:[#allocation122_spill] sm:$0xff] }
 0x244   : > { %v1950_v58 = vsub.f32 %v4244_v37, %v1775_v8  ;;  %v1951_v16 = vsub.f32 %v4246_v18, %v1776_v17  ;;  %v1952_v42 = vsub.f32 %v4250_v59, %v1777_v48  ;;  %v1953_v35 = vsub.f32 %v4260_v62, %v1778_v61  ;;  %v5938_v48 = vld [vmem:[#allocation125_spill] sm:$0xff] }
 0x245   : > { %v2092_v32 = vadd.f32 %v1948_v39, %v1629_v50  ;;  %v2093_v38 = vadd.f32 %v1949_v3, %v1630_v13  ;;  %v1505_v23 = vmul.f32 %v4839_v57, %v4220_v30  ;;  %v1506_v9 = vmul.f32 %v4839_v57, %v4222_v20 }
 0x246   : > { %v2094_v43 = vadd.f32 %v1950_v58, %v1631_v47  ;;  %v2095_v19 = vadd.f32 %v1951_v16, %v1632_v25  ;;  %v2096_v14 = vadd.f32 %v1952_v42, %v1633_v24  ;;  %v2097_v0 = vadd.f32 %v1953_v35, %v1634_v56  ;;  %v5935_v25 = vld [vmem:[#allocation121_spill] sm:$0xff] }
 0x247   : > { %2236 = vst [vmem:[%s4405_s28 + $0x2a0] sm:$0xff] %v2092_v32  ;;  %2237 = vst [vmem:[%s4405_s28 + $0x2a8] sm:$0xff] %v2093_v38  ;;  %v1507_v60 = vmul.f32 %v4839_v57, %v4224_v29  ;;  %v1508_v49 = vmul.f32 %v4839_v57, %v4226_v4  ;;  %v1647_v50 = vmul.f32 %v1503_v51, %v5932_v6  ;;  %v5940_v6 = vld [vmem:[#allocation124_spill] sm:$0xff] }
 0x248   : > { %2238 = vst [vmem:[%s4405_s28 + $0x2b0] sm:$0xff] %v2094_v43  ;;  %2239 = vst [vmem:[%s4405_s28 + $0x2b8] sm:$0xff] %v2095_v19  ;;  %v1648_v13 = vmul.f32 %v1504_v7, %v5933_v11  ;;  %v1649_v47 = vmul.f32 %v1505_v23, %v5934_v45  ;;  %v1294_v34 = vsub.f32 %v4777_v36, %v4762_v22  ;;  %v1341_v43 = vadd.f32 1e-12, %v4775_v44  ;;  %v5941_v11 = vld [vmem:[#allocation126_spill] sm:$0xff]  ;;  %v5942_v45 = vld [vmem:[#allocation127_spill] sm:$0xff] }
 0x249   : > { %2240 = vst [vmem:[%s4405_s28 + $0x2c0] sm:$0xff] %v2096_v14  ;;  %2241 = vst [vmem:[%s4405_s28 + $0x2c8] sm:$0xff] %v2097_v0  ;;  %v1650_v26 = vmul.f32 %v1506_v9, %v5935_v25  ;;  %v1651_v15 = vmul.f32 %v1507_v60, %v5936_v1  ;;  %v1791_v24 = vmul.f32 %v1503_v51, %v5937_v27  ;;  %v2561_v0 = vpop.eup %2560 }
 0x24a   : > { %v1792_v57 = vmul.f32 %v1504_v7, %v5937_v27  ;;  %v1793_v21 = vmul.f32 %v1505_v23, %v5937_v27  ;;  %v1794_v56 = vmul.f32 %v1506_v9, %v5937_v27  ;;  %v1795_v8 = vmul.f32 %v1507_v60, %v5937_v27 }
 0x24b   : > { %v1796_v17 = vmul.f32 %v1508_v49, %v5937_v27  ;;  %v1652_v22 = vmul.f32 %v1508_v49, %v5938_v48  ;;  %v1966_v36 = vsub.f32 %v4228_v33, %v1791_v24  ;;  %v1318_v19 = vmax.f32 %v1294_v34, 0.0  ;;  %v5943_v34 = vld [vmem:[#allocation128_spill] sm:$0xff] }
 0x24c   : > { %v1967_v61 = vsub.f32 %v4236_v2, %v1792_v57  ;;  %v1968_v39 = vsub.f32 %v4244_v37, %v1793_v21  ;;  %v1969_v3 = vsub.f32 %v4246_v18, %v1794_v56  ;;  %v1970_v58 = vsub.f32 %v4250_v59, %v1795_v8 }
 0x24d   : > { %v1971_v16 = vsub.f32 %v4260_v62, %v1796_v17  ;;  %v2110_v51 = vadd.f32 %v1966_v36, %v1647_v50  ;;  %v1340_v23 = vadd.f32 1e-12, %v4783_v40  ;;  %2564 = vrsqrt.f32 %v1341_v43 }
 0x24e   : > { %v2111_v7 = vadd.f32 %v1967_v61, %v1648_v13  ;;  %v2112_v42 = vadd.f32 %v1968_v39, %v1649_v47  ;;  %v2113_v35 = vadd.f32 %v1969_v3, %v1650_v26  ;;  %v2114_v32 = vadd.f32 %v1970_v58, %v1651_v15  ;;  %v5944_v26 = vld [vmem:[#allocation131_spill] sm:$0xff]  ;;  %v5945_v15 = vld [vmem:[#allocation169_spill] sm:$0xff]  ;;  %v2563_v61 = vpop.eup %2562 }
 0x24f   : > { %v2115_v38 = vadd.f32 %v1971_v16, %v1652_v22  ;;  %2254 = vst [vmem:[%s4405_s28 + $0x330] sm:$0xff] %v2110_v51  ;;  %v1342_v52 = vadd.f32 1e-12, %v1318_v19  ;;  %2566 = vrsqrt.f32 %v1340_v23  ;;  %v1497_v53 = vmul.f32 %v2559_v55, %v4216_v46 }
 0x250   : > { %2255 = vst [vmem:[%s4405_s28 + $0x338] sm:$0xff] %v2111_v7  ;;  %2256 = vst [vmem:[%s4405_s28 + $0x340] sm:$0xff] %v2112_v42  ;;  %2568 = vrsqrt.f32 %v1343_v63  ;;  %v1498_v9 = vmul.f32 %v2559_v55, %v4218_v12  ;;  %v1499_v44 = vmul.f32 %v2559_v55, %v4220_v30  ;;  %v1500_v14 = vmul.f32 %v2559_v55, %v4222_v20 }
 0x251   : > { %2257 = vst [vmem:[%s4405_s28 + $0x348] sm:$0xff] %v2113_v35  ;;  %2258 = vst [vmem:[%s4405_s28 + $0x350] sm:$0xff] %v2114_v32  ;;  %v1501_v60 = vmul.f32 %v2559_v55, %v4224_v29  ;;  %v1502_v40 = vmul.f32 %v2559_v55, %v4226_v4  ;;  %2570 = vrsqrt.f32 %v1342_v52  ;;  %v1641_v49 = vmul.f32 %v1497_v53, %v5939_v5  ;;  %v5949_v5 = vld [vmem:[#allocation133_spill] sm:$0xff] }
 0x252   : > { %2259 = vst [vmem:[%s4405_s28 + $0x358] sm:$0xff] %v2115_v38  ;;  %v1642_v50 = vmul.f32 %v1498_v9, %v5940_v6  ;;  %v1643_v13 = vmul.f32 %v1499_v44, %v5941_v11  ;;  %v1644_v47 = vmul.f32 %v1500_v14, %v5942_v45  ;;  %v1785_v27 = vmul.f32 %v1497_v53, %v5945_v15  ;;  %v5946_v53 = vld [vmem:[#allocation129_spill] sm:$0xff]  ;;  %v5950_v6 = vld [vmem:[#allocation170_spill] sm:$0xff] }
 0x253   : > { %v1645_v25 = vmul.f32 %v1501_v60, %v5943_v34  ;;  %v1646_v1 = vmul.f32 %v1502_v40, %v5944_v26  ;;  %v1786_v24 = vmul.f32 %v1498_v9, %v5945_v15  ;;  %v1787_v57 = vmul.f32 %v1499_v44, %v5945_v15  ;;  %v5947_v44 = vld [vmem:[#allocation130_spill] sm:$0xff] }
 0x254   : > { %v1788_v21 = vmul.f32 %v1500_v14, %v5945_v15  ;;  %v1789_v56 = vmul.f32 %v1501_v60, %v5945_v15  ;;  %v1790_v8 = vmul.f32 %v1502_v40, %v5945_v15  ;;  %v1960_v17 = vsub.f32 %v4228_v33, %v1785_v27  ;;  %v5948_v60 = vld [vmem:[#allocation132_spill] sm:$0xff]  ;;  %v5951_v45 = vld [vmem:[#allocation134_spill] sm:$0xff] }
 0x255   : > { %v1961_v48 = vsub.f32 %v4236_v2, %v1786_v24  ;;  %v1515_v22 = vmul.f32 %v2561_v0, %v4216_v46  ;;  %v1516_v36 = vmul.f32 %v2561_v0, %v4218_v12  ;;  %v1962_v39 = vsub.f32 %v4244_v37, %v1787_v57 }
 0x256   : > { %v1963_v3 = vsub.f32 %v4246_v18, %v1788_v21  ;;  %v1964_v58 = vsub.f32 %v4250_v59, %v1789_v56  ;;  %v1965_v16 = vsub.f32 %v4260_v62, %v1790_v8  ;;  %v2104_v7 = vadd.f32 %v1960_v17, %v1641_v49 }
 0x257   : > { %v5075_v51 = vpop.eup %2564  ;;  %v2105_v31 = vadd.f32 %v1961_v48, %v1642_v50  ;;  %v1517_v42 = vmul.f32 %v2561_v0, %v4220_v30  ;;  %v1518_v35 = vmul.f32 %v2561_v0, %v4222_v20  ;;  %v2106_v38 = vadd.f32 %v1962_v39, %v1643_v13 }
 0x258   : > { %v2107_v43 = vadd.f32 %v1963_v3, %v1644_v47  ;;  %v2108_v19 = vadd.f32 %v1964_v58, %v1645_v25  ;;  %v2109_v23 = vadd.f32 %v1965_v16, %v1646_v1  ;;  %2248 = vst [vmem:[%s4405_s28 + $0x300] sm:$0xff] %v2104_v7  ;;  %v1519_v52 = vmul.f32 %v2561_v0, %v4224_v29  ;;  %v5952_v47 = vld [vmem:[#allocation137_spill] sm:$0xff] }
 0x259   : > { %v5079_v32 = vpop.eup %2566  ;;  %2249 = vst [vmem:[%s4405_s28 + $0x308] sm:$0xff] %v2105_v31  ;;  %v1520_v55 = vmul.f32 %v2561_v0, %v4226_v4  ;;  %v1659_v9 = vmul.f32 %v1515_v22, %v5946_v53  ;;  %v1660_v14 = vmul.f32 %v1516_v36, %v5947_v44  ;;  %2250 = vst [vmem:[%s4405_s28 + $0x310] sm:$0xff] %v2106_v38  ;;  %v5953_v38 = vld [vmem:[#allocation135_spill] sm:$0xff]  ;;  %v5957_v44 = vld [vmem:[#allocation140_spill] sm:$0xff] }
 0x25a   : > { %v5081_v63 = vpop.eup %2568  ;;  %2251 = vst [vmem:[%s4405_s28 + $0x318] sm:$0xff] %v2107_v43  ;;  %2252 = vst [vmem:[%s4405_s28 + $0x320] sm:$0xff] %v2108_v19  ;;  %v1661_v40 = vmul.f32 %v1517_v42, %v5948_v60  ;;  %v1662_v49 = vmul.f32 %v1518_v35, %v5949_v5  ;;  %v1803_v50 = vmul.f32 %v1515_v22, %v5950_v6  ;;  %v5954_v19 = vld [vmem:[#allocation136_spill] sm:$0xff]  ;;  %v5956_v53 = vld [vmem:[#allocation139_spill] sm:$0xff] }
 0x25b   : > { %2253 = vst [vmem:[%s4405_s28 + $0x328] sm:$0xff] %v2109_v23  ;;  %v1804_v11 = vmul.f32 %v1516_v36, %v5950_v6  ;;  %v5097_v13 = vpop.eup %2570  ;;  %v1663_v0 = vmul.f32 %v1519_v52, %v5951_v45  ;;  %v1664_v34 = vmul.f32 %v1520_v55, %v5952_v47  ;;  %v1805_v25 = vmul.f32 %v1517_v42, %v5950_v6  ;;  %v5958_v60 = vld [vmem:[#allocation143_spill] sm:$0xff] }
 0x25c   : > { %v1806_v26 = vmul.f32 %v1518_v35, %v5950_v6  ;;  %v1807_v1 = vmul.f32 %v1519_v52, %v5950_v6  ;;  %v1808_v15 = vmul.f32 %v1520_v55, %v5950_v6  ;;  %v1978_v27 = vsub.f32 %v4228_v33, %v1803_v50  ;;  %v5955_v52 = vld [vmem:[#allocation138_spill] sm:$0xff]  ;;  %v5959_v5 = vld [vmem:[#allocation171_spill] sm:$0xff] }
 0x25d   : > { %v1979_v24 = vsub.f32 %v4236_v2, %v1804_v11  ;;  %v1980_v57 = vsub.f32 %v4244_v37, %v1805_v25  ;;  %v1509_v56 = vmul.f32 %v2563_v61, %v4216_v46  ;;  %v1510_v8 = vmul.f32 %v2563_v61, %v4218_v12 }
 0x25e   : > { %v1981_v21 = vsub.f32 %v4246_v18, %v1806_v26  ;;  %v1982_v17 = vsub.f32 %v4250_v59, %v1807_v1  ;;  %v1983_v48 = vsub.f32 %v4260_v62, %v1808_v15  ;;  %v2122_v22 = vadd.f32 %v1978_v27, %v1659_v9 }
 0x25f   : > { %v2123_v36 = vadd.f32 %v1979_v24, %v1660_v14  ;;  %v2124_v39 = vadd.f32 %v1980_v57, %v1661_v40  ;;  %v1511_v58 = vmul.f32 %v2563_v61, %v4220_v30  ;;  %v1512_v16 = vmul.f32 %v2563_v61, %v4222_v20 }
 0x260   : > { %v2125_v3 = vadd.f32 %v1981_v21, %v1662_v49  ;;  %v2126_v7 = vadd.f32 %v1982_v17, %v1663_v0  ;;  %v2127_v31 = vadd.f32 %v1983_v48, %v1664_v34  ;;  %2266 = vst [vmem:[%s4405_s28 + $0x390] sm:$0xff] %v2122_v22  ;;  %v1513_v42 = vmul.f32 %v2563_v61, %v4224_v29 }
 0x261   : > { %2267 = vst [vmem:[%s4405_s28 + $0x398] sm:$0xff] %v2123_v36  ;;  %v1514_v35 = vmul.f32 %v2563_v61, %v4226_v4  ;;  %2268 = vst [vmem:[%s4405_s28 + $0x3a0] sm:$0xff] %v2124_v39  ;;  %v1653_v43 = vmul.f32 %v1509_v56, %v5953_v38  ;;  %v1654_v23 = vmul.f32 %v1510_v8, %v5954_v19 }
 0x262   : > { %2269 = vst [vmem:[%s4405_s28 + $0x3a8] sm:$0xff] %v2125_v3  ;;  %v1655_v55 = vmul.f32 %v1511_v58, %v5955_v52  ;;  %v1656_v9 = vmul.f32 %v1512_v16, %v5956_v53  ;;  %2270 = vst [vmem:[%s4405_s28 + $0x3b0] sm:$0xff] %v2126_v7  ;;  %v1657_v14 = vmul.f32 %v1513_v42, %v5957_v44  ;;  %v5960_v3 = vld [vmem:[#allocation141_spill] sm:$0xff] }
 0x263   : > { %2271 = vst [vmem:[%s4405_s28 + $0x3b8] sm:$0xff] %v2127_v31  ;;  %v1658_v40 = vmul.f32 %v1514_v35, %v5958_v60  ;;  %v1797_v49 = vmul.f32 %v1509_v56, %v5959_v5  ;;  %v1798_v61 = vmul.f32 %v1510_v8, %v5959_v5  ;;  %v1799_v6 = vmul.f32 %v1511_v58, %v5959_v5  ;;  %v5962_v31 = vld [vmem:[#allocation144_spill] sm:$0xff] }
 0x264   : > { %v1800_v50 = vmul.f32 %v1512_v16, %v5959_v5  ;;  %v1801_v11 = vmul.f32 %v1513_v42, %v5959_v5  ;;  %v1802_v45 = vmul.f32 %v1514_v35, %v5959_v5  ;;  %v1527_v34 = vmul.f32 %v5075_v51, %v4216_v46  ;;  %v5961_v16 = vld [vmem:[#allocation142_spill] sm:$0xff]  ;;  %v5963_v35 = vld [vmem:[#allocation145_spill] sm:$0xff] }
 0x265   : > { %v1972_v0 = vsub.f32 %v4228_v33, %v1797_v49  ;;  %v1973_v47 = vsub.f32 %v4236_v2, %v1798_v61  ;;  %v1528_v25 = vmul.f32 %v5075_v51, %v4218_v12  ;;  %v1974_v26 = vsub.f32 %v4244_v37, %v1799_v6 }
 0x266   : > { %v1975_v1 = vsub.f32 %v4246_v18, %v1800_v50  ;;  %v1976_v15 = vsub.f32 %v4250_v59, %v1801_v11  ;;  %v1977_v27 = vsub.f32 %v4260_v62, %v1802_v45  ;;  %v1529_v21 = vmul.f32 %v5075_v51, %v4220_v30 }
 0x267   : > { %v2116_v24 = vadd.f32 %v1972_v0, %v1653_v43  ;;  %v2117_v57 = vadd.f32 %v1973_v47, %v1654_v23  ;;  %v1530_v56 = vmul.f32 %v5075_v51, %v4222_v20  ;;  %v2118_v8 = vadd.f32 %v1974_v26, %v1655_v55  ;;  %v5964_v23 = vld [vmem:[#allocation146_spill] sm:$0xff]  ;;  %v5965_v55 = vld [vmem:[#allocation149_spill] sm:$0xff] }
 0x268   : > { %v2119_v17 = vadd.f32 %v1975_v1, %v1656_v9  ;;  %v2120_v48 = vadd.f32 %v1976_v15, %v1657_v14  ;;  %v2121_v22 = vadd.f32 %v1977_v27, %v1658_v40  ;;  %v1531_v36 = vmul.f32 %v5075_v51, %v4224_v29 }
 0x269   : > { %2260 = vst [vmem:[%s4405_s28 + $0x360] sm:$0xff] %v2116_v24  ;;  %2261 = vst [vmem:[%s4405_s28 + $0x368] sm:$0xff] %v2117_v57  ;;  %v1532_v39 = vmul.f32 %v5075_v51, %v4226_v4  ;;  %v1671_v58 = vmul.f32 %v1527_v34, %v5960_v3  ;;  %v1672_v7 = vmul.f32 %v1528_v25, %v5961_v16  ;;  %v5966_v24 = vld [vmem:[#allocation147_spill] sm:$0xff] }
 0x26a   : > { %2262 = vst [vmem:[%s4405_s28 + $0x370] sm:$0xff] %v2118_v8  ;;  %2263 = vst [vmem:[%s4405_s28 + $0x378] sm:$0xff] %v2119_v17  ;;  %v1673_v42 = vmul.f32 %v1529_v21, %v5962_v31  ;;  %v1674_v38 = vmul.f32 %v1530_v56, %v5963_v35  ;;  %v1815_v43 = vmul.f32 %v1527_v34, %v4350_v54  ;;  %v5968_v8 = vld [vmem:[#allocation150_spill] sm:$0xff]  ;;  %v5971_v3 = vld [vmem:[#allocation155_spill] sm:$0xff] }
 0x26b   : > { %2264 = vst [vmem:[%s4405_s28 + $0x380] sm:$0xff] %v2120_v48  ;;  %2265 = vst [vmem:[%s4405_s28 + $0x388] sm:$0xff] %v2121_v22  ;;  %v1816_v19 = vmul.f32 %v1528_v25, %v4350_v54  ;;  %v1675_v52 = vmul.f32 %v1531_v36, %v5964_v23  ;;  %v1676_v51 = vmul.f32 %v1532_v39, %v5965_v55  ;;  %v5969_v48 = vld [vmem:[#allocation151_spill] sm:$0xff] }
 0x26c   : > { %v1817_v53 = vmul.f32 %v1529_v21, %v4350_v54  ;;  %v1818_v9 = vmul.f32 %v1530_v56, %v4350_v54  ;;  %v1819_v44 = vmul.f32 %v1531_v36, %v4350_v54  ;;  %v1820_v14 = vmul.f32 %v1532_v39, %v4350_v54  ;;  %v5967_v21 = vld [vmem:[#allocation148_spill] sm:$0xff] }
 0x26d   : > { %v1990_v60 = vsub.f32 %v4228_v33, %v1815_v43  ;;  %v1991_v40 = vsub.f32 %v4236_v2, %v1816_v19  ;;  %v1521_v61 = vmul.f32 %v5079_v32, %v4216_v46  ;;  %v1522_v6 = vmul.f32 %v5079_v32, %v4218_v12  ;;  %v5970_v36 = vld [vmem:[#allocation152_spill] sm:$0xff] }
 0x26e   : > { %v1992_v5 = vsub.f32 %v4244_v37, %v1817_v53  ;;  %v1993_v49 = vsub.f32 %v4246_v18, %v1818_v9  ;;  %v1994_v54 = vsub.f32 %v4250_v59, %v1819_v44  ;;  %v1995_v50 = vsub.f32 %v4260_v62, %v1820_v14 }
 0x26f   : > { %v2134_v11 = vadd.f32 %v1990_v60, %v1671_v58  ;;  %v2135_v45 = vadd.f32 %v1991_v40, %v1672_v7  ;;  %v1523_v34 = vmul.f32 %v5079_v32, %v4220_v30  ;;  %v1524_v25 = vmul.f32 %v5079_v32, %v4222_v20 }
 0x270   : > { %v2136_v0 = vadd.f32 %v1992_v5, %v1673_v42  ;;  %v2137_v47 = vadd.f32 %v1993_v49, %v1674_v38  ;;  %v2138_v26 = vadd.f32 %v1994_v54, %v1675_v52  ;;  %v2139_v1 = vadd.f32 %v1995_v50, %v1676_v51  ;;  %v5972_v54 = vld [vmem:[#allocation153_spill] sm:$0xff] }
 0x271   : > { %2278 = vst [vmem:[%s4405_s28 + $0x3f0] sm:$0xff] %v2134_v11  ;;  %2279 = vst [vmem:[%s4405_s28 + $0x3f8] sm:$0xff] %v2135_v45  ;;  %v1525_v15 = vmul.f32 %v5079_v32, %v4224_v29  ;;  %v1526_v27 = vmul.f32 %v5079_v32, %v4226_v4  ;;  %v1665_v57 = vmul.f32 %v1521_v61, %v5966_v24  ;;  %v5973_v11 = vld [vmem:[#allocation154_spill] sm:$0xff]  ;;  %v5977_v24 = vld [vmem:[#allocation159_spill] sm:$0xff] }
 0x272   : > { %2280 = vst [vmem:[%s4405_s28 + $0x400] sm:$0xff] %v2136_v0  ;;  %2281 = vst [vmem:[%s4405_s28 + $0x408] sm:$0xff] %v2137_v47  ;;  %v1666_v56 = vmul.f32 %v1522_v6, %v5967_v21  ;;  %v1667_v17 = vmul.f32 %v1523_v34, %v5968_v8  ;;  %v1668_v22 = vmul.f32 %v1524_v25, %v5969_v48  ;;  %v5974_v0 = vld [vmem:[#allocation156_spill] sm:$0xff] }
 0x273   : > { %2282 = vst [vmem:[%s4405_s28 + $0x410] sm:$0xff] %v2138_v26  ;;  %2283 = vst [vmem:[%s4405_s28 + $0x418] sm:$0xff] %v2139_v1  ;;  %v1669_v39 = vmul.f32 %v1525_v15, %v5970_v36  ;;  %v1670_v58 = vmul.f32 %v1526_v27, %v5971_v3  ;;  %v1809_v16 = vmul.f32 %v1521_v61, %v4357_v10 }
 0x274   : > { %v1810_v32 = vmul.f32 %v1522_v6, %v4357_v10  ;;  %v1811_v7 = vmul.f32 %v1523_v34, %v4357_v10  ;;  %v1812_v31 = vmul.f32 %v1524_v25, %v4357_v10  ;;  %v1813_v42 = vmul.f32 %v1525_v15, %v4357_v10  ;;  %v5975_v34 = vld [vmem:[#allocation157_spill] sm:$0xff]  ;;  %v5976_v15 = vld [vmem:[#allocation158_spill] sm:$0xff] }
 0x275   : > { %v1814_v35 = vmul.f32 %v1526_v27, %v4357_v10  ;;  %v1984_v38 = vsub.f32 %v4228_v33, %v1809_v16  ;;  %v1539_v19 = vmul.f32 %v5081_v63, %v4216_v46  ;;  %v1540_v23 = vmul.f32 %v5081_v63, %v4218_v12 }
 0x276   : > { %v1985_v43 = vsub.f32 %v4236_v2, %v1810_v32  ;;  %v1986_v52 = vsub.f32 %v4244_v37, %v1811_v7  ;;  %v1987_v55 = vsub.f32 %v4246_v18, %v1812_v31  ;;  %v1988_v51 = vsub.f32 %v4250_v59, %v1813_v42 }
 0x277   : > { %v1989_v10 = vsub.f32 %v4260_v62, %v1814_v35  ;;  %v2128_v53 = vadd.f32 %v1984_v38, %v1665_v57  ;;  %v1541_v44 = vmul.f32 %v5081_v63, %v4220_v30  ;;  %v1542_v14 = vmul.f32 %v5081_v63, %v4222_v20 }
 0x278   : > { %v2129_v9 = vadd.f32 %v1985_v43, %v1666_v56  ;;  %v2130_v60 = vadd.f32 %v1986_v52, %v1667_v17  ;;  %v2131_v40 = vadd.f32 %v1987_v55, %v1668_v22  ;;  %v2132_v5 = vadd.f32 %v1988_v51, %v1669_v39  ;;  %v5981_v51 = vld [vmem:[#allocation163_spill] sm:$0xff] }
 0x279   : > { %v2133_v49 = vadd.f32 %v1989_v10, %v1670_v58  ;;  %2272 = vst [vmem:[%s4405_s28 + $0x3c0] sm:$0xff] %v2128_v53  ;;  %v1543_v61 = vmul.f32 %v5081_v63, %v4224_v29  ;;  %v1544_v6 = vmul.f32 %v5081_v63, %v4226_v4  ;;  %v1683_v50 = vmul.f32 %v1539_v19, %v5972_v54 }
 0x27a   : > { %2273 = vst [vmem:[%s4405_s28 + $0x3c8] sm:$0xff] %v2129_v9  ;;  %v1684_v45 = vmul.f32 %v1540_v23, %v5973_v11  ;;  %2274 = vst [vmem:[%s4405_s28 + $0x3d0] sm:$0xff] %v2130_v60  ;;  %v1685_v47 = vmul.f32 %v1541_v44, %v5974_v0  ;;  %v1686_v25 = vmul.f32 %v1542_v14, %v5975_v34 }
 0x27b   : > { %2275 = vst [vmem:[%s4405_s28 + $0x3d8] sm:$0xff] %v2131_v40  ;;  %2276 = vst [vmem:[%s4405_s28 + $0x3e0] sm:$0xff] %v2132_v5  ;;  %v1827_v26 = vmul.f32 %v1539_v19, %v4360_v28  ;;  %v1828_v1 = vmul.f32 %v1540_v23, %v4360_v28  ;;  %v1687_v27 = vmul.f32 %v1543_v61, %v5976_v15  ;;  %v5978_v19 = vld [vmem:[#allocation160_spill] sm:$0xff]  ;;  %v5983_v40 = vld [vmem:[#allocation165_spill] sm:$0xff] }
 0x27c   : > { %2277 = vst [vmem:[%s4405_s28 + $0x3e8] sm:$0xff] %v2133_v49  ;;  %v1688_v63 = vmul.f32 %v1544_v6, %v5977_v24  ;;  %v1829_v57 = vmul.f32 %v1541_v44, %v4360_v28  ;;  %v1830_v21 = vmul.f32 %v1542_v14, %v4360_v28  ;;  %v1831_v56 = vmul.f32 %v1543_v61, %v4360_v28  ;;  %v5982_v14 = vld [vmem:[#allocation164_spill] sm:$0xff] }
 0x27d   : > { %v1832_v8 = vmul.f32 %v1544_v6, %v4360_v28  ;;  %v2002_v17 = vsub.f32 %v4228_v33, %v1827_v26  ;;  %v2003_v48 = vsub.f32 %v4236_v2, %v1828_v1  ;;  %v1533_v39 = vmul.f32 %v5097_v13, %v4216_v46 }
 0x27e   : > { %v2004_v22 = vsub.f32 %v4244_v37, %v1829_v57  ;;  %v2005_v36 = vsub.f32 %v4246_v18, %v1830_v21  ;;  %v1534_v3 = vmul.f32 %v5097_v13, %v4218_v12  ;;  %v2006_v28 = vsub.f32 %v4250_v59, %v1831_v56 }
 0x27f   : > { %v2007_v58 = vsub.f32 %v4260_v62, %v1832_v8  ;;  %v2146_v16 = vadd.f32 %v2002_v17, %v1683_v50  ;;  %v2147_v32 = vadd.f32 %v2003_v48, %v1684_v45  ;;  %v1535_v42 = vmul.f32 %v5097_v13, %v4220_v30  ;;  %v5979_v30 = vld [vmem:[#allocation161_spill] sm:$0xff] }
 0x280   : > { %v2148_v7 = vadd.f32 %v2004_v22, %v1685_v47  ;;  %v2149_v31 = vadd.f32 %v2005_v36, %v1686_v25  ;;  %v1536_v46 = vmul.f32 %v5097_v13, %v4222_v20  ;;  %v2150_v35 = vadd.f32 %v2006_v28, %v1687_v27  ;;  %v5980_v20 = vld [vmem:[#allocation162_spill] sm:$0xff] }
 0x281   : > { %v2151_v12 = vadd.f32 %v2007_v58, %v1688_v63  ;;  %2290 = vst [vmem:[%s4405_s28 + $0x450] sm:$0xff] %v2146_v16  ;;  %2291 = vst [vmem:[%s4405_s28 + $0x458] sm:$0xff] %v2147_v32  ;;  %v1537_v38 = vmul.f32 %v5097_v13, %v4224_v29  ;;  %v1538_v43 = vmul.f32 %v5097_v13, %v4226_v4 }
 0x282   : > { %2292 = vst [vmem:[%s4405_s28 + $0x460] sm:$0xff] %v2148_v7  ;;  %2293 = vst [vmem:[%s4405_s28 + $0x468] sm:$0xff] %v2149_v31  ;;  %v1677_v23 = vmul.f32 %v1533_v39, %v5978_v19  ;;  %v1678_v52 = vmul.f32 %v1534_v3, %v5979_v30  ;;  %v1679_v55 = vmul.f32 %v1535_v42, %v5980_v20 }
 0x283   : > { %2294 = vst [vmem:[%s4405_s28 + $0x470] sm:$0xff] %v2150_v35  ;;  %2295 = vst [vmem:[%s4405_s28 + $0x478] sm:$0xff] %v2151_v12  ;;  %v1680_v10 = vmul.f32 %v1536_v46, %v5981_v51  ;;  %v1821_v53 = vmul.f32 %v1533_v39, %v5885_v41  ;;  %v1822_v29 = vmul.f32 %v1534_v3, %v5885_v41 }
 0x284   : > { %v1823_v4 = vmul.f32 %v1535_v42, %v5885_v41  ;;  %v1824_v13 = vmul.f32 %v1536_v46, %v5885_v41  ;;  %v1825_v9 = vmul.f32 %v1537_v38, %v5885_v41  ;;  %v1826_v44 = vmul.f32 %v1538_v43, %v5885_v41 }
 0x285   : > { %v1681_v60 = vmul.f32 %v1537_v38, %v5982_v14  ;;  %v1682_v5 = vmul.f32 %v1538_v43, %v5983_v40  ;;  %v1996_v49 = vsub.f32 %v4228_v33, %v1821_v53  ;;  %v1997_v61 = vsub.f32 %v4236_v2, %v1822_v29 }
 0x286   : > { %v1998_v6 = vsub.f32 %v4244_v37, %v1823_v4  ;;  %v1999_v54 = vsub.f32 %v4246_v18, %v1824_v13  ;;  %v2000_v41 = vsub.f32 %v4250_v59, %v1825_v9  ;;  %v2001_v50 = vsub.f32 %v4260_v62, %v1826_v44 }
 0x287   : > { %v2140_v11 = vadd.f32 %v1996_v49, %v1677_v23  ;;  %v2141_v45 = vadd.f32 %v1997_v61, %v1678_v52 }
 0x288   : > { %v2142_v2 = vadd.f32 %v1998_v6, %v1679_v55  ;;  %v2143_v37 = vadd.f32 %v1999_v54, %v1680_v10  ;;  %v2144_v33 = vadd.f32 %v2000_v41, %v1681_v60  ;;  %v2145_v18 = vadd.f32 %v2001_v50, %v1682_v5 }
 0x289   : > { %2284 = vst [vmem:[%s4405_s28 + $0x420] sm:$0xff] %v2140_v11  ;;  %2285 = vst [vmem:[%s4405_s28 + $0x428] sm:$0xff] %v2141_v45 }
 0x28a   : > { %2286 = vst [vmem:[%s4405_s28 + $0x430] sm:$0xff] %v2142_v2  ;;  %2287 = vst [vmem:[%s4405_s28 + $0x438] sm:$0xff] %v2143_v37 }
 0x28b   : > { %2288 = vst [vmem:[%s4405_s28 + $0x440] sm:$0xff] %v2144_v33  ;;  %2289 = vst [vmem:[%s4405_s28 + $0x448] sm:$0xff] %v2145_v18 }
 0x28c   : > { %2701 = shalt.err (!%p2698_p2)
}
 0x28d   : > { %s2702_s15 = scalar_lea.hbm %s5290_s16, 18432  ;;  %s2706_s7 = scalar_lea.hbm %s5347_s5, 36864 }
 0x28e   : > { %p2703_p1 = scmp.ne.s32.totalorder %s5290_s16, %s2702_s15  ;;  %p2707_p4 = scmp.lt.u32.totalorder %s5290_s16, %s5347_s5 }
 0x28f   : > { %p2708_p5 = scmp.lt.u32.totalorder %s2706_s7, %s2702_s15  ;;  %p2710_p7 = scmp.lt.u32.totalorder %s2702_s15, %s5290_s16 }
 0x290   : > { %p2704_p8 = pnand %p2703_p1, %p5984_p6 }
 0x291   : > { %p2709_p0 = por %p2708_p5, %p2707_p4 }
 0x292   : > { %p2705_p9 = pneg %p2704_p8 }
 0x293   : > { %p2711_p12 = por %p2710_p7, %p2709_p0 }
 0x295   : > { %p2712_p13 = pnand %p2711_p12, %p2705_p9 }
 0x297   : > { %2715 = shalt.err (!%p2712_p13)
}
 0x298   : > { %s2775_s25 = smov 768   ;;  %s2776_s28 = smov 48  }
 0x299   : > { %2457 = dma.vmem_to_hbm [thread:$0]  (%p5984_p6), %s5292_s8, 18432, %s5290_s16, %s2297_s12, %s2775_s25, %s2775_s25, %s2776_s28  }
 0x29a PF: > { %s2326_s27 = sand.u32 1, %s2754_s0   ;;  %p5985_p11 = scmp.ne.s32.totalorder %s5584_s30, 0 }
 0x29b   : > { %p5986_p3 = scmp.ge.s32.totalorder %s2766_s20, 2  ;;  %s2327_s21 = scalar_lea.sflag [#allocation6], %s2326_s27 }
 0x29d   : > { %p2474_p10 = pnand %p5986_p3, %p5985_p11 }
 0x29f   : > { %2749 = dma.done.wait (!%p2474_p10), %s2327_s21, 18432  }
 0x2a0   : > { %2751 = vsyncadd (!%p2474_p10), %s2327_s21, 4294948864  ;;  %p23_p2 = scmp.ge.s32.totalorder %s2832_s23, 4   ;;  %s5987_s0 = smov %s2758_s18 }
 0x2a1   : > { %s5988_s18 = smov %s2762_s19  ;;  %s5989_s19 = smov %s2844_s26 }
 0x2a2   : > { %s5990_s20 = smov %s2832_s23  ;;  %25 = sbr.rel (!%p23_p2) target bundleno = 10 (0xa), region = 102 }
 0x2a9   :  { %2332 = vsyncpa [#allocation5], 1 }
 0x2aa   :  { %2334 = vsyncpa [#allocation5 + $0x1], 1 }
 0x2ab   :  { %2335 = vsyncpa [#allocation8], 1 }
 0x2ac   :  { %2337 = vsyncpa [#allocation8 + $0x1], 1 }
 0x2ad   :  { %2338 = vsyncpa [#allocation11], 1 }
 0x2ae   :  { %2339 = vsyncpa [#allocation6], 1 }
 0x2af   :  { %2341 = vsyncpa [#allocation6 + $0x1], 1 }

</bundles_post_ra>
